<compile_context>
chip_gen: v6e
topology: v6e:2x2x1
jax: 0.10.0
libtpu: 0.0.40
codegen_flags: <defaults>
</compile_context>

<pallas_src>
import functools

import jax
import jax.numpy as jnp
from jax.experimental import pallas as pl
from jax.experimental.pallas import tpu as pltpu


def _round_up(x, m):
    return ((x + m - 1) // m) * m


def _classifier_kernel(x_ref, w1_ref, b1_ref, w2_ref, b2_ref,
                       out_ref, probs_ref, fc2_ref, fc1_ref, *, n_out):
    # x:  (TB, n_in)   f32 (cast to bf16 here)    w1: (n_in, Hpad)   bf16
    # b1: (1, Hpad)    f32                        w2: (Hpad, Npad)   bf16
    # b2: (1, Npad)    f32
    x = x_ref[...].astype(jnp.bfloat16)          # in-kernel cast (free VPU op)

    # fc1 + ReLU  (bf16 MXU matmul, f32 accumulation; epilogue f32)
    h = jnp.dot(x, w1_ref[...], preferred_element_type=jnp.float32) + b1_ref[...]
    h = jnp.maximum(h, 0.0)
    fc1_ref[...] = h

    # fc2 (pre-activation logits); only the matmul operand is cast to bf16
    z = jnp.dot(h.astype(jnp.bfloat16), w2_ref[...],
                preferred_element_type=jnp.float32) + b2_ref[...]
    fc2_ref[...] = z

    # numerically-stable sigmoid via tanh (EUP): sigmoid(z) = 0.5*(tanh(z/2)+1)
    s = 0.5 * (jnp.tanh(0.5 * z) + 1.0)
    out_ref[...] = s

    # softmax over dim=1 on the sigmoid output (as in the module).
    # s is in (0,1) so the max-shift is unnecessary.  Padded lanes (>= n_out)
    # hold sigmoid(0)=0.5 and MUST be masked out of the denominator.
    lane = jax.lax.broadcasted_iota(jnp.int32, s.shape, 1)
    e = jnp.where(lane < n_out, jnp.exp(s), 0.0)
    denom = jnp.sum(e, axis=1, keepdims=True)
    probs_ref[...] = e / denom                   # exact division for parity


def prepare_params(w1, b1, w2, b2):
    """One-time pad + cast of the parameters (hoisted out of the per-call path).

    w1: (n_in, hidden), b1: (1, hidden), w2: (hidden, n_out), b2: (1, n_out)
    Returns padded bf16 weights / f32 biases plus the original (hidden, n_out).
    """
    n_in, hidden = w1.shape
    n_out = w2.shape[1]
    h_pad = _round_up(hidden, 128)
    n_pad = _round_up(n_out, 128)

    w1_p = jnp.zeros((n_in, h_pad), jnp.bfloat16).at[:, :hidden].set(
        w1.astype(jnp.bfloat16))
    b1_p = jnp.zeros((1, h_pad), jnp.float32).at[:, :hidden].set(
        b1.reshape(1, hidden).astype(jnp.float32))
    w2_p = jnp.zeros((h_pad, n_pad), jnp.bfloat16).at[:hidden, :n_out].set(
        w2.astype(jnp.bfloat16))
    b2_p = jnp.zeros((1, n_pad), jnp.float32).at[:, :n_out].set(
        b2.reshape(1, n_out).astype(jnp.float32))
    return w1_p, b1_p, w2_p, b2_p, hidden, n_out


@functools.partial(jax.jit, static_argnames=("hidden", "n_out"))
def classifier_forward(x_nchw, w1_p, b1_p, w2_p, b2_p, *, hidden, n_out):
    """x_nchw: (B, C, H, W) f32; padded params from prepare_params().
    Returns (out, probs, fc2, fc1) with the module's public shapes."""
    B = x_nchw.shape[0]
    x2d = x_nchw.reshape(B, -1)                  # torch.flatten(x, 1)
    n_in = x2d.shape[1]
    h_pad = w1_p.shape[1]
    n_pad = w2_p.shape[1]

    # batch tiling: big tiles at large B (HBM roofline), but keep >= 2 grid
    # steps once B >= 256 so v7x's second TensorCore gets work.
    if B < 256:
        tb = min(_round_up(B, 8), 128)
    else:
        tb = min(512, _round_up(_round_up(B, 8) // 2, 128))
    b_pad = _round_up(B, tb)
    grid = (b_pad // tb,)

    # pad the batch only when needed (x stays f32; cast happens in-kernel)
    if b_pad != B:
        x_p = jnp.zeros((b_pad, n_in), x2d.dtype).at[:B].set(x2d)
    else:
        x_p = x2d

    out_shapes = (
        jax.ShapeDtypeStruct((b_pad, n_pad), jnp.float32),   # out = sigmoid(fc2)
        jax.ShapeDtypeStruct((b_pad, n_pad), jnp.float32),   # probs
        jax.ShapeDtypeStruct((b_pad, n_pad), jnp.float32),   # fc2
        jax.ShapeDtypeStruct((b_pad, h_pad), jnp.float32),   # fc1 (post-ReLU)
    )

    out, probs, fc2, fc1 = pl.pallas_call(
        functools.partial(_classifier_kernel, n_out=n_out),
        out_shape=out_shapes,
        grid=grid,
        in_specs=[
            pl.BlockSpec((tb, n_in), lambda i: (i, 0)),      # x, tiled over batch
            pl.BlockSpec((n_in, h_pad), lambda i: (0, 0)),   # w1, VMEM-resident
            pl.BlockSpec((1, h_pad), lambda i: (0, 0)),      # b1
            pl.BlockSpec((h_pad, n_pad), lambda i: (0, 0)),  # w2, VMEM-resident
            pl.BlockSpec((1, n_pad), lambda i: (0, 0)),      # b2
        ],
        out_specs=(
            pl.BlockSpec((tb, n_pad), lambda i: (i, 0)),
            pl.BlockSpec((tb, n_pad), lambda i: (i, 0)),
            pl.BlockSpec((tb, n_pad), lambda i: (i, 0)),
            pl.BlockSpec((tb, h_pad), lambda i: (i, 0)),
        ),
        compiler_params=pltpu.CompilerParams(
            dimension_semantics=("parallel",),
            vmem_limit_bytes=32 << 20,
        ),
    )(x_p, w1_p, b1_p, w2_p, b2_p)

    # slice padding off to preserve the module's public shapes
    return (out[:B, :n_out], probs[:B, :n_out],
            fc2[:B, :n_out], fc1[:B, :hidden])


def init_params(key, n_inputs, hidden, n_outputs):
    """Deterministic PyTorch-style init: U(-1/sqrt(fan_in), 1/sqrt(fan_in)).
    Weights stored pre-transposed as (in_features, out_features), f32 master copy."""
    k1, k2, k3, k4 = jax.random.split(key, 4)
    lim1 = 1.0 / jnp.sqrt(jnp.float32(n_inputs))
    lim2 = 1.0 / jnp.sqrt(jnp.float32(hidden))
    w1 = jax.random.uniform(k1, (n_inputs, hidden), jnp.float32, -lim1, lim1)
    b1 = jax.random.uniform(k2, (1, hidden), jnp.float32, -lim1, lim1)
    w2 = jax.random.uniform(k3, (hidden, n_outputs), jnp.float32, -lim2, lim2)
    b2 = jax.random.uniform(k4, (1, n_outputs), jnp.float32, -lim2, lim2)
    return w1, b1, w2, b2


if __name__ == "__main__":
    key = jax.random.PRNGKey(0)
    kx, kp = jax.random.split(key)

    # Small shapes consistent with the module: flatten(NCHW) -> n_inputs = 4*16*16
    B, C, H, W = 2, 4, 16, 16
    n_inputs = C * H * W          # 1024
    hidden = 1000                 # fixed by the module
    n_outputs = 10

    x = jax.random.normal(kx, (B, C, H, W), jnp.float32)
    w1, b1, w2, b2 = init_params(kp, n_inputs, hidden, n_outputs)

    # one-time weight pad/cast (hoisted out of the forward path)
    w1_p, b1_p, w2_p, b2_p, hidden_, n_out_ = prepare_params(w1, b1, w2, b2)

    out, probs, fc2, fc1 = classifier_forward(
        x, w1_p, b1_p, w2_p, b2_p, hidden=hidden_, n_out=n_out_)
    jax.block_until_ready((out, probs, fc2, fc1))

    # shape checks (public API preserved after padding)
    assert out.shape == (B, n_outputs) and probs.shape == (B, n_outputs)
    assert fc2.shape == (B, n_outputs) and fc1.shape == (B, hidden)

    # reference in plain JAX, mirroring the kernel's precision strategy
    # (bf16 matmul operands, f32 accumulation / epilogue)
    x2d = x.reshape(B, -1)
    ref_fc1 = jnp.maximum(
        jnp.dot(x2d.astype(jnp.bfloat16), w1.astype(jnp.bfloat16),
                preferred_element_type=jnp.float32) + b1, 0.0)
    ref_fc2 = jnp.dot(ref_fc1.astype(jnp.bfloat16), w2.astype(jnp.bfloat16),
                      preferred_element_type=jnp.float32) + b2
    ref_out = jax.nn.sigmoid(ref_fc2)
    ref_probs = jax.nn.softmax(ref_out, axis=1)

    assert jnp.allclose(fc1, ref_fc1, atol=1e-2, rtol=1e-2)
    assert jnp.allclose(fc2, ref_fc2, atol=1e-2, rtol=1e-2)
    assert jnp.allclose(out, ref_out, atol=2e-3, rtol=2e-3)
    assert jnp.allclose(probs, ref_probs, atol=2e-3, rtol=2e-2)

    print("KERNEL_OK")
</pallas_src>

<mosaic_0001>
module attributes {stable_mosaic.version = 11 : i64} {
  func.func @_classifier_kernel(%arg0: i32, %arg1: memref<8x1024xf32, #tpu.memory_space<vmem>>, %arg2: memref<1024x1024xbf16, #tpu.memory_space<vmem>>, %arg3: memref<1x1024xf32, #tpu.memory_space<vmem>>, %arg4: memref<1024x128xbf16, #tpu.memory_space<vmem>>, %arg5: memref<1x128xf32, #tpu.memory_space<vmem>>, %arg6: memref<8x128xf32, #tpu.memory_space<vmem>>, %arg7: memref<8x128xf32, #tpu.memory_space<vmem>>, %arg8: memref<8x128xf32, #tpu.memory_space<vmem>>, %arg9: memref<8x1024xf32, #tpu.memory_space<vmem>>) attributes {dimension_semantics = [#tpu.dimension_semantics<parallel>], iteration_bounds = array<i64: 1>, scalar_prefetch = 0 : i64, scratch_operands = 0 : i64, tpu.core_type = #tpu.core_type<tc>, window_params = [{transform_indices = @transform_0, window_bounds = array<i64: 8, 1024>}, {pipeline_mode = #tpu.pipeline_mode<synchronous>, transform_indices = @transform_1, window_bounds = array<i64: 1024, 1024>}, {pipeline_mode = #tpu.pipeline_mode<synchronous>, transform_indices = @transform_2, window_bounds = array<i64: 1, 1024>}, {pipeline_mode = #tpu.pipeline_mode<synchronous>, transform_indices = @transform_3, window_bounds = array<i64: 1024, 128>}, {pipeline_mode = #tpu.pipeline_mode<synchronous>, transform_indices = @transform_4, window_bounds = array<i64: 1, 128>}, {transform_indices = @transform_5, window_bounds = array<i64: 8, 128>}, {transform_indices = @transform_6, window_bounds = array<i64: 8, 128>}, {transform_indices = @transform_7, window_bounds = array<i64: 8, 128>}, {transform_indices = @transform_8, window_bounds = array<i64: 8, 1024>}]} {
    %c0 = arith.constant 0 : index
    %c0_0 = arith.constant 0 : index
    %0 = vector.load %arg1[%c0, %c0_0] : memref<8x1024xf32, #tpu.memory_space<vmem>>, vector<8x1024xf32>
    %1 = arith.truncf %0 : vector<8x1024xf32> to vector<8x1024xbf16>
    %c0_1 = arith.constant 0 : index
    %c0_2 = arith.constant 0 : index
    %2 = vector.load %arg2[%c0_1, %c0_2] : memref<1024x1024xbf16, #tpu.memory_space<vmem>>, vector<1024x1024xbf16>
    %cst = arith.constant dense<0.000000e+00> : vector<8x1024xf32>
    %3 = tpu.matmul %1, %2, %cst {dimension_numbers = #tpu.dot_dimension_numbers<[1], [0], [0], [1], [0, 0, 1, 1], [], []>} : vector<8x1024xbf16>, vector<1024x1024xbf16>, vector<8x1024xf32> -> vector<8x1024xf32>
    %c0_3 = arith.constant 0 : index
    %c0_4 = arith.constant 0 : index
    %4 = vector.load %arg3[%c0_3, %c0_4] : memref<1x1024xf32, #tpu.memory_space<vmem>>, vector<1x1024xf32>
    %5 = vector.broadcast %4 : vector<1x1024xf32> to vector<8x1024xf32>
    %6 = arith.addf %3, %5 : vector<8x1024xf32>
    %cst_5 = arith.constant 0.000000e+00 : f32
    %7 = vector.broadcast %cst_5 : f32 to vector<8x1024xf32>
    %8 = arith.maximumf %6, %7 : vector<8x1024xf32>
    %c0_6 = arith.constant 0 : index
    %c0_7 = arith.constant 0 : index
    %9 = vector.load %arg9[%c0_6, %c0_7] : memref<8x1024xf32, #tpu.memory_space<vmem>>, vector<8x1024xf32>
    tpu.vector_store %arg9[%c0_6, %c0_7], %8 {strides = array<i32>} : memref<8x1024xf32, #tpu.memory_space<vmem>>, vector<8x1024xf32>,
    %10 = arith.truncf %8 : vector<8x1024xf32> to vector<8x1024xbf16>
    %c0_8 = arith.constant 0 : index
    %c0_9 = arith.constant 0 : index
    %11 = vector.load %arg4[%c0_8, %c0_9] : memref<1024x128xbf16, #tpu.memory_space<vmem>>, vector<1024x128xbf16>
    %cst_10 = arith.constant dense<0.000000e+00> : vector<8x128xf32>
    %12 = tpu.matmul %10, %11, %cst_10 {dimension_numbers = #tpu.dot_dimension_numbers<[1], [0], [0], [1], [0, 0, 1, 1], [], []>} : vector<8x1024xbf16>, vector<1024x128xbf16>, vector<8x128xf32> -> vector<8x128xf32>
    %c0_11 = arith.constant 0 : index
    %c0_12 = arith.constant 0 : index
    %13 = vector.load %arg5[%c0_11, %c0_12] : memref<1x128xf32, #tpu.memory_space<vmem>>, vector<1x128xf32>
    %14 = vector.broadcast %13 : vector<1x128xf32> to vector<8x128xf32>
    %15 = arith.addf %12, %14 : vector<8x128xf32>
    %c0_13 = arith.constant 0 : index
    %c0_14 = arith.constant 0 : index
    %16 = vector.load %arg8[%c0_13, %c0_14] : memref<8x128xf32, #tpu.memory_space<vmem>>, vector<8x128xf32>
    tpu.vector_store %arg8[%c0_13, %c0_14], %15 {strides = array<i32>} : memref<8x128xf32, #tpu.memory_space<vmem>>, vector<8x128xf32>,
    %cst_15 = arith.constant 5.000000e-01 : f32
    %17 = vector.broadcast %cst_15 : f32 to vector<8x128xf32>
    %18 = arith.mulf %17, %15 : vector<8x128xf32>
    %19 = math.tanh %18 : vector<8x128xf32>
    %cst_16 = arith.constant 1.000000e+00 : f32
    %20 = vector.broadcast %cst_16 : f32 to vector<8x128xf32>
    %21 = arith.addf %19, %20 : vector<8x128xf32>
    %cst_17 = arith.constant 5.000000e-01 : f32
    %22 = vector.broadcast %cst_17 : f32 to vector<8x128xf32>
    %23 = arith.mulf %22, %21 : vector<8x128xf32>
    %c0_18 = arith.constant 0 : index
    %c0_19 = arith.constant 0 : index
    %24 = vector.load %arg6[%c0_18, %c0_19] : memref<8x128xf32, #tpu.memory_space<vmem>>, vector<8x128xf32>
    tpu.vector_store %arg6[%c0_18, %c0_19], %23 {strides = array<i32>} : memref<8x128xf32, #tpu.memory_space<vmem>>, vector<8x128xf32>,
    %25 = tpu.iota {dimensions = array<i32: 1>} : vector<8x128xi32>
    %c10_i32 = arith.constant 10 : i32
    %26 = vector.broadcast %c10_i32 : i32 to vector<8x128xi32>
    %27 = arith.cmpi slt, %25, %26 : vector<8x128xi32>
    %28 = math.exp %23 : vector<8x128xf32>
    %cst_20 = arith.constant 0.000000e+00 : f32
    %29 = vector.broadcast %cst_20 : f32 to vector<8x128xf32>
    %30 = arith.select %27, %28, %29 : vector<8x128xi1>, vector<8x128xf32>
    %cst_21 = arith.constant dense<0.000000e+00> : vector<8xf32>
    %31 = vector.multi_reduction <add>, %30, %cst_21 [1] : vector<8x128xf32> to vector<8xf32>
    %32 = vector.shape_cast %31 : vector<8xf32> to vector<8x1xf32>
    %33 = vector.broadcast %32 : vector<8x1xf32> to vector<8x128xf32>
    %34 = arith.divf %30, %33 : vector<8x128xf32>
    %c0_22 = arith.constant 0 : index
    %c0_23 = arith.constant 0 : index
    %35 = vector.load %arg7[%c0_22, %c0_23] : memref<8x128xf32, #tpu.memory_space<vmem>>, vector<8x128xf32>
    tpu.vector_store %arg7[%c0_22, %c0_23], %34 {strides = array<i32>} : memref<8x128xf32, #tpu.memory_space<vmem>>, vector<8x128xf32>,
    return
  }
  func.func @transform_0(%arg0: i32) -> (i32, i32) {
    %c0_i32 = arith.constant 0 : i32
    %c0_i32_0 = arith.constant 0 : i32
    return %arg0, %c0_i32 : i32, i32
  }
  func.func @transform_1(%arg0: i32) -> (i32, i32) {
    %c0_i32 = arith.constant 0 : i32
    %c0_i32_0 = arith.constant 0 : i32
    %c0_i32_1 = arith.constant 0 : i32
    return %c0_i32, %c0_i32_0 : i32, i32
  }
  func.func @transform_2(%arg0: i32) -> (i32, i32) {
    %c0_i32 = arith.constant 0 : i32
    %c0_i32_0 = arith.constant 0 : i32
    %c0_i32_1 = arith.constant 0 : i32
    return %c0_i32, %c0_i32_0 : i32, i32
  }
  func.func @transform_3(%arg0: i32) -> (i32, i32) {
    %c0_i32 = arith.constant 0 : i32
    %c0_i32_0 = arith.constant 0 : i32
    %c0_i32_1 = arith.constant 0 : i32
    return %c0_i32, %c0_i32_0 : i32, i32
  }
  func.func @transform_4(%arg0: i32) -> (i32, i32) {
    %c0_i32 = arith.constant 0 : i32
    %c0_i32_0 = arith.constant 0 : i32
    %c0_i32_1 = arith.constant 0 : i32
    return %c0_i32, %c0_i32_0 : i32, i32
  }
  func.func @transform_5(%arg0: i32) -> (i32, i32) {
    %c0_i32 = arith.constant 0 : i32
    %c0_i32_0 = arith.constant 0 : i32
    return %arg0, %c0_i32 : i32, i32
  }
  func.func @transform_6(%arg0: i32) -> (i32, i32) {
    %c0_i32 = arith.constant 0 : i32
    %c0_i32_0 = arith.constant 0 : i32
    return %arg0, %c0_i32 : i32, i32
  }
  func.func @transform_7(%arg0: i32) -> (i32, i32) {
    %c0_i32 = arith.constant 0 : i32
    %c0_i32_0 = arith.constant 0 : i32
    return %arg0, %c0_i32 : i32, i32
  }
  func.func @transform_8(%arg0: i32) -> (i32, i32) {
    %c0_i32 = arith.constant 0 : i32
    %c0_i32_0 = arith.constant 0 : i32
    return %arg0, %c0_i32 : i32, i32
  }
}

</mosaic_0001>

<bundles_post_ra>
// kernel: classifier_forward.1
= control target key start
LH: loop header
LB: loop body
LE: loop exit
PB: predicated region body
PF: predicated region fallthrough
CT: control target
= control target key end

     0   :  { %14 = vsyncpa [#allocation3], 0  ;;  %s5673_s0 = inlined_call_operand.vmem [shape: f32[8,1024], index: 0, kind: input, shape index: {}]   ;;  %s5674_s1 = inlined_call_operand.hbm [shape: bf16[1024,1024], index: 1, kind: input, shape index: {}]   ;;  %s5675_s2 = inlined_call_operand.hbm [shape: f32[1,1024], index: 2, kind: input, shape index: {}]   ;;  %s5676_s3 = inlined_call_operand.hbm [shape: bf16[1024,128], index: 3, kind: input, shape index: {}]   ;;  %s5677_s4 = inlined_call_operand.hbm [shape: f32[1,128], index: 4, kind: input, shape index: {}]   ;;  %s5678_s5 = inlined_call_operand.vmem [shape: f32[8,128], index: 5, kind: output, shape index: {0}]   ;;  %s5679_s6 = inlined_call_operand.vmem [shape: f32[8,128], index: 6, kind: output, shape index: {1}]   ;;  %s5680_s7 = inlined_call_operand.vmem [shape: f32[8,128], index: 7, kind: output, shape index: {2}]   ;;  %s5681_s8 = inlined_call_operand.vmem [shape: f32[8,1024], index: 8, kind: output, shape index: {3}]  }
   0x1   :  { %15 = vsyncpa [#allocation5], 0 }
   0x2   :  { %16 = vsyncpa [#allocation8], 0  ;;  %s5433_s27 = smov [#allocation4]   ;;  %s5434_s29 = smov [#allocation2]  }
   0x3   :  { %s37_s28 = sshll.u32 %s5433_s27, 4  ;;  %s24_s30 = sshll.u32 %s5434_s29, 4  ;;  %s38_s28 = int_to_ptr.vmem [resolvable:$true] %s37_s28  ;;  %s25_s30 = int_to_ptr.vmem [resolvable:$true] %s24_s30 }
   0x4   :  { %s5355_s9 = scalar_lea.vmem %s38_s28, 128  ;;  %p5360_p1 = scmp.lt.s32.totalorder %s38_s28, %s38_s28 }
   0x5   :  { %p5356_p0 = scmp.ne.s32.totalorder %s38_s28, %s5355_s9  ;;  %p5361_p2 = scmp.lt.s32.totalorder %s5355_s9, %s5355_s9 }
   0x7   :  { %p5362_p3 = por %p5361_p2, %p5360_p1 }
   0x9   :  { %p5363_p4 = pnand %p5362_p3, %p5356_p0 }
   0xb   :  { %5366 = shalt.err (!%p5363_p4)
}
   0xc   :  { %40 = dma.hbm_to_vmem [thread:$0]  %s5675_s2, 128, %s38_s28, [#allocation5]  }
   0xd   :  { %s5375_s12 = scalar_lea.vmem %s25_s30, 65536  ;;  %p5380_p6 = scmp.lt.s32.totalorder %s25_s30, %s25_s30 }
   0xe   :  { %p5376_p5 = scmp.ne.s32.totalorder %s25_s30, %s5375_s12  ;;  %p5381_p7 = scmp.lt.s32.totalorder %s5375_s12, %s5375_s12 }
  0x10   :  { %p5382_p8 = por %p5381_p7, %p5380_p6 }
  0x12   :  { %p5383_p9 = pnand %p5382_p8, %p5376_p5 }
  0x14   :  { %5386 = shalt.err (!%p5383_p9)
}
  0x15   :  { %s5435_s13 = smov 512   ;;  %s5436_s14 = smov 32  }
  0x16   :  { %30 = dma.hbm_to_vmem [thread:$0]  %s5674_s1, 65536, %s25_s30, [#allocation3], %s5435_s13, %s5435_s13, %s5436_s14  }
  0x17   :  { %s5437_s17 = smov [#allocation6]  }
  0x18   :  { %s46_s18 = sshll.u32 %s5437_s17, 4  ;;  %s47_s18 = int_to_ptr.vmem [resolvable:$true] %s46_s18 }
  0x19   :  { %s5395_s19 = scalar_lea.vmem %s47_s18, 8192  ;;  %p5400_p11 = scmp.lt.s32.totalorder %s47_s18, %s47_s18 }
  0x1a   :  { %p5396_p10 = scmp.ne.s32.totalorder %s47_s18, %s5395_s19  ;;  %p5401_p12 = scmp.lt.s32.totalorder %s5395_s19, %s5395_s19 }
  0x1c   :  { %p5402_p13 = por %p5401_p12, %p5400_p11 }
  0x1e   :  { %p5403_p0 = pnand %p5402_p13, %p5396_p10 }
  0x20   :  { %5406 = shalt.err (!%p5403_p0)
}
  0x21   :  { %s5438_s2 = smov 64   ;;  %s5439_s20 = smov 4  }
  0x22   :  { %52 = dma.hbm_to_vmem [thread:$0]  %s5676_s3, 8192, %s47_s18, [#allocation5], %s5438_s2, %s5438_s2, %s5439_s20  }
  0x23   :  { %s5440_s23 = smov [#allocation7]  }
  0x24   :  { %s59_s24 = sshll.u32 %s5440_s23, 4  ;;  %s60_s24 = int_to_ptr.vmem [resolvable:$true] %s59_s24 }
  0x25   :  { %s5415_s1 = scalar_lea.vmem %s60_s24, 16  ;;  %s5419_s25 = scalar_lea.vmem %s60_s24, 32 }
  0x26   :  { %p5416_p1 = scmp.ne.s32.totalorder %s60_s24, %s5415_s1  ;;  %p5420_p2 = scmp.lt.s32.totalorder %s60_s24, %s60_s24 }
  0x27   :  { %p5421_p3 = scmp.lt.s32.totalorder %s5419_s25, %s5415_s1 }
  0x29   :  { %p5422_p4 = por %p5421_p3, %p5420_p2 }
  0x2b   :  { %p5423_p5 = pnand %p5422_p4, %p5416_p1 }
  0x2d   :  { %5426 = shalt.err (!%p5423_p5)
}
  0x2e   :  { %62 = dma.hbm_to_vmem [thread:$0]  %s5677_s4, 16, %s60_s24, [#allocation8]  }
  0x2f   :  { %5427 = dma.done.wait [#allocation3], 65536  }
  0x30   :  { %5428 = vsyncadd [#allocation3], 4294901760 }
  0x31   :  { %5429 = dma.done.wait [#allocation5], 8320  }
  0x32   :  { %5430 = vsyncadd [#allocation5], 4294958976 }
  0x33   :  { %5431 = dma.done.wait [#allocation8], 16  }
  0x34   :  { %5432 = vsyncadd [#allocation8], 4294967280  ;;  %v148_v0 = vld [vmem:[#allocation2 + $0x1c0] sm:$0xff]  ;;  %v77_v53 = vld [vmem:[%s5673_s0 + $0x8] sm:$0xff] }
  0x35   :  { %v152_v1 = vld [vmem:[#allocation2 + $0x1e0] sm:$0xff]  ;;  %v79_v54 = vld [vmem:[%s5673_s0 + $0x18] sm:$0xff]  ;;  %v5504_v58 = vpack.c.bf16 %v77_v53, %v77_v53 }
  0x36   :  { %v276_v2 = vld [vmem:[#allocation2 + $0x5c0] sm:$0xff]  ;;  %v4658_v3 = vcombine.high %v148_v0, %v152_v1  ;;  %v4657_v5 = vcombine.low %v148_v0, %v152_v1  ;;  %v5506_v59 = vpack.c.bf16 %v79_v54, %v79_v54 }
  0x37   :  { %v280_v4 = vld [vmem:[#allocation2 + $0x5e0] sm:$0xff]  ;;  %3238 = vmatprep.mubr.bf16.mxu0 %v5504_v58 }
  0x38   :  { %v140_v6 = vld [vmem:[#allocation2 + $0x180] sm:$0xff]  ;;  %v4786_v8 = vcombine.high %v276_v2, %v280_v4  ;;  %v4785_v9 = vcombine.low %v276_v2, %v280_v4  ;;  %3206 = vmatprep.subr.bf16.mxu0 %v4658_v3  ;;  %3279 = vmatprep.mubr.bf16.mxu1 %v5506_v59 }
  0x39   :  { %v144_v7 = vld [vmem:[#allocation2 + $0x1a0] sm:$0xff]  ;;  %3207 = vmatpush1.bf16.msra.mxu0 %v4657_v5 }
  0x3a   :  { %v4650_v10 = vcombine.high %v140_v6, %v144_v7  ;;  %v268_v11 = vld [vmem:[#allocation2 + $0x580] sm:$0xff]  ;;  %3247 = vmatprep.subr.bf16.mxu1 %v4786_v8  ;;  %v4649_v18 = vcombine.low %v140_v6, %v144_v7 }
  0x3b   :  { %v272_v12 = vld [vmem:[#allocation2 + $0x5a0] sm:$0xff]  ;;  %3248 = vmatpush1.bf16.msra.mxu1 %v4785_v9 }
  0x3c   :  { %v132_v13 = vld [vmem:[#allocation2 + $0x140] sm:$0xff]  ;;  %v4778_v14 = vcombine.high %v268_v11, %v272_v12  ;;  %3208 = vmatprep.subr.bf16.mxu0 %v4650_v10  ;;  %v4777_v19 = vcombine.low %v268_v11, %v272_v12 }
  0x3d   :  { %v136_v15 = vld [vmem:[#allocation2 + $0x160] sm:$0xff]  ;;  %3209 = vmatpush1.bf16.msra.mxu0 %v4649_v18 }
  0x3e   :  { %v260_v16 = vld [vmem:[#allocation2 + $0x540] sm:$0xff]  ;;  %v4642_v20 = vcombine.high %v132_v13, %v136_v15  ;;  %3249 = vmatprep.subr.bf16.mxu1 %v4778_v14  ;;  %v4641_v26 = vcombine.low %v132_v13, %v136_v15 }
  0x3f   :  { %v264_v17 = vld [vmem:[#allocation2 + $0x560] sm:$0xff]  ;;  %3250 = vmatpush1.bf16.msra.mxu1 %v4777_v19 }
  0x40   :  { %v4770_v21 = vcombine.high %v260_v16, %v264_v17  ;;  %v124_v22 = vld [vmem:[#allocation2 + $0x100] sm:$0xff]  ;;  %3210 = vmatprep.subr.bf16.mxu0 %v4642_v20  ;;  %v4769_v27 = vcombine.low %v260_v16, %v264_v17 }
  0x41   :  { %v128_v23 = vld [vmem:[#allocation2 + $0x120] sm:$0xff]  ;;  %3211 = vmatpush1.bf16.msra.mxu0 %v4641_v26 }
  0x42   :  { %v252_v24 = vld [vmem:[#allocation2 + $0x500] sm:$0xff]  ;;  %v4634_v28 = vcombine.high %v124_v22, %v128_v23  ;;  %3251 = vmatprep.subr.bf16.mxu1 %v4770_v21  ;;  %v4633_v34 = vcombine.low %v124_v22, %v128_v23 }
  0x43   :  { %v256_v25 = vld [vmem:[#allocation2 + $0x520] sm:$0xff]  ;;  %3252 = vmatpush1.bf16.msra.mxu1 %v4769_v27 }
  0x44   :  { %v4762_v29 = vcombine.high %v252_v24, %v256_v25  ;;  %v116_v30 = vld [vmem:[#allocation2 + $0xc0] sm:$0xff]  ;;  %3212 = vmatprep.subr.bf16.mxu0 %v4634_v28  ;;  %v4761_v35 = vcombine.low %v252_v24, %v256_v25 }
  0x45   :  { %v120_v31 = vld [vmem:[#allocation2 + $0xe0] sm:$0xff]  ;;  %3213 = vmatpush1.bf16.msra.mxu0 %v4633_v34 }
  0x46   :  { %v244_v32 = vld [vmem:[#allocation2 + $0x4c0] sm:$0xff]  ;;  %v4626_v36 = vcombine.high %v116_v30, %v120_v31  ;;  %3253 = vmatprep.subr.bf16.mxu1 %v4762_v29  ;;  %v4625_v42 = vcombine.low %v116_v30, %v120_v31 }
  0x47   :  { %v248_v33 = vld [vmem:[#allocation2 + $0x4e0] sm:$0xff]  ;;  %3254 = vmatpush1.bf16.msra.mxu1 %v4761_v35 }
  0x48   :  { %v4754_v37 = vcombine.high %v244_v32, %v248_v33  ;;  %v108_v38 = vld [vmem:[#allocation2 + $0x80] sm:$0xff]  ;;  %3214 = vmatprep.subr.bf16.mxu0 %v4626_v36  ;;  %v4753_v43 = vcombine.low %v244_v32, %v248_v33 }
  0x49   :  { %v112_v39 = vld [vmem:[#allocation2 + $0xa0] sm:$0xff]  ;;  %3215 = vmatpush1.bf16.msra.mxu0 %v4625_v42 }
  0x4a   :  { %v236_v40 = vld [vmem:[#allocation2 + $0x480] sm:$0xff]  ;;  %v4618_v44 = vcombine.high %v108_v38, %v112_v39  ;;  %3255 = vmatprep.subr.bf16.mxu1 %v4754_v37  ;;  %v4617_v50 = vcombine.low %v108_v38, %v112_v39 }
  0x4b   :  { %v240_v41 = vld [vmem:[#allocation2 + $0x4a0] sm:$0xff]  ;;  %3256 = vmatpush1.bf16.msra.mxu1 %v4753_v43 }
  0x4c   :  { %v4746_v45 = vcombine.high %v236_v40, %v240_v41  ;;  %v100_v46 = vld [vmem:[#allocation2 + $0x40] sm:$0xff]  ;;  %3216 = vmatprep.subr.bf16.mxu0 %v4618_v44  ;;  %v4745_v51 = vcombine.low %v236_v40, %v240_v41 }
  0x4d   :  { %v104_v47 = vld [vmem:[#allocation2 + $0x60] sm:$0xff]  ;;  %3217 = vmatpush1.bf16.msra.mxu0 %v4617_v50 }
  0x4e   :  { %v228_v48 = vld [vmem:[#allocation2 + $0x440] sm:$0xff]  ;;  %v4610_v52 = vcombine.high %v100_v46, %v104_v47  ;;  %3257 = vmatprep.subr.bf16.mxu1 %v4746_v45  ;;  %v4609_v62 = vcombine.low %v100_v46, %v104_v47 }
  0x4f   :  { %v232_v49 = vld [vmem:[#allocation2 + $0x460] sm:$0xff]  ;;  %3258 = vmatpush1.bf16.msra.mxu1 %v4745_v51 }
  0x50   :  { %v4738_v55 = vcombine.high %v228_v48, %v232_v49  ;;  %v92_v56 = vld [vmem:[#allocation2] sm:$0xff]  ;;  %3218 = vmatprep.subr.bf16.mxu0 %v4610_v52  ;;  %v4737_v63 = vcombine.low %v228_v48, %v232_v49 }
  0x51   :  { %v96_v57 = vld [vmem:[#allocation2 + $0x20] sm:$0xff]  ;;  %3219 = vmatpush1.bf16.msra.mxu0 %v4609_v62 }
  0x52   :  { %v220_v60 = vld [vmem:[#allocation2 + $0x400] sm:$0xff]  ;;  %v4602_v0 = vcombine.high %v92_v56, %v96_v57  ;;  %3259 = vmatprep.subr.bf16.mxu1 %v4738_v55  ;;  %v4601_v6 = vcombine.low %v92_v56, %v96_v57 }
  0x53   :  { %v224_v61 = vld [vmem:[#allocation2 + $0x420] sm:$0xff]  ;;  %3260 = vmatpush1.bf16.msra.mxu1 %v4737_v63 }
  0x54   :  { %v4730_v1 = vcombine.high %v220_v60, %v224_v61  ;;  %v212_v2 = vld [vmem:[#allocation2 + $0x3c0] sm:$0xff]  ;;  %3220 = vmatprep.subr.bf16.mxu0 %v4602_v0  ;;  %v4729_v7 = vcombine.low %v220_v60, %v224_v61 }
  0x55   :  { %v216_v3 = vld [vmem:[#allocation2 + $0x3e0] sm:$0xff]  ;;  %3221 = vmatpush1.bf16.msra.mxu0 %v4601_v6 }
  0x56   :  { %v340_v4 = vld [vmem:[#allocation2 + $0x7c0] sm:$0xff]  ;;  %v4722_v8 = vcombine.high %v212_v2, %v216_v3  ;;  %3261 = vmatprep.subr.bf16.mxu1 %v4730_v1  ;;  %v4721_v14 = vcombine.low %v212_v2, %v216_v3 }
  0x57   :  { %v344_v5 = vld [vmem:[#allocation2 + $0x7e0] sm:$0xff]  ;;  %3262 = vmatpush1.bf16.msra.mxu1 %v4729_v7 }
  0x58   :  { %v4850_v9 = vcombine.high %v340_v4, %v344_v5  ;;  %v204_v10 = vld [vmem:[#allocation2 + $0x380] sm:$0xff]  ;;  %3222 = vmatprep.subr.bf16.mxu0 %v4722_v8  ;;  %v4849_v15 = vcombine.low %v340_v4, %v344_v5 }
  0x59   :  { %v208_v11 = vld [vmem:[#allocation2 + $0x3a0] sm:$0xff]  ;;  %3223 = vmatpush2.bf16.msra.mxu0 %v4721_v14 }
  0x5a   :  { %v332_v12 = vld [vmem:[#allocation2 + $0x780] sm:$0xff]  ;;  %v4714_v16 = vcombine.high %v204_v10, %v208_v11  ;;  %3263 = vmatprep.subr.bf16.mxu1 %v4850_v9  ;;  %v4713_v22 = vcombine.low %v204_v10, %v208_v11  ;;  %v78_v11 = vld [vmem:[%s5673_s0 + $0x10] sm:$0xff] }
  0x5b   :  { %v336_v13 = vld [vmem:[#allocation2 + $0x7a0] sm:$0xff]  ;;  %3264 = vmatpush2.bf16.msra.mxu1 %v4849_v15 }
  0x5c   :  { %v4842_v17 = vcombine.high %v332_v12, %v336_v13  ;;  %v196_v18 = vld [vmem:[#allocation2 + $0x340] sm:$0xff]  ;;  %3224 = vmatprep.subr.bf16.mxu0 %v4714_v16  ;;  %v4841_v23 = vcombine.low %v332_v12, %v336_v13 }
  0x5d   :  { %v200_v19 = vld [vmem:[#allocation2 + $0x360] sm:$0xff]  ;;  %3225 = vmatpush2.bf16.msra.mxu0 %v4713_v22  ;;  %v83_v22 = vld [vmem:[%s5673_s0 + $0x38] sm:$0xff] }
  0x5e   :  { %v324_v20 = vld [vmem:[#allocation2 + $0x740] sm:$0xff]  ;;  %v4706_v24 = vcombine.high %v196_v18, %v200_v19  ;;  %3265 = vmatprep.subr.bf16.mxu1 %v4842_v17  ;;  %v4705_v30 = vcombine.low %v196_v18, %v200_v19  ;;  %v81_v19 = vld [vmem:[%s5673_s0 + $0x28] sm:$0xff] }
  0x5f   :  { %v328_v21 = vld [vmem:[#allocation2 + $0x760] sm:$0xff]  ;;  %3266 = vmatpush2.bf16.msra.mxu1 %v4841_v23 }
  0x60   :  { %v4834_v25 = vcombine.high %v324_v20, %v328_v21  ;;  %v188_v26 = vld [vmem:[#allocation2 + $0x300] sm:$0xff]  ;;  %3226 = vmatprep.subr.bf16.mxu0 %v4706_v24  ;;  %v4833_v31 = vcombine.low %v324_v20, %v328_v21  ;;  %v5521_v20 = vpack.c.bf16 %v78_v11, %v78_v11 }
  0x61   :  { %v192_v27 = vld [vmem:[#allocation2 + $0x320] sm:$0xff]  ;;  %3227 = vmatpush2.bf16.msra.mxu0 %v4705_v30 }
  0x62   :  { %v316_v28 = vld [vmem:[#allocation2 + $0x700] sm:$0xff]  ;;  %v4698_v32 = vcombine.high %v188_v26, %v192_v27  ;;  %3267 = vmatprep.subr.bf16.mxu1 %v4834_v25  ;;  %v4697_v38 = vcombine.low %v188_v26, %v192_v27 }
  0x63   :  { %v320_v29 = vld [vmem:[#allocation2 + $0x720] sm:$0xff]  ;;  %3268 = vmatpush2.bf16.msra.mxu1 %v4833_v31  ;;  %v5529_v31 = vpack.c.bf16 %v83_v22, %v83_v22 }
  0x64   :  { %v4826_v33 = vcombine.high %v316_v28, %v320_v29  ;;  %v180_v34 = vld [vmem:[#allocation2 + $0x2c0] sm:$0xff]  ;;  %3228 = vmatprep.subr.bf16.mxu0 %v4698_v32  ;;  %v4825_v39 = vcombine.low %v316_v28, %v320_v29  ;;  %v5526_v28 = vpack.c.bf16 %v81_v19, %v81_v19 }
  0x65   :  { %v184_v35 = vld [vmem:[#allocation2 + $0x2e0] sm:$0xff]  ;;  %3229 = vmatpush2.bf16.msra.mxu0 %v4697_v38 }
  0x66   :  { %v308_v36 = vld [vmem:[#allocation2 + $0x6c0] sm:$0xff]  ;;  %v4690_v40 = vcombine.high %v180_v34, %v184_v35  ;;  %3269 = vmatprep.subr.bf16.mxu1 %v4826_v33  ;;  %v4689_v46 = vcombine.low %v180_v34, %v184_v35 }
  0x67   :  { %v312_v37 = vld [vmem:[#allocation2 + $0x6e0] sm:$0xff]  ;;  %3270 = vmatpush2.bf16.msra.mxu1 %v4825_v39 }
  0x68   :  { %v4818_v41 = vcombine.high %v308_v36, %v312_v37  ;;  %v172_v42 = vld [vmem:[#allocation2 + $0x280] sm:$0xff]  ;;  %3230 = vmatprep.subr.bf16.mxu0 %v4690_v40  ;;  %v4817_v47 = vcombine.low %v308_v36, %v312_v37 }
  0x69   :  { %v176_v43 = vld [vmem:[#allocation2 + $0x2a0] sm:$0xff]  ;;  %3231 = vmatpush2.bf16.msra.mxu0 %v4689_v46 }
  0x6a   :  { %v300_v44 = vld [vmem:[#allocation2 + $0x680] sm:$0xff]  ;;  %v4682_v48 = vcombine.high %v172_v42, %v176_v43  ;;  %3271 = vmatprep.subr.bf16.mxu1 %v4818_v41  ;;  %v4681_v54 = vcombine.low %v172_v42, %v176_v43 }
  0x6b   :  { %v304_v45 = vld [vmem:[#allocation2 + $0x6a0] sm:$0xff]  ;;  %3272 = vmatpush2.bf16.msra.mxu1 %v4817_v47 }
  0x6c   :  { %v4810_v49 = vcombine.high %v300_v44, %v304_v45  ;;  %v164_v50 = vld [vmem:[#allocation2 + $0x240] sm:$0xff]  ;;  %3232 = vmatprep.subr.bf16.mxu0 %v4682_v48  ;;  %v4809_v55 = vcombine.low %v300_v44, %v304_v45 }
  0x6d   :  { %v168_v51 = vld [vmem:[#allocation2 + $0x260] sm:$0xff]  ;;  %3233 = vmatpush2.bf16.msra.mxu0 %v4681_v54 }
  0x6e   :  { %v292_v52 = vld [vmem:[#allocation2 + $0x640] sm:$0xff]  ;;  %v4674_v56 = vcombine.high %v164_v50, %v168_v51  ;;  %3273 = vmatprep.subr.bf16.mxu1 %v4810_v49  ;;  %v4673_v0 = vcombine.low %v164_v50, %v168_v51 }
  0x6f   :  { %v296_v53 = vld [vmem:[#allocation2 + $0x660] sm:$0xff]  ;;  %3274 = vmatpush2.bf16.msra.mxu1 %v4809_v55 }
  0x70   :  { %v4802_v57 = vcombine.high %v292_v52, %v296_v53  ;;  %v156_v60 = vld [vmem:[#allocation2 + $0x200] sm:$0xff]  ;;  %3234 = vmatprep.subr.bf16.mxu0 %v4674_v56  ;;  %v4801_v1 = vcombine.low %v292_v52, %v296_v53 }
  0x71   :  { %v160_v61 = vld [vmem:[#allocation2 + $0x220] sm:$0xff]  ;;  %3235 = vmatpush2.bf16.msra.mxu0 %v4673_v0 }
  0x72   :  { %v284_v62 = vld [vmem:[#allocation2 + $0x600] sm:$0xff]  ;;  %v4666_v2 = vcombine.high %v156_v60, %v160_v61  ;;  %3275 = vmatprep.subr.bf16.mxu1 %v4802_v57  ;;  %v4665_v8 = vcombine.low %v156_v60, %v160_v61 }
  0x73   :  { %v288_v63 = vld [vmem:[#allocation2 + $0x620] sm:$0xff]  ;;  %3276 = vmatpush2.bf16.msra.mxu1 %v4801_v1 }
  0x74   :  { %v4794_v3 = vcombine.high %v284_v62, %v288_v63  ;;  %v404_v4 = vld [vmem:[#allocation2 + $0x9c0] sm:$0xff]  ;;  %3236 = vmatprep.subr.bf16.mxu0 %v4666_v2  ;;  %v4793_v10 = vcombine.low %v284_v62, %v288_v63 }
  0x75   :  { %v408_v5 = vld [vmem:[#allocation2 + $0x9e0] sm:$0xff]  ;;  %3237 = vmatpush2.bf16.msra.mxu0 %v4665_v8 }
  0x76   :  { %v532_v6 = vld [vmem:[#allocation2 + $0xdc0] sm:$0xff]  ;;  %v4914_v12 = vcombine.high %v404_v4, %v408_v5  ;;  %3277 = vmatprep.subr.bf16.mxu1 %v4794_v3  ;;  %v4913_v21 = vcombine.low %v404_v4, %v408_v5 }
  0x77   :  { %v536_v7 = vld [vmem:[#allocation2 + $0xde0] sm:$0xff]  ;;  %3278 = vmatpush2.bf16.msra.mxu1 %v4793_v10 }
  0x78   :  { %v76_v9 = vld [vmem:[%s5673_s0] sm:$0xff]  ;;  %v5042_v13 = vcombine.high %v532_v6, %v536_v7  ;;  %3288 = vmatprep.subr.bf16.mxu0 %v4914_v12  ;;  %v5041_v23 = vcombine.low %v532_v6, %v536_v7 }
  0x79   :  { %v396_v14 = vld [vmem:[#allocation2 + $0x980] sm:$0xff]  ;;  %v5516_v16 = vpack.c.bf16 %v76_v9, %v76_v9 }
  0x7a   :  { %v400_v15 = vld [vmem:[#allocation2 + $0x9a0] sm:$0xff]  ;;  %3329 = vmatprep.subr.bf16.mxu1 %v5042_v13  ;;  %3280 = vmatmul.mubr.bf16.vlgmr.msra.gmra.mxu1 %v5521_v20 }
  0x7b   :  { %v524_v17 = vld [vmem:[#allocation2 + $0xd80] sm:$0xff]  ;;  %v4906_v24 = vcombine.high %v396_v14, %v400_v15  ;;  %3239 = vmatmul.mubr.bf16.vlgmr.msra.gmra.mxu0 %v5516_v16  ;;  %v4905_v32 = vcombine.low %v396_v14, %v400_v15  ;;  %3330 = vmatpush1.bf16.msra.mxu1 %v5041_v23 }
  0x7c   :  { %v528_v18 = vld [vmem:[#allocation2 + $0xda0] sm:$0xff]  ;;  %3289 = vmatpush1.bf16.msra.mxu0 %v4913_v21  ;;  %3320 = vmatprep.mubr.bf16.mxu0 %v5526_v28 }
  0x7d   :  { %v5034_v25 = vcombine.high %v524_v17, %v528_v18  ;;  %v388_v26 = vld [vmem:[#allocation2 + $0x940] sm:$0xff]  ;;  %3290 = vmatprep.subr.bf16.mxu0 %v4906_v24  ;;  %v5033_v33 = vcombine.low %v524_v17, %v528_v18  ;;  %3361 = vmatprep.mubr.bf16.mxu1 %v5529_v31 }
  0x7e   :  { %v392_v27 = vld [vmem:[#allocation2 + $0x960] sm:$0xff] }
  0x7f   :  { %v516_v29 = vld [vmem:[#allocation2 + $0xd40] sm:$0xff]  ;;  %v4898_v34 = vcombine.high %v388_v26, %v392_v27  ;;  %3331 = vmatprep.subr.bf16.mxu1 %v5034_v25  ;;  %v4897_v40 = vcombine.low %v388_v26, %v392_v27 }
  0x80   :  { %v520_v30 = vld [vmem:[#allocation2 + $0xd60] sm:$0xff]  ;;  %3291 = vmatpush1.bf16.msra.mxu0 %v4905_v32  ;;  %3332 = vmatpush1.bf16.msra.mxu1 %v5033_v33 }
  0x81   :  { %v380_v35 = vld [vmem:[#allocation2 + $0x900] sm:$0xff]  ;;  %v5026_v38 = vcombine.high %v516_v29, %v520_v30  ;;  %3292 = vmatprep.subr.bf16.mxu0 %v4898_v34  ;;  %v5025_v41 = vcombine.low %v516_v29, %v520_v30 }
  0x82   :  { %v384_v36 = vld [vmem:[#allocation2 + $0x920] sm:$0xff] }
  0x83   :  { %v508_v37 = vld [vmem:[#allocation2 + $0xd00] sm:$0xff]  ;;  %v4890_v42 = vcombine.high %v380_v35, %v384_v36  ;;  %3333 = vmatprep.subr.bf16.mxu1 %v5026_v38  ;;  %v4889_v48 = vcombine.low %v380_v35, %v384_v36 }
  0x84   :  { %v512_v39 = vld [vmem:[#allocation2 + $0xd20] sm:$0xff]  ;;  %3293 = vmatpush1.bf16.msra.mxu0 %v4897_v40  ;;  %3334 = vmatpush1.bf16.msra.mxu1 %v5025_v41 }
  0x85   :  { %v372_v43 = vld [vmem:[#allocation2 + $0x8c0] sm:$0xff]  ;;  %v5018_v46 = vcombine.high %v508_v37, %v512_v39  ;;  %3294 = vmatprep.subr.bf16.mxu0 %v4890_v42  ;;  %v5017_v49 = vcombine.low %v508_v37, %v512_v39 }
  0x86   :  { %v376_v44 = vld [vmem:[#allocation2 + $0x8e0] sm:$0xff] }
  0x87   :  { %v500_v45 = vld [vmem:[#allocation2 + $0xcc0] sm:$0xff]  ;;  %v4882_v50 = vcombine.high %v372_v43, %v376_v44  ;;  %3335 = vmatprep.subr.bf16.mxu1 %v5018_v46  ;;  %v4881_v56 = vcombine.low %v372_v43, %v376_v44 }
  0x88   :  { %v504_v47 = vld [vmem:[#allocation2 + $0xce0] sm:$0xff]  ;;  %3295 = vmatpush1.bf16.msra.mxu0 %v4889_v48  ;;  %3336 = vmatpush1.bf16.msra.mxu1 %v5017_v49 }
  0x89   :  { %v364_v51 = vld [vmem:[#allocation2 + $0x880] sm:$0xff]  ;;  %v5010_v54 = vcombine.high %v500_v45, %v504_v47  ;;  %3296 = vmatprep.subr.bf16.mxu0 %v4882_v50  ;;  %v5009_v57 = vcombine.low %v500_v45, %v504_v47 }
  0x8a   :  { %v368_v52 = vld [vmem:[#allocation2 + $0x8a0] sm:$0xff] }
  0x8b   :  { %v492_v53 = vld [vmem:[#allocation2 + $0xc80] sm:$0xff]  ;;  %v4874_v60 = vcombine.high %v364_v51, %v368_v52  ;;  %3337 = vmatprep.subr.bf16.mxu1 %v5010_v54  ;;  %v4873_v2 = vcombine.low %v364_v51, %v368_v52 }
  0x8c   :  { %v496_v55 = vld [vmem:[#allocation2 + $0xca0] sm:$0xff]  ;;  %3297 = vmatpush1.bf16.msra.mxu0 %v4881_v56  ;;  %3338 = vmatpush1.bf16.msra.mxu1 %v5009_v57 }
  0x8d   :  { %v356_v61 = vld [vmem:[#allocation2 + $0x840] sm:$0xff]  ;;  %v5002_v0 = vcombine.high %v492_v53, %v496_v55  ;;  %3298 = vmatprep.subr.bf16.mxu0 %v4874_v60  ;;  %v5001_v3 = vcombine.low %v492_v53, %v496_v55 }
  0x8e   :  { %v360_v62 = vld [vmem:[#allocation2 + $0x860] sm:$0xff] }
  0x8f   :  { %v484_v63 = vld [vmem:[#allocation2 + $0xc40] sm:$0xff]  ;;  %v4866_v4 = vcombine.high %v356_v61, %v360_v62  ;;  %3339 = vmatprep.subr.bf16.mxu1 %v5002_v0  ;;  %v4865_v10 = vcombine.low %v356_v61, %v360_v62 }
  0x90   :  { %v488_v1 = vld [vmem:[#allocation2 + $0xc60] sm:$0xff]  ;;  %3299 = vmatpush1.bf16.msra.mxu0 %v4873_v2  ;;  %3340 = vmatpush1.bf16.msra.mxu1 %v5001_v3 }
  0x91   :  { %v348_v5 = vld [vmem:[#allocation2 + $0x800] sm:$0xff]  ;;  %v4994_v8 = vcombine.high %v484_v63, %v488_v1  ;;  %3300 = vmatprep.subr.bf16.mxu0 %v4866_v4  ;;  %v4993_v11 = vcombine.low %v484_v63, %v488_v1 }
  0x92   :  { %v352_v6 = vld [vmem:[#allocation2 + $0x820] sm:$0xff] }
  0x93   :  { %v476_v7 = vld [vmem:[#allocation2 + $0xc00] sm:$0xff]  ;;  %v4858_v12 = vcombine.high %v348_v5, %v352_v6  ;;  %3341 = vmatprep.subr.bf16.mxu1 %v4994_v8  ;;  %v4857_v19 = vcombine.low %v348_v5, %v352_v6 }
  0x94   :  { %v480_v9 = vld [vmem:[#allocation2 + $0xc20] sm:$0xff]  ;;  %3301 = vmatpush1.bf16.msra.mxu0 %v4865_v10  ;;  %3342 = vmatpush1.bf16.msra.mxu1 %v4993_v11 }
  0x95   :  { %v468_v13 = vld [vmem:[#allocation2 + $0xbc0] sm:$0xff]  ;;  %v4986_v17 = vcombine.high %v476_v7, %v480_v9  ;;  %3302 = vmatprep.subr.bf16.mxu0 %v4858_v12  ;;  %v4985_v21 = vcombine.low %v476_v7, %v480_v9 }
  0x96   :  { %v472_v14 = vld [vmem:[#allocation2 + $0xbe0] sm:$0xff] }
  0x97   :  { %v596_v15 = vld [vmem:[#allocation2 + $0xfc0] sm:$0xff]  ;;  %v4978_v22 = vcombine.high %v468_v13, %v472_v14  ;;  %3343 = vmatprep.subr.bf16.mxu1 %v4986_v17  ;;  %v4977_v29 = vcombine.low %v468_v13, %v472_v14 }
  0x98   :  { %v600_v18 = vld [vmem:[#allocation2 + $0xfe0] sm:$0xff]  ;;  %3303 = vmatpush1.bf16.msra.mxu0 %v4857_v19  ;;  %3344 = vmatpush1.bf16.msra.mxu1 %v4985_v21  ;;  %v149_v21 = vld [vmem:[#allocation2 + $0x1c8] sm:$0xff] }
  0x99   :  { %v460_v23 = vld [vmem:[#allocation2 + $0xb80] sm:$0xff]  ;;  %v5106_v26 = vcombine.high %v596_v15, %v600_v18  ;;  %3304 = vmatprep.subr.bf16.mxu0 %v4978_v22  ;;  %v5105_v30 = vcombine.low %v596_v15, %v600_v18  ;;  %v153_v22 = vld [vmem:[#allocation2 + $0x1e8] sm:$0xff] }
  0x9a   :  { %v464_v24 = vld [vmem:[#allocation2 + $0xba0] sm:$0xff] }
  0x9b   :  { %v588_v25 = vld [vmem:[#allocation2 + $0xf80] sm:$0xff]  ;;  %v4970_v32 = vcombine.high %v460_v23, %v464_v24  ;;  %3345 = vmatprep.subr.bf16.mxu1 %v5106_v26  ;;  %v4969_v38 = vcombine.low %v460_v23, %v464_v24  ;;  %v277_v23 = vld [vmem:[#allocation2 + $0x5c8] sm:$0xff] }
  0x9c   :  { %v592_v27 = vld [vmem:[#allocation2 + $0xfa0] sm:$0xff]  ;;  %3305 = vmatpush2.bf16.msra.mxu0 %v4977_v29  ;;  %3346 = vmatpush2.bf16.msra.mxu1 %v5105_v30  ;;  %v281_v26 = vld [vmem:[#allocation2 + $0x5e8] sm:$0xff] }
  0x9d   :  { %v452_v33 = vld [vmem:[#allocation2 + $0xb40] sm:$0xff]  ;;  %v5098_v36 = vcombine.high %v588_v25, %v592_v27  ;;  %3306 = vmatprep.subr.bf16.mxu0 %v4970_v32  ;;  %v5097_v39 = vcombine.low %v588_v25, %v592_v27  ;;  %v82_v27 = vld [vmem:[%s5673_s0 + $0x30] sm:$0xff]  ;;  %v4660_v32 = vcombine.high %v149_v21, %v153_v22 }
  0x9e   :  { %v456_v34 = vld [vmem:[#allocation2 + $0xb60] sm:$0xff] }
  0x9f   :  { %v580_v35 = vld [vmem:[#allocation2 + $0xf40] sm:$0xff]  ;;  %v4962_v40 = vcombine.high %v452_v33, %v456_v34  ;;  %3347 = vmatprep.subr.bf16.mxu1 %v5098_v36  ;;  %v4961_v46 = vcombine.low %v452_v33, %v456_v34  ;;  %v141_v33 = vld [vmem:[#allocation2 + $0x188] sm:$0xff]  ;;  %v4788_v36 = vcombine.high %v277_v23, %v281_v26 }
  0xa0   :  { %v584_v37 = vld [vmem:[#allocation2 + $0xf60] sm:$0xff]  ;;  %3307 = vmatpush2.bf16.msra.mxu0 %v4969_v38  ;;  %3348 = vmatpush2.bf16.msra.mxu1 %v5097_v39  ;;  %v145_v34 = vld [vmem:[#allocation2 + $0x1a8] sm:$0xff]  ;;  %v5542_v39 = vpack.c.bf16 %v82_v27, %v82_v27 }
  0xa1   :  { %v444_v41 = vld [vmem:[#allocation2 + $0xb00] sm:$0xff]  ;;  %v5090_v44 = vcombine.high %v580_v35, %v584_v37  ;;  %3308 = vmatprep.subr.bf16.mxu0 %v4962_v40  ;;  %v5089_v47 = vcombine.low %v580_v35, %v584_v37  ;;  %v269_v35 = vld [vmem:[#allocation2 + $0x588] sm:$0xff]  ;;  %v4659_v40 = vcombine.low %v149_v21, %v153_v22 }
  0xa2   :  { %v448_v42 = vld [vmem:[#allocation2 + $0xb20] sm:$0xff]  ;;  %v273_v37 = vld [vmem:[#allocation2 + $0x5a8] sm:$0xff] }
  0xa3   :  { %v572_v43 = vld [vmem:[#allocation2 + $0xf00] sm:$0xff]  ;;  %v4954_v48 = vcombine.high %v444_v41, %v448_v42  ;;  %3349 = vmatprep.subr.bf16.mxu1 %v5090_v44  ;;  %v4953_v54 = vcombine.low %v444_v41, %v448_v42  ;;  %v4787_v41 = vcombine.low %v277_v23, %v281_v26  ;;  %v4652_v42 = vcombine.high %v141_v33, %v145_v34  ;;  %v221_v26 = vld [vmem:[#allocation2 + $0x408] sm:$0xff] }
  0xa4   :  { %v576_v45 = vld [vmem:[#allocation2 + $0xf20] sm:$0xff]  ;;  %3309 = vmatpush2.bf16.msra.mxu0 %v4961_v46  ;;  %3350 = vmatpush2.bf16.msra.mxu1 %v5089_v47  ;;  %v4780_v44 = vcombine.high %v269_v35, %v273_v37  ;;  %v261_v46 = vld [vmem:[#allocation2 + $0x548] sm:$0xff] }
  0xa5   :  { %v436_v49 = vld [vmem:[#allocation2 + $0xac0] sm:$0xff]  ;;  %v5082_v52 = vcombine.high %v572_v43, %v576_v45  ;;  %3310 = vmatprep.subr.bf16.mxu0 %v4954_v48  ;;  %v5081_v55 = vcombine.low %v572_v43, %v576_v45  ;;  %v133_v43 = vld [vmem:[#allocation2 + $0x148] sm:$0xff]  ;;  %v4651_v48 = vcombine.low %v141_v33, %v145_v34 }
  0xa6   :  { %v440_v50 = vld [vmem:[#allocation2 + $0xae0] sm:$0xff]  ;;  %v137_v45 = vld [vmem:[#allocation2 + $0x168] sm:$0xff] }
  0xa7   :  { %v564_v51 = vld [vmem:[#allocation2 + $0xec0] sm:$0xff]  ;;  %v4946_v56 = vcombine.high %v436_v49, %v440_v50  ;;  %3351 = vmatprep.subr.bf16.mxu1 %v5082_v52  ;;  %v4945_v0 = vcombine.low %v436_v49, %v440_v50  ;;  %v265_v47 = vld [vmem:[#allocation2 + $0x568] sm:$0xff]  ;;  %v4779_v49 = vcombine.low %v269_v35, %v273_v37  ;;  %v4644_v50 = vcombine.high %v133_v43, %v137_v45 }
  0xa8   :  { %v568_v53 = vld [vmem:[#allocation2 + $0xee0] sm:$0xff]  ;;  %3311 = vmatpush2.bf16.msra.mxu0 %v4953_v54  ;;  %3352 = vmatpush2.bf16.msra.mxu1 %v5081_v55  ;;  %v125_v52 = vld [vmem:[#allocation2 + $0x108] sm:$0xff] }
  0xa9   :  { %v428_v57 = vld [vmem:[#allocation2 + $0xa80] sm:$0xff]  ;;  %v5074_v62 = vcombine.high %v564_v51, %v568_v53  ;;  %3312 = vmatprep.subr.bf16.mxu0 %v4946_v56  ;;  %v5073_v1 = vcombine.low %v564_v51, %v568_v53  ;;  %v4772_v51 = vcombine.high %v261_v46, %v265_v47  ;;  %v129_v53 = vld [vmem:[#allocation2 + $0x128] sm:$0xff]  ;;  %v4643_v56 = vcombine.low %v133_v43, %v137_v45 }
  0xaa   :  { %v432_v60 = vld [vmem:[#allocation2 + $0xaa0] sm:$0xff]  ;;  %v253_v54 = vld [vmem:[#allocation2 + $0x508] sm:$0xff] }
  0xab   :  { %v556_v61 = vld [vmem:[#allocation2 + $0xe80] sm:$0xff]  ;;  %v4938_v2 = vcombine.high %v428_v57, %v432_v60  ;;  %3353 = vmatprep.subr.bf16.mxu1 %v5074_v62  ;;  %v4937_v8 = vcombine.low %v428_v57, %v432_v60  ;;  %v257_v55 = vld [vmem:[#allocation2 + $0x528] sm:$0xff]  ;;  %v4771_v57 = vcombine.low %v261_v46, %v265_v47  ;;  %v4636_v60 = vcombine.high %v125_v52, %v129_v53 }
  0xac   :  { %v560_v63 = vld [vmem:[#allocation2 + $0xea0] sm:$0xff]  ;;  %3313 = vmatpush2.bf16.msra.mxu0 %v4945_v0  ;;  %3354 = vmatpush2.bf16.msra.mxu1 %v5073_v1  ;;  %v117_v62 = vld [vmem:[#allocation2 + $0xc8] sm:$0xff] }
  0xad   :  { %v420_v3 = vld [vmem:[#allocation2 + $0xa40] sm:$0xff]  ;;  %v5066_v6 = vcombine.high %v556_v61, %v560_v63  ;;  %3314 = vmatprep.subr.bf16.mxu0 %v4938_v2  ;;  %v5065_v9 = vcombine.low %v556_v61, %v560_v63  ;;  %v4764_v61 = vcombine.high %v253_v54, %v257_v55  ;;  %v121_v63 = vld [vmem:[#allocation2 + $0xe8] sm:$0xff]  ;;  %v4635_v2 = vcombine.low %v125_v52, %v129_v53 }
  0xae   :  { %v424_v4 = vld [vmem:[#allocation2 + $0xa60] sm:$0xff]  ;;  %v245_v0 = vld [vmem:[#allocation2 + $0x4c8] sm:$0xff] }
  0xaf   :  { %v548_v5 = vld [vmem:[#allocation2 + $0xe40] sm:$0xff]  ;;  %v4930_v10 = vcombine.high %v420_v3, %v424_v4  ;;  %3355 = vmatprep.subr.bf16.mxu1 %v5066_v6  ;;  %v4929_v17 = vcombine.low %v420_v3, %v424_v4  ;;  %v249_v1 = vld [vmem:[#allocation2 + $0x4e8] sm:$0xff]  ;;  %v4763_v3 = vcombine.low %v253_v54, %v257_v55  ;;  %v4628_v4 = vcombine.high %v117_v62, %v121_v63 }
  0xb0   :  { %v552_v7 = vld [vmem:[#allocation2 + $0xe60] sm:$0xff]  ;;  %3315 = vmatpush2.bf16.msra.mxu0 %v4937_v8  ;;  %3356 = vmatpush2.bf16.msra.mxu1 %v5065_v9  ;;  %v109_v6 = vld [vmem:[#allocation2 + $0x88] sm:$0xff] }
  0xb1   :  { %v412_v11 = vld [vmem:[#allocation2 + $0xa00] sm:$0xff]  ;;  %v5058_v14 = vcombine.high %v548_v5, %v552_v7  ;;  %3316 = vmatprep.subr.bf16.mxu0 %v4930_v10  ;;  %v5057_v18 = vcombine.low %v548_v5, %v552_v7  ;;  %v4756_v5 = vcombine.high %v245_v0, %v249_v1  ;;  %v113_v7 = vld [vmem:[#allocation2 + $0xa8] sm:$0xff]  ;;  %v4627_v10 = vcombine.low %v117_v62, %v121_v63 }
  0xb2   :  { %v416_v12 = vld [vmem:[#allocation2 + $0xa20] sm:$0xff]  ;;  %v237_v8 = vld [vmem:[#allocation2 + $0x488] sm:$0xff] }
  0xb3   :  { %v540_v13 = vld [vmem:[#allocation2 + $0xe00] sm:$0xff]  ;;  %v4922_v19 = vcombine.high %v412_v11, %v416_v12  ;;  %3357 = vmatprep.subr.bf16.mxu1 %v5058_v14  ;;  %v4921_v29 = vcombine.low %v412_v11, %v416_v12  ;;  %v241_v9 = vld [vmem:[#allocation2 + $0x4a8] sm:$0xff]  ;;  %v4755_v11 = vcombine.low %v245_v0, %v249_v1  ;;  %v4620_v12 = vcombine.high %v109_v6, %v113_v7 }
  0xb4   :  { %v544_v15 = vld [vmem:[#allocation2 + $0xe20] sm:$0xff]  ;;  %3317 = vmatpush2.bf16.msra.mxu0 %v4929_v17  ;;  %3358 = vmatpush2.bf16.msra.mxu1 %v5057_v18  ;;  %v101_v14 = vld [vmem:[#allocation2 + $0x48] sm:$0xff]  ;;  %v4747_v21 = vcombine.low %v237_v8, %v241_v9 }
  0xb5   :  { %v5050_v24 = vcombine.high %v540_v13, %v544_v15  ;;  %v80_v25 = vld [vmem:[%s5673_s0 + $0x20] sm:$0xff]  ;;  %3318 = vmatprep.subr.bf16.mxu0 %v4922_v19  ;;  %v5049_v30 = vcombine.low %v540_v13, %v544_v15  ;;  %v4748_v13 = vcombine.high %v237_v8, %v241_v9  ;;  %v105_v15 = vld [vmem:[#allocation2 + $0x68] sm:$0xff]  ;;  %v4619_v19 = vcombine.low %v109_v6, %v113_v7 }
  0xb6   :  { %v5540_v38 = vpack.c.bf16 %v80_v25, %v80_v25  ;;  %v229_v17 = vld [vmem:[#allocation2 + $0x448] sm:$0xff]  ;;  %v4612_v22 = vcombine.high %v101_v14, %v105_v15 }
  0xb7   :  { %3359 = vmatprep.subr.bf16.mxu1 %v5050_v24  ;;  %v233_v18 = vld [vmem:[#allocation2 + $0x468] sm:$0xff] }
  0xb8   :  { %3319 = vmatpush2.bf16.msra.mxu0 %v4921_v29  ;;  %3360 = vmatpush2.bf16.msra.mxu1 %v5049_v30  ;;  %v4740_v23 = vcombine.high %v229_v17, %v233_v18  ;;  %v93_v24 = vld [vmem:[#allocation2 + $0x8] sm:$0xff]  ;;  %v4611_v29 = vcombine.low %v101_v14, %v105_v15  ;;  %v4739_v30 = vcombine.low %v229_v17, %v233_v18 }
  0xb9   :  { %3370 = vmatprep.subr.bf16.mxu0 %v4660_v32  ;;  %3411 = vmatprep.subr.bf16.mxu1 %v4788_v36  ;;  %v97_v25 = vld [vmem:[#allocation2 + $0x28] sm:$0xff] }
  0xba   :  { %v225_v27 = vld [vmem:[#allocation2 + $0x428] sm:$0xff]  ;;  %v4604_v32 = vcombine.high %v93_v24, %v97_v25 }
  0xbb   :  { %3321 = vmatmul.mubr.bf16.vlgmr.msra.gmra.mxu0 %v5540_v38  ;;  %3362 = vmatmul.mubr.bf16.vlgmr.msra.gmra.mxu1 %v5542_v39  ;;  %v4732_v33 = vcombine.high %v221_v26, %v225_v27  ;;  %v213_v34 = vld [vmem:[#allocation2 + $0x3c8] sm:$0xff] }
  0xbc   :  { %3371 = vmatpush1.bf16.msra.mxu0 %v4659_v40  ;;  %3412 = vmatpush1.bf16.msra.mxu1 %v4787_v41  ;;  %v217_v35 = vld [vmem:[#allocation2 + $0x3e8] sm:$0xff]  ;;  %v4603_v40 = vcombine.low %v93_v24, %v97_v25  ;;  %v4731_v41 = vcombine.low %v221_v26, %v225_v27 }
  0xbd   :  { %3372 = vmatprep.subr.bf16.mxu0 %v4652_v42  ;;  %3413 = vmatprep.subr.bf16.mxu1 %v4780_v44  ;;  %v341_v36 = vld [vmem:[#allocation2 + $0x7c8] sm:$0xff]  ;;  %v4724_v42 = vcombine.high %v213_v34, %v217_v35 }
  0xbe   :  { %3402 = vmatprep.mubr.bf16.mxu0 %v5504_v58  ;;  %3443 = vmatprep.mubr.bf16.mxu1 %v5506_v59  ;;  %v345_v37 = vld [vmem:[#allocation2 + $0x7e8] sm:$0xff] }
  0xbf   :  { %v4852_v43 = vcombine.high %v341_v36, %v345_v37  ;;  %v205_v44 = vld [vmem:[#allocation2 + $0x388] sm:$0xff] }
  0xc0   :  { %3373 = vmatpush1.bf16.msra.mxu0 %v4651_v48  ;;  %3414 = vmatpush1.bf16.msra.mxu1 %v4779_v49  ;;  %v209_v45 = vld [vmem:[#allocation2 + $0x3a8] sm:$0xff]  ;;  %v4723_v48 = vcombine.low %v213_v34, %v217_v35  ;;  %v4851_v49 = vcombine.low %v341_v36, %v345_v37 }
  0xc1   :  { %3374 = vmatprep.subr.bf16.mxu0 %v4644_v50  ;;  %3415 = vmatprep.subr.bf16.mxu1 %v4772_v51  ;;  %v333_v46 = vld [vmem:[#allocation2 + $0x788] sm:$0xff]  ;;  %v4716_v50 = vcombine.high %v205_v44, %v209_v45 }
  0xc2   :  { %v337_v47 = vld [vmem:[#allocation2 + $0x7a8] sm:$0xff] }
  0xc3   :  { %v4844_v51 = vcombine.high %v333_v46, %v337_v47  ;;  %v197_v52 = vld [vmem:[#allocation2 + $0x348] sm:$0xff] }
  0xc4   :  { %3375 = vmatpush1.bf16.msra.mxu0 %v4643_v56  ;;  %3416 = vmatpush1.bf16.msra.mxu1 %v4771_v57  ;;  %v201_v53 = vld [vmem:[#allocation2 + $0x368] sm:$0xff]  ;;  %v4715_v56 = vcombine.low %v205_v44, %v209_v45  ;;  %v4843_v57 = vcombine.low %v333_v46, %v337_v47 }
  0xc5   :  { %3376 = vmatprep.subr.bf16.mxu0 %v4636_v60  ;;  %3417 = vmatprep.subr.bf16.mxu1 %v4764_v61  ;;  %v325_v54 = vld [vmem:[#allocation2 + $0x748] sm:$0xff]  ;;  %v4708_v60 = vcombine.high %v197_v52, %v201_v53 }
  0xc6   :  { %v329_v55 = vld [vmem:[#allocation2 + $0x768] sm:$0xff] }
  0xc7   :  { %v4836_v61 = vcombine.high %v325_v54, %v329_v55  ;;  %v189_v62 = vld [vmem:[#allocation2 + $0x308] sm:$0xff] }
  0xc8   :  { %3377 = vmatpush1.bf16.msra.mxu0 %v4635_v2  ;;  %3418 = vmatpush1.bf16.msra.mxu1 %v4763_v3  ;;  %v193_v63 = vld [vmem:[#allocation2 + $0x328] sm:$0xff]  ;;  %v4707_v2 = vcombine.low %v197_v52, %v201_v53  ;;  %v4835_v3 = vcombine.low %v325_v54, %v329_v55 }
  0xc9   :  { %3378 = vmatprep.subr.bf16.mxu0 %v4628_v4  ;;  %3419 = vmatprep.subr.bf16.mxu1 %v4756_v5  ;;  %v317_v0 = vld [vmem:[#allocation2 + $0x708] sm:$0xff]  ;;  %v4700_v4 = vcombine.high %v189_v62, %v193_v63 }
  0xca   :  { %v321_v1 = vld [vmem:[#allocation2 + $0x728] sm:$0xff] }
  0xcb   :  { %v4828_v5 = vcombine.high %v317_v0, %v321_v1  ;;  %v181_v6 = vld [vmem:[#allocation2 + $0x2c8] sm:$0xff] }
  0xcc   :  { %3379 = vmatpush1.bf16.msra.mxu0 %v4627_v10  ;;  %3420 = vmatpush1.bf16.msra.mxu1 %v4755_v11  ;;  %v185_v7 = vld [vmem:[#allocation2 + $0x2e8] sm:$0xff]  ;;  %v4699_v10 = vcombine.low %v189_v62, %v193_v63  ;;  %v4827_v11 = vcombine.low %v317_v0, %v321_v1 }
  0xcd   :  { %3380 = vmatprep.subr.bf16.mxu0 %v4620_v12  ;;  %3421 = vmatprep.subr.bf16.mxu1 %v4748_v13  ;;  %v309_v8 = vld [vmem:[#allocation2 + $0x6c8] sm:$0xff]  ;;  %v4692_v12 = vcombine.high %v181_v6, %v185_v7 }
  0xce   :  { %v313_v9 = vld [vmem:[#allocation2 + $0x6e8] sm:$0xff] }
  0xcf   :  { %v4820_v13 = vcombine.high %v309_v8, %v313_v9  ;;  %v173_v14 = vld [vmem:[#allocation2 + $0x288] sm:$0xff] }
  0xd0   :  { %3381 = vmatpush1.bf16.msra.mxu0 %v4619_v19  ;;  %3422 = vmatpush1.bf16.msra.mxu1 %v4747_v21  ;;  %v177_v15 = vld [vmem:[#allocation2 + $0x2a8] sm:$0xff]  ;;  %v4691_v19 = vcombine.low %v181_v6, %v185_v7  ;;  %v4819_v21 = vcombine.low %v309_v8, %v313_v9 }
  0xd1   :  { %3382 = vmatprep.subr.bf16.mxu0 %v4612_v22  ;;  %3423 = vmatprep.subr.bf16.mxu1 %v4740_v23  ;;  %v301_v17 = vld [vmem:[#allocation2 + $0x688] sm:$0xff]  ;;  %v4684_v22 = vcombine.high %v173_v14, %v177_v15 }
  0xd2   :  { %v305_v18 = vld [vmem:[#allocation2 + $0x6a8] sm:$0xff] }
  0xd3   :  { %v4812_v23 = vcombine.high %v301_v17, %v305_v18  ;;  %v165_v24 = vld [vmem:[#allocation2 + $0x248] sm:$0xff] }
  0xd4   :  { %3383 = vmatpush1.bf16.msra.mxu0 %v4611_v29  ;;  %3424 = vmatpush1.bf16.msra.mxu1 %v4739_v30  ;;  %v169_v25 = vld [vmem:[#allocation2 + $0x268] sm:$0xff]  ;;  %v4683_v29 = vcombine.low %v173_v14, %v177_v15  ;;  %v4811_v30 = vcombine.low %v301_v17, %v305_v18 }
  0xd5   :  { %3384 = vmatprep.subr.bf16.mxu0 %v4604_v32  ;;  %3425 = vmatprep.subr.bf16.mxu1 %v4732_v33  ;;  %v293_v26 = vld [vmem:[#allocation2 + $0x648] sm:$0xff]  ;;  %v4676_v32 = vcombine.high %v165_v24, %v169_v25 }
  0xd6   :  { %v297_v27 = vld [vmem:[#allocation2 + $0x668] sm:$0xff] }
  0xd7   :  { %v4804_v33 = vcombine.high %v293_v26, %v297_v27  ;;  %v157_v34 = vld [vmem:[#allocation2 + $0x208] sm:$0xff] }
  0xd8   :  { %3385 = vmatpush1.bf16.msra.mxu0 %v4603_v40  ;;  %3426 = vmatpush1.bf16.msra.mxu1 %v4731_v41  ;;  %v161_v35 = vld [vmem:[#allocation2 + $0x228] sm:$0xff]  ;;  %v4675_v40 = vcombine.low %v165_v24, %v169_v25  ;;  %v4803_v41 = vcombine.low %v293_v26, %v297_v27 }
  0xd9   :  { %3386 = vmatprep.subr.bf16.mxu0 %v4724_v42  ;;  %3427 = vmatprep.subr.bf16.mxu1 %v4852_v43  ;;  %v285_v36 = vld [vmem:[#allocation2 + $0x608] sm:$0xff]  ;;  %v4668_v42 = vcombine.high %v157_v34, %v161_v35 }
  0xda   :  { %v289_v37 = vld [vmem:[#allocation2 + $0x628] sm:$0xff] }
  0xdb   :  { %v4796_v43 = vcombine.high %v285_v36, %v289_v37  ;;  %v405_v44 = vld [vmem:[#allocation2 + $0x9c8] sm:$0xff] }
  0xdc   :  { %3387 = vmatpush2.bf16.msra.mxu0 %v4723_v48  ;;  %3428 = vmatpush2.bf16.msra.mxu1 %v4851_v49  ;;  %v409_v45 = vld [vmem:[#allocation2 + $0x9e8] sm:$0xff]  ;;  %v4667_v48 = vcombine.low %v157_v34, %v161_v35  ;;  %v4795_v49 = vcombine.low %v285_v36, %v289_v37 }
  0xdd   :  { %3388 = vmatprep.subr.bf16.mxu0 %v4716_v50  ;;  %3429 = vmatprep.subr.bf16.mxu1 %v4844_v51  ;;  %v533_v46 = vld [vmem:[#allocation2 + $0xdc8] sm:$0xff]  ;;  %v4916_v50 = vcombine.high %v405_v44, %v409_v45 }
  0xde   :  { %v537_v47 = vld [vmem:[#allocation2 + $0xde8] sm:$0xff] }
  0xdf   :  { %v5044_v51 = vcombine.high %v533_v46, %v537_v47  ;;  %v397_v52 = vld [vmem:[#allocation2 + $0x988] sm:$0xff] }
  0xe0   :  { %3389 = vmatpush2.bf16.msra.mxu0 %v4715_v56  ;;  %3430 = vmatpush2.bf16.msra.mxu1 %v4843_v57  ;;  %v401_v53 = vld [vmem:[#allocation2 + $0x9a8] sm:$0xff]  ;;  %v4915_v56 = vcombine.low %v405_v44, %v409_v45  ;;  %v5043_v57 = vcombine.low %v533_v46, %v537_v47 }
  0xe1   :  { %3390 = vmatprep.subr.bf16.mxu0 %v4708_v60  ;;  %3431 = vmatprep.subr.bf16.mxu1 %v4836_v61  ;;  %v525_v54 = vld [vmem:[#allocation2 + $0xd88] sm:$0xff]  ;;  %v4908_v60 = vcombine.high %v397_v52, %v401_v53 }
  0xe2   :  { %v529_v55 = vld [vmem:[#allocation2 + $0xda8] sm:$0xff] }
  0xe3   :  { %v5036_v61 = vcombine.high %v525_v54, %v529_v55  ;;  %v389_v62 = vld [vmem:[#allocation2 + $0x948] sm:$0xff] }
  0xe4   :  { %3391 = vmatpush2.bf16.msra.mxu0 %v4707_v2  ;;  %3432 = vmatpush2.bf16.msra.mxu1 %v4835_v3  ;;  %v393_v63 = vld [vmem:[#allocation2 + $0x968] sm:$0xff]  ;;  %v4907_v2 = vcombine.low %v397_v52, %v401_v53  ;;  %v5035_v3 = vcombine.low %v525_v54, %v529_v55 }
  0xe5   :  { %3392 = vmatprep.subr.bf16.mxu0 %v4700_v4  ;;  %3433 = vmatprep.subr.bf16.mxu1 %v4828_v5  ;;  %v517_v0 = vld [vmem:[#allocation2 + $0xd48] sm:$0xff]  ;;  %v4900_v4 = vcombine.high %v389_v62, %v393_v63 }
  0xe6   :  { %v521_v1 = vld [vmem:[#allocation2 + $0xd68] sm:$0xff] }
  0xe7   :  { %v5028_v5 = vcombine.high %v517_v0, %v521_v1  ;;  %v381_v6 = vld [vmem:[#allocation2 + $0x908] sm:$0xff] }
  0xe8   :  { %3393 = vmatpush2.bf16.msra.mxu0 %v4699_v10  ;;  %3434 = vmatpush2.bf16.msra.mxu1 %v4827_v11  ;;  %v385_v7 = vld [vmem:[#allocation2 + $0x928] sm:$0xff]  ;;  %v4899_v10 = vcombine.low %v389_v62, %v393_v63  ;;  %v5027_v11 = vcombine.low %v517_v0, %v521_v1 }
  0xe9   :  { %3394 = vmatprep.subr.bf16.mxu0 %v4692_v12  ;;  %3435 = vmatprep.subr.bf16.mxu1 %v4820_v13  ;;  %v509_v8 = vld [vmem:[#allocation2 + $0xd08] sm:$0xff]  ;;  %v4892_v12 = vcombine.high %v381_v6, %v385_v7 }
  0xea   :  { %v513_v9 = vld [vmem:[#allocation2 + $0xd28] sm:$0xff] }
  0xeb   :  { %v5020_v13 = vcombine.high %v509_v8, %v513_v9  ;;  %v373_v14 = vld [vmem:[#allocation2 + $0x8c8] sm:$0xff] }
  0xec   :  { %3395 = vmatpush2.bf16.msra.mxu0 %v4691_v19  ;;  %3436 = vmatpush2.bf16.msra.mxu1 %v4819_v21  ;;  %v377_v15 = vld [vmem:[#allocation2 + $0x8e8] sm:$0xff]  ;;  %v4891_v19 = vcombine.low %v381_v6, %v385_v7  ;;  %v5019_v21 = vcombine.low %v509_v8, %v513_v9 }
  0xed   :  { %3396 = vmatprep.subr.bf16.mxu0 %v4684_v22  ;;  %3437 = vmatprep.subr.bf16.mxu1 %v4812_v23  ;;  %v501_v17 = vld [vmem:[#allocation2 + $0xcc8] sm:$0xff]  ;;  %v4884_v22 = vcombine.high %v373_v14, %v377_v15 }
  0xee   :  { %v505_v18 = vld [vmem:[#allocation2 + $0xce8] sm:$0xff] }
  0xef   :  { %v5012_v23 = vcombine.high %v501_v17, %v505_v18  ;;  %v365_v24 = vld [vmem:[#allocation2 + $0x888] sm:$0xff] }
  0xf0   :  { %3397 = vmatpush2.bf16.msra.mxu0 %v4683_v29  ;;  %3438 = vmatpush2.bf16.msra.mxu1 %v4811_v30  ;;  %v369_v25 = vld [vmem:[#allocation2 + $0x8a8] sm:$0xff]  ;;  %v4883_v29 = vcombine.low %v373_v14, %v377_v15  ;;  %v5011_v30 = vcombine.low %v501_v17, %v505_v18 }
  0xf1   :  { %3398 = vmatprep.subr.bf16.mxu0 %v4676_v32  ;;  %3439 = vmatprep.subr.bf16.mxu1 %v4804_v33  ;;  %v493_v26 = vld [vmem:[#allocation2 + $0xc88] sm:$0xff]  ;;  %v4876_v32 = vcombine.high %v365_v24, %v369_v25 }
  0xf2   :  { %v497_v27 = vld [vmem:[#allocation2 + $0xca8] sm:$0xff] }
  0xf3   :  { %v5004_v33 = vcombine.high %v493_v26, %v497_v27  ;;  %v357_v34 = vld [vmem:[#allocation2 + $0x848] sm:$0xff] }
  0xf4   :  { %3399 = vmatpush2.bf16.msra.mxu0 %v4675_v40  ;;  %3440 = vmatpush2.bf16.msra.mxu1 %v4803_v41  ;;  %v361_v35 = vld [vmem:[#allocation2 + $0x868] sm:$0xff]  ;;  %v4875_v40 = vcombine.low %v365_v24, %v369_v25  ;;  %v5003_v41 = vcombine.low %v493_v26, %v497_v27 }
  0xf5   :  { %3400 = vmatprep.subr.bf16.mxu0 %v4668_v42  ;;  %3441 = vmatprep.subr.bf16.mxu1 %v4796_v43  ;;  %v485_v36 = vld [vmem:[#allocation2 + $0xc48] sm:$0xff]  ;;  %v4868_v42 = vcombine.high %v357_v34, %v361_v35 }
  0xf6   :  { %v489_v37 = vld [vmem:[#allocation2 + $0xc68] sm:$0xff] }
  0xf7   :  { %v4996_v43 = vcombine.high %v485_v36, %v489_v37  ;;  %v349_v44 = vld [vmem:[#allocation2 + $0x808] sm:$0xff] }
  0xf8   :  { %3401 = vmatpush2.bf16.msra.mxu0 %v4667_v48  ;;  %3442 = vmatpush2.bf16.msra.mxu1 %v4795_v49  ;;  %v353_v45 = vld [vmem:[#allocation2 + $0x828] sm:$0xff]  ;;  %v4867_v48 = vcombine.low %v357_v34, %v361_v35  ;;  %v4995_v49 = vcombine.low %v485_v36, %v489_v37 }
  0xf9   :  { %3452 = vmatprep.subr.bf16.mxu0 %v4916_v50  ;;  %3493 = vmatprep.subr.bf16.mxu1 %v5044_v51  ;;  %v477_v46 = vld [vmem:[#allocation2 + $0xc08] sm:$0xff]  ;;  %v4860_v50 = vcombine.high %v349_v44, %v353_v45 }
  0xfa   :  { %v481_v47 = vld [vmem:[#allocation2 + $0xc28] sm:$0xff] }
  0xfb   :  { %3403 = vmatmul.mubr.bf16.vlgmr.msra.gmra.mxu0 %v5516_v16  ;;  %3444 = vmatmul.mubr.bf16.vlgmr.msra.gmra.mxu1 %v5521_v20  ;;  %v4988_v51 = vcombine.high %v477_v46, %v481_v47  ;;  %v469_v52 = vld [vmem:[#allocation2 + $0xbc8] sm:$0xff] }
  0xfc   :  { %3453 = vmatpush1.bf16.msra.mxu0 %v4915_v56  ;;  %3494 = vmatpush1.bf16.msra.mxu1 %v5043_v57  ;;  %v473_v53 = vld [vmem:[#allocation2 + $0xbe8] sm:$0xff]  ;;  %v4859_v56 = vcombine.low %v349_v44, %v353_v45  ;;  %v4987_v57 = vcombine.low %v477_v46, %v481_v47 }
  0xfd   :  { %3454 = vmatprep.subr.bf16.mxu0 %v4908_v60  ;;  %3495 = vmatprep.subr.bf16.mxu1 %v5036_v61  ;;  %v597_v54 = vld [vmem:[#allocation2 + $0xfc8] sm:$0xff]  ;;  %v4980_v60 = vcombine.high %v469_v52, %v473_v53 }
  0xfe   :  { %3484 = vmatprep.mubr.bf16.mxu0 %v5526_v28  ;;  %3525 = vmatprep.mubr.bf16.mxu1 %v5529_v31  ;;  %v601_v55 = vld [vmem:[#allocation2 + $0xfe8] sm:$0xff] }
  0xff   :  { %v5108_v61 = vcombine.high %v597_v54, %v601_v55  ;;  %v461_v62 = vld [vmem:[#allocation2 + $0xb88] sm:$0xff] }
 0x100   :  { %3455 = vmatpush1.bf16.msra.mxu0 %v4907_v2  ;;  %3496 = vmatpush1.bf16.msra.mxu1 %v5035_v3  ;;  %v465_v63 = vld [vmem:[#allocation2 + $0xba8] sm:$0xff]  ;;  %v4979_v2 = vcombine.low %v469_v52, %v473_v53  ;;  %v5107_v3 = vcombine.low %v597_v54, %v601_v55 }
 0x101   :  { %3456 = vmatprep.subr.bf16.mxu0 %v4900_v4  ;;  %3497 = vmatprep.subr.bf16.mxu1 %v5028_v5  ;;  %v589_v0 = vld [vmem:[#allocation2 + $0xf88] sm:$0xff]  ;;  %v4972_v4 = vcombine.high %v461_v62, %v465_v63 }
 0x102   :  { %v593_v1 = vld [vmem:[#allocation2 + $0xfa8] sm:$0xff] }
 0x103   :  { %v5100_v5 = vcombine.high %v589_v0, %v593_v1  ;;  %v453_v6 = vld [vmem:[#allocation2 + $0xb48] sm:$0xff] }
 0x104   :  { %3457 = vmatpush1.bf16.msra.mxu0 %v4899_v10  ;;  %3498 = vmatpush1.bf16.msra.mxu1 %v5027_v11  ;;  %v457_v7 = vld [vmem:[#allocation2 + $0xb68] sm:$0xff]  ;;  %v4971_v10 = vcombine.low %v461_v62, %v465_v63  ;;  %v5099_v11 = vcombine.low %v589_v0, %v593_v1  ;;  %v150_v62 = vld [vmem:[#allocation2 + $0x1d0] sm:$0xff] }
 0x105   :  { %3458 = vmatprep.subr.bf16.mxu0 %v4892_v12  ;;  %3499 = vmatprep.subr.bf16.mxu1 %v5020_v13  ;;  %v581_v8 = vld [vmem:[#allocation2 + $0xf48] sm:$0xff]  ;;  %v4964_v12 = vcombine.high %v453_v6, %v457_v7  ;;  %v154_v63 = vld [vmem:[#allocation2 + $0x1f0] sm:$0xff] }
 0x106   :  { %v585_v9 = vld [vmem:[#allocation2 + $0xf68] sm:$0xff]  ;;  %v278_v0 = vld [vmem:[#allocation2 + $0x5d0] sm:$0xff] }
 0x107   :  { %v5092_v13 = vcombine.high %v581_v8, %v585_v9  ;;  %v445_v14 = vld [vmem:[#allocation2 + $0xb08] sm:$0xff]  ;;  %v282_v1 = vld [vmem:[#allocation2 + $0x5f0] sm:$0xff] }
 0x108   :  { %3459 = vmatpush1.bf16.msra.mxu0 %v4891_v19  ;;  %3500 = vmatpush1.bf16.msra.mxu1 %v5019_v21  ;;  %v449_v15 = vld [vmem:[#allocation2 + $0xb28] sm:$0xff]  ;;  %v4963_v19 = vcombine.low %v453_v6, %v457_v7  ;;  %v5091_v21 = vcombine.low %v581_v8, %v585_v9  ;;  %v142_v6 = vld [vmem:[#allocation2 + $0x190] sm:$0xff] }
 0x109   :  { %3460 = vmatprep.subr.bf16.mxu0 %v4884_v22  ;;  %3501 = vmatprep.subr.bf16.mxu1 %v5012_v23  ;;  %v573_v17 = vld [vmem:[#allocation2 + $0xf08] sm:$0xff]  ;;  %v4956_v22 = vcombine.high %v445_v14, %v449_v15  ;;  %v146_v7 = vld [vmem:[#allocation2 + $0x1b0] sm:$0xff] }
 0x10a   :  { %v577_v18 = vld [vmem:[#allocation2 + $0xf28] sm:$0xff]  ;;  %v270_v8 = vld [vmem:[#allocation2 + $0x590] sm:$0xff] }
 0x10b   :  { %v5084_v23 = vcombine.high %v573_v17, %v577_v18  ;;  %v437_v24 = vld [vmem:[#allocation2 + $0xac8] sm:$0xff]  ;;  %v274_v9 = vld [vmem:[#allocation2 + $0x5b0] sm:$0xff] }
 0x10c   :  { %3461 = vmatpush1.bf16.msra.mxu0 %v4883_v29  ;;  %3502 = vmatpush1.bf16.msra.mxu1 %v5011_v30  ;;  %v441_v25 = vld [vmem:[#allocation2 + $0xae8] sm:$0xff]  ;;  %v4955_v29 = vcombine.low %v445_v14, %v449_v15  ;;  %v5083_v30 = vcombine.low %v573_v17, %v577_v18  ;;  %v134_v14 = vld [vmem:[#allocation2 + $0x150] sm:$0xff] }
 0x10d   :  { %3462 = vmatprep.subr.bf16.mxu0 %v4876_v32  ;;  %3503 = vmatprep.subr.bf16.mxu1 %v5004_v33  ;;  %v565_v26 = vld [vmem:[#allocation2 + $0xec8] sm:$0xff]  ;;  %v4948_v32 = vcombine.high %v437_v24, %v441_v25  ;;  %v138_v15 = vld [vmem:[#allocation2 + $0x170] sm:$0xff] }
 0x10e   :  { %v569_v27 = vld [vmem:[#allocation2 + $0xee8] sm:$0xff]  ;;  %v262_v18 = vld [vmem:[#allocation2 + $0x550] sm:$0xff] }
 0x10f   :  { %v5076_v33 = vcombine.high %v565_v26, %v569_v27  ;;  %v429_v34 = vld [vmem:[#allocation2 + $0xa88] sm:$0xff] }
 0x110   :  { %3463 = vmatpush1.bf16.msra.mxu0 %v4875_v40  ;;  %3504 = vmatpush1.bf16.msra.mxu1 %v5003_v41  ;;  %v433_v35 = vld [vmem:[#allocation2 + $0xaa8] sm:$0xff]  ;;  %v4947_v40 = vcombine.low %v437_v24, %v441_v25  ;;  %v5075_v41 = vcombine.low %v565_v26, %v569_v27  ;;  %v4781_v24 = vcombine.low %v270_v8, %v274_v9 }
 0x111   :  { %3464 = vmatprep.subr.bf16.mxu0 %v4868_v42  ;;  %3505 = vmatprep.subr.bf16.mxu1 %v4996_v43  ;;  %v557_v36 = vld [vmem:[#allocation2 + $0xe88] sm:$0xff]  ;;  %v4940_v42 = vcombine.high %v429_v34, %v433_v35  ;;  %v4646_v25 = vcombine.high %v134_v14, %v138_v15 }
 0x112   :  { %v561_v37 = vld [vmem:[#allocation2 + $0xea8] sm:$0xff] }
 0x113   :  { %v5068_v43 = vcombine.high %v557_v36, %v561_v37  ;;  %v421_v44 = vld [vmem:[#allocation2 + $0xa48] sm:$0xff] }
 0x114   :  { %3465 = vmatpush1.bf16.msra.mxu0 %v4867_v48  ;;  %3506 = vmatpush1.bf16.msra.mxu1 %v4995_v49  ;;  %v425_v45 = vld [vmem:[#allocation2 + $0xa68] sm:$0xff]  ;;  %v4939_v48 = vcombine.low %v429_v34, %v433_v35  ;;  %v5067_v49 = vcombine.low %v557_v36, %v561_v37  ;;  %v258_v34 = vld [vmem:[#allocation2 + $0x530] sm:$0xff]  ;;  %v4645_v36 = vcombine.low %v134_v14, %v138_v15 }
 0x115   :  { %3466 = vmatprep.subr.bf16.mxu0 %v4860_v50  ;;  %3507 = vmatprep.subr.bf16.mxu1 %v4988_v51  ;;  %v549_v46 = vld [vmem:[#allocation2 + $0xe48] sm:$0xff]  ;;  %v4932_v50 = vcombine.high %v421_v44, %v425_v45  ;;  %v214_v14 = vld [vmem:[#allocation2 + $0x3d0] sm:$0xff] }
 0x116   :  { %v553_v47 = vld [vmem:[#allocation2 + $0xe68] sm:$0xff]  ;;  %v218_v15 = vld [vmem:[#allocation2 + $0x3f0] sm:$0xff] }
 0x117   :  { %v5060_v51 = vcombine.high %v549_v46, %v553_v47  ;;  %v413_v52 = vld [vmem:[#allocation2 + $0xa08] sm:$0xff] }
 0x118   :  { %3467 = vmatpush1.bf16.msra.mxu0 %v4859_v56  ;;  %3508 = vmatpush1.bf16.msra.mxu1 %v4987_v57  ;;  %v417_v53 = vld [vmem:[#allocation2 + $0xa28] sm:$0xff]  ;;  %v4931_v56 = vcombine.low %v421_v44, %v425_v45  ;;  %v5059_v57 = vcombine.low %v549_v46, %v553_v47  ;;  %v118_v44 = vld [vmem:[#allocation2 + $0xd0] sm:$0xff] }
 0x119   :  { %3468 = vmatprep.subr.bf16.mxu0 %v4980_v60  ;;  %3509 = vmatprep.subr.bf16.mxu1 %v5108_v61  ;;  %v541_v54 = vld [vmem:[#allocation2 + $0xe08] sm:$0xff]  ;;  %v4924_v60 = vcombine.high %v413_v52, %v417_v53  ;;  %v122_v45 = vld [vmem:[#allocation2 + $0xf0] sm:$0xff] }
 0x11a   :  { %v545_v55 = vld [vmem:[#allocation2 + $0xe28] sm:$0xff]  ;;  %v246_v46 = vld [vmem:[#allocation2 + $0x4d0] sm:$0xff] }
 0x11b   :  { %v5052_v61 = vcombine.high %v541_v54, %v545_v55  ;;  %v250_v47 = vld [vmem:[#allocation2 + $0x4f0] sm:$0xff] }
 0x11c   :  { %3469 = vmatpush2.bf16.msra.mxu0 %v4979_v2  ;;  %3510 = vmatpush2.bf16.msra.mxu1 %v5107_v3  ;;  %v4923_v2 = vcombine.low %v413_v52, %v417_v53  ;;  %v5051_v3 = vcombine.low %v541_v54, %v545_v55  ;;  %v110_v52 = vld [vmem:[#allocation2 + $0x90] sm:$0xff] }
 0x11d   :  { %3470 = vmatprep.subr.bf16.mxu0 %v4972_v4  ;;  %3511 = vmatprep.subr.bf16.mxu1 %v5100_v5  ;;  %v4662_v4 = vcombine.high %v150_v62, %v154_v63  ;;  %v4790_v5 = vcombine.high %v278_v0, %v282_v1  ;;  %v114_v53 = vld [vmem:[#allocation2 + $0xb0] sm:$0xff] }
 0x11e   :  { %v238_v54 = vld [vmem:[#allocation2 + $0x490] sm:$0xff] }
 0x11f   :  { %v242_v55 = vld [vmem:[#allocation2 + $0x4b0] sm:$0xff] }
 0x120   :  { %3471 = vmatpush2.bf16.msra.mxu0 %v4971_v10  ;;  %3512 = vmatpush2.bf16.msra.mxu1 %v5099_v11  ;;  %v4661_v10 = vcombine.low %v150_v62, %v154_v63  ;;  %v4789_v11 = vcombine.low %v278_v0, %v282_v1  ;;  %v102_v62 = vld [vmem:[#allocation2 + $0x50] sm:$0xff] }
 0x121   :  { %3472 = vmatprep.subr.bf16.mxu0 %v4964_v12  ;;  %3513 = vmatprep.subr.bf16.mxu1 %v5092_v13  ;;  %v4654_v12 = vcombine.high %v142_v6, %v146_v7  ;;  %v4782_v13 = vcombine.high %v270_v8, %v274_v9  ;;  %v106_v63 = vld [vmem:[#allocation2 + $0x70] sm:$0xff] }
 0x122   :  { %v230_v0 = vld [vmem:[#allocation2 + $0x450] sm:$0xff] }
 0x123   :  { %v234_v1 = vld [vmem:[#allocation2 + $0x470] sm:$0xff] }
 0x124   :  { %3473 = vmatpush2.bf16.msra.mxu0 %v4963_v19  ;;  %3514 = vmatpush2.bf16.msra.mxu1 %v5091_v21  ;;  %v266_v19 = vld [vmem:[#allocation2 + $0x570] sm:$0xff] }
 0x125   :  { %3474 = vmatprep.subr.bf16.mxu0 %v4956_v22  ;;  %3515 = vmatprep.subr.bf16.mxu1 %v5084_v23  ;;  %v4653_v22 = vcombine.low %v142_v6, %v146_v7  ;;  %v4774_v27 = vcombine.high %v262_v18, %v266_v19  ;;  %v94_v6 = vld [vmem:[#allocation2 + $0x10] sm:$0xff] }
 0x126   :  { %v98_v7 = vld [vmem:[#allocation2 + $0x30] sm:$0xff] }
 0x127   :  { %v222_v8 = vld [vmem:[#allocation2 + $0x410] sm:$0xff] }
 0x128   :  { %3475 = vmatpush2.bf16.msra.mxu0 %v4955_v29  ;;  %3516 = vmatpush2.bf16.msra.mxu1 %v5083_v30  ;;  %v126_v29 = vld [vmem:[#allocation2 + $0x110] sm:$0xff] }
 0x129   :  { %3476 = vmatprep.subr.bf16.mxu0 %v4948_v32  ;;  %3517 = vmatprep.subr.bf16.mxu1 %v5076_v33  ;;  %v130_v30 = vld [vmem:[#allocation2 + $0x130] sm:$0xff] }
 0x12a   :  { %v254_v33 = vld [vmem:[#allocation2 + $0x510] sm:$0xff] }
 0x12b   :  { %v226_v9 = vld [vmem:[#allocation2 + $0x430] sm:$0xff] }
 0x12c   :  { %3477 = vmatpush2.bf16.msra.mxu0 %v4947_v40  ;;  %3518 = vmatpush2.bf16.msra.mxu1 %v5075_v41  ;;  %v4773_v40 = vcombine.low %v262_v18, %v266_v19  ;;  %v4638_v41 = vcombine.high %v126_v29, %v130_v30  ;;  %v342_v18 = vld [vmem:[#allocation2 + $0x7d0] sm:$0xff] }
 0x12d   :  { %3478 = vmatprep.subr.bf16.mxu0 %v4940_v42  ;;  %3519 = vmatprep.subr.bf16.mxu1 %v5068_v43  ;;  %v4766_v43 = vcombine.high %v254_v33, %v258_v34  ;;  %v346_v19 = vld [vmem:[#allocation2 + $0x7f0] sm:$0xff] }
 0x130   :  { %3479 = vmatpush2.bf16.msra.mxu0 %v4939_v48  ;;  %3520 = vmatpush2.bf16.msra.mxu1 %v5067_v49  ;;  %v4637_v48 = vcombine.low %v126_v29, %v130_v30  ;;  %v4765_v49 = vcombine.low %v254_v33, %v258_v34  ;;  %v206_v29 = vld [vmem:[#allocation2 + $0x390] sm:$0xff]  ;;  %v4725_v34 = vcombine.low %v214_v14, %v218_v15 }
 0x131   :  { %3480 = vmatprep.subr.bf16.mxu0 %v4932_v50  ;;  %3521 = vmatprep.subr.bf16.mxu1 %v5060_v51  ;;  %v4630_v50 = vcombine.high %v118_v44, %v122_v45  ;;  %v4758_v51 = vcombine.high %v246_v46, %v250_v47  ;;  %v210_v30 = vld [vmem:[#allocation2 + $0x3b0] sm:$0xff] }
 0x132   :  { %v338_v33 = vld [vmem:[#allocation2 + $0x7b0] sm:$0xff] }
 0x134   :  { %3481 = vmatpush2.bf16.msra.mxu0 %v4931_v56  ;;  %3522 = vmatpush2.bf16.msra.mxu1 %v5059_v57  ;;  %v4629_v56 = vcombine.low %v118_v44, %v122_v45  ;;  %v4757_v57 = vcombine.low %v246_v46, %v250_v47  ;;  %v4717_v44 = vcombine.low %v206_v29, %v210_v30 }
 0x135   :  { %3482 = vmatprep.subr.bf16.mxu0 %v4924_v60  ;;  %3523 = vmatprep.subr.bf16.mxu1 %v5052_v61  ;;  %v4622_v60 = vcombine.high %v110_v52, %v114_v53  ;;  %v4750_v61 = vcombine.high %v238_v54, %v242_v55 }
 0x138   :  { %3483 = vmatpush2.bf16.msra.mxu0 %v4923_v2  ;;  %3524 = vmatpush2.bf16.msra.mxu1 %v5051_v3  ;;  %v4621_v2 = vcombine.low %v110_v52, %v114_v53  ;;  %v4749_v3 = vcombine.low %v238_v54, %v242_v55 }
 0x139   :  { %3534 = vmatprep.subr.bf16.mxu0 %v4662_v4  ;;  %3575 = vmatprep.subr.bf16.mxu1 %v4790_v5  ;;  %v4614_v4 = vcombine.high %v102_v62, %v106_v63  ;;  %v4742_v5 = vcombine.high %v230_v0, %v234_v1 }
 0x13a   :  { %v5555_v21 = vpop.f32.mrf.mxu1 }
 0x13b   :  { %v5552_v17 = vpop.f32.mrf.mxu0  ;;  %3485 = vmatmul.mubr.bf16.vlgmr.msra.gmra.mxu0 %v5540_v38  ;;  %3526 = vmatmul.mubr.bf16.vlgmr.msra.gmra.mxu1 %v5542_v39 }
 0x13c   :  { %3535 = vmatpush1.bf16.msra.mxu0 %v4661_v10  ;;  %3576 = vmatpush1.bf16.msra.mxu1 %v4789_v11  ;;  %v5560_v26 = vpop.f32.mrf.mxu1  ;;  %v4613_v10 = vcombine.low %v102_v62, %v106_v63  ;;  %v4741_v11 = vcombine.low %v230_v0, %v234_v1  ;;  %v606_v1 = vlaneseq }
 0x13d   :  { %v5558_v23 = vpop.f32.mrf.mxu0  ;;  %3536 = vmatprep.subr.bf16.mxu0 %v4654_v12  ;;  %3577 = vmatprep.subr.bf16.mxu1 %v4782_v13  ;;  %v4606_v12 = vcombine.high %v94_v6, %v98_v7  ;;  %v4734_v13 = vcombine.high %v222_v8, %v226_v9 }
 0x13e   :  { %3566 = vmatprep.mubr.bf16.mxu0 %v5504_v58  ;;  %3607 = vmatprep.mubr.bf16.mxu1 %v5506_v59  ;;  %v3285_v35 = vpop.f32.mrf.mxu1 }
 0x13f   :  { %v3244_v32 = vpop.f32.mrf.mxu0  ;;  %v4853_v35 = vcombine.low %v342_v18, %v346_v19 }
 0x140   :  { %3537 = vmatpush1.bf16.msra.mxu0 %v4653_v22  ;;  %3578 = vmatpush1.bf16.msra.mxu1 %v4781_v24  ;;  %v3286_v42 = vpop.f32.mrf.mxu1  ;;  %v4605_v22 = vcombine.low %v94_v6, %v98_v7  ;;  %v4733_v24 = vcombine.low %v222_v8, %v226_v9  ;;  %v334_v32 = vld [vmem:[#allocation2 + $0x790] sm:$0xff] }
 0x141   :  { %v3245_v37 = vpop.f32.mrf.mxu0  ;;  %3538 = vmatprep.subr.bf16.mxu0 %v4646_v25  ;;  %3579 = vmatprep.subr.bf16.mxu1 %v4774_v27  ;;  %v4726_v25 = vcombine.high %v214_v14, %v218_v15  ;;  %v4854_v27 = vcombine.high %v342_v18, %v346_v19  ;;  %v326_v42 = vld [vmem:[#allocation2 + $0x750] sm:$0xff]  ;;  %v4845_v45 = vcombine.low %v334_v32, %v338_v33 }
 0x142   :  { %v4846_v37 = vcombine.high %v334_v32, %v338_v33  ;;  %v306_v6 = vld [vmem:[#allocation2 + $0x6b0] sm:$0xff] }
 0x143   :  { %v294_v14 = vld [vmem:[#allocation2 + $0x650] sm:$0xff] }
 0x144   :  { %3539 = vmatpush1.bf16.msra.mxu0 %v4645_v36  ;;  %3580 = vmatpush1.bf16.msra.mxu1 %v4773_v40  ;;  %v4718_v36 = vcombine.high %v206_v29, %v210_v30  ;;  %v198_v40 = vld [vmem:[#allocation2 + $0x350] sm:$0xff]  ;;  %v5568_v30 = vld [vmem:[#allocation4] sm:$0xff] }
 0x145   :  { %3540 = vmatprep.subr.bf16.mxu0 %v4638_v41  ;;  %3581 = vmatprep.subr.bf16.mxu1 %v4766_v43  ;;  %v202_v41 = vld [vmem:[#allocation2 + $0x370] sm:$0xff] }
 0x146   :  { %v330_v43 = vld [vmem:[#allocation2 + $0x770] sm:$0xff]  ;;  %v4710_v46 = vcombine.high %v198_v40, %v202_v41  ;;  %v4709_v52 = vcombine.low %v198_v40, %v202_v41 }
 0x147   :  { %v4838_v47 = vcombine.high %v326_v42, %v330_v43  ;;  %v4837_v53 = vcombine.low %v326_v42, %v330_v43  ;;  %v298_v15 = vld [vmem:[#allocation2 + $0x670] sm:$0xff] }
 0x148   :  { %3541 = vmatpush1.bf16.msra.mxu0 %v4637_v48  ;;  %3582 = vmatpush1.bf16.msra.mxu1 %v4765_v49  ;;  %v190_v48 = vld [vmem:[#allocation2 + $0x310] sm:$0xff] }
 0x149   :  { %3542 = vmatprep.subr.bf16.mxu0 %v4630_v50  ;;  %3583 = vmatprep.subr.bf16.mxu1 %v4758_v51  ;;  %v194_v49 = vld [vmem:[#allocation2 + $0x330] sm:$0xff] }
 0x14a   :  { %v318_v50 = vld [vmem:[#allocation2 + $0x710] sm:$0xff]  ;;  %v4702_v54 = vcombine.high %v190_v48, %v194_v49  ;;  %v4701_v62 = vcombine.low %v190_v48, %v194_v49 }
 0x14b   :  { %v322_v51 = vld [vmem:[#allocation2 + $0x730] sm:$0xff] }
 0x14c   :  { %3543 = vmatpush1.bf16.msra.mxu0 %v4629_v56  ;;  %3584 = vmatpush1.bf16.msra.mxu1 %v4757_v57  ;;  %v4830_v55 = vcombine.high %v318_v50, %v322_v51  ;;  %v182_v56 = vld [vmem:[#allocation2 + $0x2d0] sm:$0xff]  ;;  %v4829_v63 = vcombine.low %v318_v50, %v322_v51 }
 0x14d   :  { %3544 = vmatprep.subr.bf16.mxu0 %v4622_v60  ;;  %3585 = vmatprep.subr.bf16.mxu1 %v4750_v61  ;;  %v186_v57 = vld [vmem:[#allocation2 + $0x2f0] sm:$0xff] }
 0x14e   :  { %v310_v60 = vld [vmem:[#allocation2 + $0x6d0] sm:$0xff]  ;;  %v4694_v0 = vcombine.high %v182_v56, %v186_v57  ;;  %v4693_v7 = vcombine.low %v182_v56, %v186_v57 }
 0x14f   :  { %v314_v61 = vld [vmem:[#allocation2 + $0x6f0] sm:$0xff] }
 0x150   :  { %3545 = vmatpush1.bf16.msra.mxu0 %v4621_v2  ;;  %3586 = vmatpush1.bf16.msra.mxu1 %v4749_v3  ;;  %v4822_v2 = vcombine.high %v310_v60, %v314_v61  ;;  %v174_v3 = vld [vmem:[#allocation2 + $0x290] sm:$0xff]  ;;  %v4821_v8 = vcombine.low %v310_v60, %v314_v61 }
 0x151   :  { %3546 = vmatprep.subr.bf16.mxu0 %v4614_v4  ;;  %3587 = vmatprep.subr.bf16.mxu1 %v4742_v5  ;;  %v178_v4 = vld [vmem:[#allocation2 + $0x2b0] sm:$0xff] }
 0x152   :  { %v302_v5 = vld [vmem:[#allocation2 + $0x690] sm:$0xff]  ;;  %v4686_v9 = vcombine.high %v174_v3, %v178_v4  ;;  %v4685_v18 = vcombine.low %v174_v3, %v178_v4 }
 0x153   :  { %v4813_v19 = vcombine.low %v302_v5, %v306_v6  ;;  %v162_v29 = vld [vmem:[#allocation2 + $0x230] sm:$0xff] }
 0x154   :  { %3547 = vmatpush1.bf16.msra.mxu0 %v4613_v10  ;;  %3588 = vmatpush1.bf16.msra.mxu1 %v4741_v11  ;;  %v5565_v10 = vshrl.u32 %v606_v1, 7  ;;  %v4814_v11 = vcombine.high %v302_v5, %v306_v6  ;;  %v286_v32 = vld [vmem:[#allocation2 + $0x610] sm:$0xff] }
 0x155   :  { %3548 = vmatprep.subr.bf16.mxu0 %v4606_v12  ;;  %3589 = vmatprep.subr.bf16.mxu1 %v4734_v13  ;;  %v166_v12 = vld [vmem:[#allocation2 + $0x250] sm:$0xff] }
 0x156   :  { %v170_v13 = vld [vmem:[#allocation2 + $0x270] sm:$0xff] }
 0x157   :  { %v290_v33 = vld [vmem:[#allocation2 + $0x630] sm:$0xff] }
 0x158   :  { %3549 = vmatpush1.bf16.msra.mxu0 %v4605_v22  ;;  %3590 = vmatpush1.bf16.msra.mxu1 %v4733_v24  ;;  %v4678_v22 = vcombine.high %v166_v12, %v170_v13  ;;  %v608_v24 = vsub.s32 0, %v5565_v10  ;;  %v4798_v41 = vcombine.high %v286_v32, %v290_v33  ;;  %v406_v42 = vld [vmem:[#allocation2 + $0x9d0] sm:$0xff]  ;;  %v4797_v48 = vcombine.low %v286_v32, %v290_v33 }
 0x159   :  { %3550 = vmatprep.subr.bf16.mxu0 %v4726_v25  ;;  %3591 = vmatprep.subr.bf16.mxu1 %v4854_v27  ;;  %v4806_v25 = vcombine.high %v294_v14, %v298_v15  ;;  %v158_v27 = vld [vmem:[#allocation2 + $0x210] sm:$0xff] }
 0x15a   :  { %v609_v40 = vrot.slane %v5568_v30, %v608_v24  ;;  %v410_v43 = vld [vmem:[#allocation2 + $0x9f0] sm:$0xff] }
 0x15b   :  { %v4918_v49 = vcombine.high %v406_v42, %v410_v43  ;;  %v4917_v57 = vcombine.low %v406_v42, %v410_v43  ;;  %v518_v3 = vld [vmem:[#allocation2 + $0xd50] sm:$0xff] }
 0x15c   :  { %3551 = vmatpush2.bf16.msra.mxu0 %v4725_v34  ;;  %3592 = vmatpush2.bf16.msra.mxu1 %v4853_v35  ;;  %v612_v34 = vsub.s32 1, %v5565_v10  ;;  %v4677_v35 = vcombine.low %v166_v12, %v170_v13  ;;  %v3241_v50 = vadd.f32 %v5552_v17, %v609_v40  ;;  %v394_v17 = vld [vmem:[#allocation2 + $0x970] sm:$0xff] }
 0x15d   :  { %3552 = vmatprep.subr.bf16.mxu0 %v4718_v36  ;;  %3593 = vmatprep.subr.bf16.mxu1 %v4846_v37  ;;  %v4805_v36 = vcombine.low %v294_v14, %v298_v15  ;;  %v4670_v37 = vcombine.high %v158_v27, %v162_v29  ;;  %v522_v4 = vld [vmem:[#allocation2 + $0xd70] sm:$0xff] }
 0x15e   :  { %v5030_v14 = vcombine.high %v518_v3, %v522_v4  ;;  %v382_v15 = vld [vmem:[#allocation2 + $0x910] sm:$0xff]  ;;  %v5029_v33 = vcombine.low %v518_v3, %v522_v4 }
 0x15f   :  { %v374_v40 = vld [vmem:[#allocation2 + $0x8d0] sm:$0xff] }
 0x160   :  { %3553 = vmatpush2.bf16.msra.mxu0 %v4717_v44  ;;  %3594 = vmatpush2.bf16.msra.mxu1 %v4845_v45  ;;  %v534_v44 = vld [vmem:[#allocation2 + $0xdd0] sm:$0xff] }
 0x161   :  { %3554 = vmatprep.subr.bf16.mxu0 %v4710_v46  ;;  %3595 = vmatprep.subr.bf16.mxu1 %v4838_v47  ;;  %v538_v45 = vld [vmem:[#allocation2 + $0xdf0] sm:$0xff]  ;;  %v613_v46 = vrot.slane %v5568_v30, %v612_v34  ;;  %v4669_v47 = vcombine.low %v158_v27, %v162_v29 }
 0x162   :  { %v5046_v51 = vcombine.high %v534_v44, %v538_v45  ;;  %v5045_v60 = vcombine.low %v534_v44, %v538_v45  ;;  %v502_v42 = vld [vmem:[#allocation2 + $0xcd0] sm:$0xff] }
 0x163   :  { %v3243_v56 = vadd.f32 %v5558_v23, %v613_v46  ;;  %v506_v43 = vld [vmem:[#allocation2 + $0xcf0] sm:$0xff] }
 0x164   :  { %3555 = vmatpush2.bf16.msra.mxu0 %v4709_v52  ;;  %3596 = vmatpush2.bf16.msra.mxu1 %v4837_v53  ;;  %v398_v52 = vld [vmem:[#allocation2 + $0x990] sm:$0xff] }
 0x165   :  { %3556 = vmatprep.subr.bf16.mxu0 %v4702_v54  ;;  %3597 = vmatprep.subr.bf16.mxu1 %v4830_v55  ;;  %v402_v53 = vld [vmem:[#allocation2 + $0x9b0] sm:$0xff]  ;;  %v3284_v5 = vadd.f32 %v5560_v26, %v3243_v56 }
 0x166   :  { %v526_v54 = vld [vmem:[#allocation2 + $0xd90] sm:$0xff]  ;;  %v4910_v61 = vcombine.high %v398_v52, %v402_v53 }
 0x167   :  { %v530_v55 = vld [vmem:[#allocation2 + $0xdb0] sm:$0xff] }
 0x168   :  { %3557 = vmatpush2.bf16.msra.mxu0 %v4701_v62  ;;  %3598 = vmatpush2.bf16.msra.mxu1 %v4829_v63  ;;  %v3282_v62 = vadd.f32 %v5555_v21, %v3241_v50  ;;  %v5038_v63 = vcombine.high %v526_v54, %v530_v55  ;;  %v5037_v21 = vcombine.low %v526_v54, %v530_v55  ;;  %v494_v50 = vld [vmem:[#allocation2 + $0xc90] sm:$0xff] }
 0x169   :  { %3558 = vmatprep.subr.bf16.mxu0 %v4694_v0  ;;  %3599 = vmatprep.subr.bf16.mxu1 %v4822_v2  ;;  %v390_v0 = vld [vmem:[#allocation2 + $0x950] sm:$0xff] }
 0x16a   :  { %v4901_v29 = vcombine.low %v390_v0, %v394_v17  ;;  %v358_v56 = vld [vmem:[#allocation2 + $0x850] sm:$0xff] }
 0x16b   :  { %v354_v3 = vld [vmem:[#allocation2 + $0x830] sm:$0xff] }
 0x16c   :  { %3559 = vmatpush2.bf16.msra.mxu0 %v4693_v7  ;;  %3600 = vmatpush2.bf16.msra.mxu1 %v4821_v8  ;;  %v4909_v7 = vcombine.low %v398_v52, %v402_v53  ;;  %v5013_v53 = vcombine.low %v502_v42, %v506_v43  ;;  %v478_v4 = vld [vmem:[#allocation2 + $0xc10] sm:$0xff] }
 0x16d   :  { %3560 = vmatprep.subr.bf16.mxu0 %v4686_v9  ;;  %3601 = vmatprep.subr.bf16.mxu1 %v4814_v11  ;;  %v4902_v9 = vcombine.high %v390_v0, %v394_v17 }
 0x170   :  { %3561 = vmatpush2.bf16.msra.mxu0 %v4685_v18  ;;  %3602 = vmatpush2.bf16.msra.mxu1 %v4813_v19  ;;  %v386_v18 = vld [vmem:[#allocation2 + $0x930] sm:$0xff] }
 0x171   :  { %3562 = vmatprep.subr.bf16.mxu0 %v4678_v22  ;;  %3603 = vmatprep.subr.bf16.mxu1 %v4806_v25  ;;  %v510_v19 = vld [vmem:[#allocation2 + $0xd10] sm:$0xff]  ;;  %v4894_v34 = vcombine.high %v382_v15, %v386_v18  ;;  %v4893_v44 = vcombine.low %v382_v15, %v386_v18 }
 0x172   :  { %v514_v22 = vld [vmem:[#allocation2 + $0xd30] sm:$0xff] }
 0x173   :  { %v5021_v45 = vcombine.low %v510_v19, %v514_v22 }
 0x174   :  { %3563 = vmatpush2.bf16.msra.mxu0 %v4677_v35  ;;  %3604 = vmatpush2.bf16.msra.mxu1 %v4805_v36 }
 0x175   :  { %3564 = vmatprep.subr.bf16.mxu0 %v4670_v37  ;;  %3605 = vmatprep.subr.bf16.mxu1 %v4798_v41  ;;  %v5022_v37 = vcombine.high %v510_v19, %v514_v22  ;;  %v378_v41 = vld [vmem:[#allocation2 + $0x8f0] sm:$0xff] }
 0x176   :  { %v4886_v46 = vcombine.high %v374_v40, %v378_v41  ;;  %v4885_v52 = vcombine.low %v374_v40, %v378_v41  ;;  %v466_v19 = vld [vmem:[#allocation2 + $0xbb0] sm:$0xff] }
 0x177   :  { %v590_v22 = vld [vmem:[#allocation2 + $0xf90] sm:$0xff] }
 0x178   :  { %3565 = vmatpush2.bf16.msra.mxu0 %v4669_v47  ;;  %3606 = vmatpush2.bf16.msra.mxu1 %v4797_v48  ;;  %v5014_v47 = vcombine.high %v502_v42, %v506_v43  ;;  %v366_v48 = vld [vmem:[#allocation2 + $0x890] sm:$0xff] }
 0x179   :  { %3616 = vmatprep.subr.bf16.mxu0 %v4918_v49  ;;  %3657 = vmatprep.subr.bf16.mxu1 %v5046_v51  ;;  %v370_v49 = vld [vmem:[#allocation2 + $0x8b0] sm:$0xff] }
 0x17a   :  { %v498_v51 = vld [vmem:[#allocation2 + $0xcb0] sm:$0xff]  ;;  %v4878_v54 = vcombine.high %v366_v48, %v370_v49 }
 0x17b   :  { %v3322_v2 = vpop.f32.mrf.mxu0  ;;  %3567 = vmatmul.mubr.bf16.vlgmr.msra.gmra.mxu0 %v5516_v16  ;;  %v3363_v6 = vpop.f32.mrf.mxu1  ;;  %3608 = vmatmul.mubr.bf16.vlgmr.msra.gmra.mxu1 %v5521_v20  ;;  %v5006_v55 = vcombine.high %v494_v50, %v498_v51  ;;  %v446_v43 = vld [vmem:[#allocation2 + $0xb10] sm:$0xff] }
 0x17c   :  { %v3323_v23 = vadd.f32 %v3322_v2, %v3282_v62  ;;  %3617 = vmatpush1.bf16.msra.mxu0 %v4917_v57  ;;  %3658 = vmatpush1.bf16.msra.mxu1 %v5045_v60  ;;  %v362_v57 = vld [vmem:[#allocation2 + $0x870] sm:$0xff]  ;;  %v4877_v62 = vcombine.low %v366_v48, %v370_v49 }
 0x17d   :  { %v3324_v8 = vpop.f32.mrf.mxu0  ;;  %3618 = vmatprep.subr.bf16.mxu0 %v4910_v61  ;;  %v3365_v13 = vpop.f32.mrf.mxu1  ;;  %3659 = vmatprep.subr.bf16.mxu1 %v5038_v63  ;;  %v486_v60 = vld [vmem:[#allocation2 + $0xc50] sm:$0xff]  ;;  %v5005_v63 = vcombine.low %v494_v50, %v498_v51  ;;  %v4870_v0 = vcombine.high %v358_v56, %v362_v57 }
 0x17e   :  { %v3364_v11 = vadd.f32 %v3363_v6, %v3323_v23  ;;  %v3325_v12 = vadd.f32 %v3324_v8, %v3284_v5  ;;  %3648 = vmatprep.mubr.bf16.mxu0 %v5526_v28  ;;  %3689 = vmatprep.mubr.bf16.mxu1 %v5529_v31  ;;  %v490_v61 = vld [vmem:[#allocation2 + $0xc70] sm:$0xff]  ;;  %v4869_v23 = vcombine.low %v358_v56, %v362_v57 }
 0x17f   :  { %v3326_v26 = vpop.f32.mrf.mxu0  ;;  %v3367_v27 = vpop.f32.mrf.mxu1  ;;  %v4998_v17 = vcombine.high %v486_v60, %v490_v61  ;;  %v350_v2 = vld [vmem:[#allocation2 + $0x810] sm:$0xff]  ;;  %v4997_v6 = vcombine.low %v486_v60, %v490_v61 }
 0x180   :  { %v3862_v24 = vmax.f32 %v3364_v11, 0.0  ;;  %v3366_v25 = vadd.f32 %v3365_v13, %v3325_v12  ;;  %3619 = vmatpush1.bf16.msra.mxu0 %v4909_v7  ;;  %3660 = vmatpush1.bf16.msra.mxu1 %v5037_v21  ;;  %v482_v5 = vld [vmem:[#allocation2 + $0xc30] sm:$0xff]  ;;  %v4862_v7 = vcombine.high %v350_v2, %v354_v3  ;;  %v4861_v13 = vcombine.low %v350_v2, %v354_v3 }
 0x181   :  { %v3327_v32 = vpop.f32.mrf.mxu0  ;;  %3620 = vmatprep.subr.bf16.mxu0 %v4902_v9  ;;  %v3368_v36 = vpop.f32.mrf.mxu1  ;;  %3661 = vmatprep.subr.bf16.mxu1 %v5030_v14  ;;  %v4990_v8 = vcombine.high %v478_v4, %v482_v5  ;;  %v470_v21 = vld [vmem:[#allocation2 + $0xbd0] sm:$0xff]  ;;  %v4989_v14 = vcombine.low %v478_v4, %v482_v5 }
 0x182   :  { %3870 = vst [vmem:[%s5681_s8] sm:$0xff] %v3862_v24  ;;  %v3863_v35 = vmax.f32 %v3366_v25, 0.0  ;;  %v474_v9 = vld [vmem:[#allocation2 + $0xbf0] sm:$0xff] }
 0x183   :  { %v598_v11 = vld [vmem:[#allocation2 + $0xfd0] sm:$0xff]  ;;  %v4982_v15 = vcombine.high %v470_v21, %v474_v9  ;;  %v4981_v25 = vcombine.low %v470_v21, %v474_v9 }
 0x184   :  { %3871 = vst [vmem:[%s5681_s8 + $0x8] sm:$0xff] %v3863_v35  ;;  %3621 = vmatpush1.bf16.msra.mxu0 %v4901_v29  ;;  %3662 = vmatpush1.bf16.msra.mxu1 %v5029_v33  ;;  %v602_v12 = vld [vmem:[#allocation2 + $0xff0] sm:$0xff] }
 0x185   :  { %3622 = vmatprep.subr.bf16.mxu0 %v4894_v34  ;;  %3663 = vmatprep.subr.bf16.mxu1 %v5022_v37  ;;  %v5110_v18 = vcombine.high %v598_v11, %v602_v12  ;;  %v462_v26 = vld [vmem:[#allocation2 + $0xb90] sm:$0xff]  ;;  %v5109_v27 = vcombine.low %v598_v11, %v602_v12 }
 0x186   :  { %v594_v24 = vld [vmem:[#allocation2 + $0xfb0] sm:$0xff]  ;;  %v4974_v29 = vcombine.high %v462_v26, %v466_v19  ;;  %v4973_v37 = vcombine.low %v462_v26, %v466_v19 }
 0x187   :  { %v5102_v32 = vcombine.high %v590_v22, %v594_v24  ;;  %v454_v33 = vld [vmem:[#allocation2 + $0xb50] sm:$0xff]  ;;  %v5101_v40 = vcombine.low %v590_v22, %v594_v24  ;;  %v151_v24 = vld [vmem:[#allocation2 + $0x1d8] sm:$0xff] }
 0x188   :  { %3623 = vmatpush1.bf16.msra.mxu0 %v4893_v44  ;;  %3664 = vmatpush1.bf16.msra.mxu1 %v5021_v45  ;;  %v458_v34 = vld [vmem:[#allocation2 + $0xb70] sm:$0xff] }
 0x189   :  { %3624 = vmatprep.subr.bf16.mxu0 %v4886_v46  ;;  %3665 = vmatprep.subr.bf16.mxu1 %v5014_v47  ;;  %v582_v35 = vld [vmem:[#allocation2 + $0xf50] sm:$0xff]  ;;  %v4966_v41 = vcombine.high %v454_v33, %v458_v34  ;;  %v4965_v47 = vcombine.low %v454_v33, %v458_v34 }
 0x18a   :  { %v586_v36 = vld [vmem:[#allocation2 + $0xf70] sm:$0xff] }
 0x18b   :  { %v5094_v42 = vcombine.high %v582_v35, %v586_v36  ;;  %v450_v44 = vld [vmem:[#allocation2 + $0xb30] sm:$0xff]  ;;  %v5093_v48 = vcombine.low %v582_v35, %v586_v36  ;;  %v143_v36 = vld [vmem:[#allocation2 + $0x198] sm:$0xff] }
 0x18c   :  { %3625 = vmatpush1.bf16.msra.mxu0 %v4885_v52  ;;  %3666 = vmatpush1.bf16.msra.mxu1 %v5013_v53  ;;  %v574_v45 = vld [vmem:[#allocation2 + $0xf10] sm:$0xff]  ;;  %v4958_v49 = vcombine.high %v446_v43, %v450_v44 }
 0x18d   :  { %3626 = vmatprep.subr.bf16.mxu0 %v4878_v54  ;;  %3667 = vmatprep.subr.bf16.mxu1 %v5006_v55  ;;  %v578_v46 = vld [vmem:[#allocation2 + $0xf30] sm:$0xff]  ;;  %v4957_v55 = vcombine.low %v446_v43, %v450_v44 }
 0x18e   :  { %v5086_v50 = vcombine.high %v574_v45, %v578_v46  ;;  %v438_v51 = vld [vmem:[#allocation2 + $0xad0] sm:$0xff]  ;;  %v5085_v56 = vcombine.low %v574_v45, %v578_v46  ;;  %v135_v46 = vld [vmem:[#allocation2 + $0x158] sm:$0xff] }
 0x18f   :  { %v442_v52 = vld [vmem:[#allocation2 + $0xaf0] sm:$0xff] }
 0x190   :  { %3627 = vmatpush1.bf16.msra.mxu0 %v4877_v62  ;;  %3668 = vmatpush1.bf16.msra.mxu1 %v5005_v63  ;;  %v566_v53 = vld [vmem:[#allocation2 + $0xed0] sm:$0xff]  ;;  %v4950_v57 = vcombine.high %v438_v51, %v442_v52 }
 0x191   :  { %3628 = vmatprep.subr.bf16.mxu0 %v4870_v0  ;;  %3669 = vmatprep.subr.bf16.mxu1 %v4998_v17  ;;  %v570_v54 = vld [vmem:[#allocation2 + $0xef0] sm:$0xff]  ;;  %v4949_v17 = vcombine.low %v438_v51, %v442_v52 }
 0x192   :  { %v5078_v60 = vcombine.high %v566_v53, %v570_v54  ;;  %v430_v61 = vld [vmem:[#allocation2 + $0xa90] sm:$0xff]  ;;  %v5077_v2 = vcombine.low %v566_v53, %v570_v54 }
 0x193   :  { %v434_v62 = vld [vmem:[#allocation2 + $0xab0] sm:$0xff] }
 0x194   :  { %3629 = vmatpush1.bf16.msra.mxu0 %v4869_v23  ;;  %3670 = vmatpush1.bf16.msra.mxu1 %v4997_v6  ;;  %v558_v63 = vld [vmem:[#allocation2 + $0xe90] sm:$0xff]  ;;  %v4942_v3 = vcombine.high %v430_v61, %v434_v62 }
 0x195   :  { %3630 = vmatprep.subr.bf16.mxu0 %v4862_v7  ;;  %3671 = vmatprep.subr.bf16.mxu1 %v4990_v8  ;;  %v562_v0 = vld [vmem:[#allocation2 + $0xeb0] sm:$0xff]  ;;  %v4941_v8 = vcombine.low %v430_v61, %v434_v62  ;;  %v131_v61 = vld [vmem:[#allocation2 + $0x138] sm:$0xff] }
 0x196   :  { %v5070_v4 = vcombine.high %v558_v63, %v562_v0  ;;  %v422_v5 = vld [vmem:[#allocation2 + $0xa50] sm:$0xff]  ;;  %v5069_v21 = vcombine.low %v558_v63, %v562_v0  ;;  %v255_v63 = vld [vmem:[#allocation2 + $0x518] sm:$0xff] }
 0x197   :  { %v426_v23 = vld [vmem:[#allocation2 + $0xa70] sm:$0xff]  ;;  %v259_v0 = vld [vmem:[#allocation2 + $0x538] sm:$0xff] }
 0x198   :  { %3631 = vmatpush1.bf16.msra.mxu0 %v4861_v13  ;;  %3672 = vmatpush1.bf16.msra.mxu1 %v4989_v14  ;;  %v550_v6 = vld [vmem:[#allocation2 + $0xe50] sm:$0xff]  ;;  %v4934_v9 = vcombine.high %v422_v5, %v426_v23 }
 0x199   :  { %3632 = vmatprep.subr.bf16.mxu0 %v4982_v15  ;;  %3673 = vmatprep.subr.bf16.mxu1 %v5110_v18  ;;  %v554_v7 = vld [vmem:[#allocation2 + $0xe70] sm:$0xff]  ;;  %v4933_v18 = vcombine.low %v422_v5, %v426_v23 }
 0x19a   :  { %v5062_v11 = vcombine.high %v550_v6, %v554_v7  ;;  %v414_v12 = vld [vmem:[#allocation2 + $0xa10] sm:$0xff]  ;;  %v5061_v26 = vcombine.low %v550_v6, %v554_v7  ;;  %v4768_v6 = vcombine.high %v255_v63, %v259_v0  ;;  %v119_v7 = vld [vmem:[#allocation2 + $0xd8] sm:$0xff] }
 0x19b   :  { %v418_v13 = vld [vmem:[#allocation2 + $0xa30] sm:$0xff] }
 0x19c   :  { %3633 = vmatpush2.bf16.msra.mxu0 %v4981_v25  ;;  %3674 = vmatpush2.bf16.msra.mxu1 %v5109_v27  ;;  %v542_v14 = vld [vmem:[#allocation2 + $0xe10] sm:$0xff]  ;;  %v4926_v19 = vcombine.high %v414_v12, %v418_v13  ;;  %v155_v25 = vld [vmem:[#allocation2 + $0x1f8] sm:$0xff] }
 0x19d   :  { %3634 = vmatprep.subr.bf16.mxu0 %v4974_v29  ;;  %3675 = vmatprep.subr.bf16.mxu1 %v5102_v32  ;;  %v546_v15 = vld [vmem:[#allocation2 + $0xe30] sm:$0xff]  ;;  %v279_v27 = vld [vmem:[#allocation2 + $0x5d8] sm:$0xff]  ;;  %v4925_v32 = vcombine.low %v414_v12, %v418_v13  ;;  %v4664_v34 = vcombine.high %v151_v24, %v155_v25 }
 0x19e   :  { %v5054_v22 = vcombine.high %v542_v14, %v546_v15  ;;  %v283_v29 = vld [vmem:[#allocation2 + $0x5f8] sm:$0xff]  ;;  %v5053_v33 = vcombine.low %v542_v14, %v546_v15 }
 0x19f   :  { %v4792_v35 = vcombine.high %v279_v27, %v283_v29  ;;  %v4791_v43 = vcombine.low %v279_v27, %v283_v29  ;;  %v111_v13 = vld [vmem:[#allocation2 + $0x98] sm:$0xff] }
 0x1a0   :  { %3635 = vmatpush2.bf16.msra.mxu0 %v4973_v37  ;;  %3676 = vmatpush2.bf16.msra.mxu1 %v5101_v40  ;;  %v147_v37 = vld [vmem:[#allocation2 + $0x1b8] sm:$0xff] }
 0x1a1   :  { %3636 = vmatprep.subr.bf16.mxu0 %v4966_v41  ;;  %3677 = vmatprep.subr.bf16.mxu1 %v5094_v42  ;;  %v271_v40 = vld [vmem:[#allocation2 + $0x598] sm:$0xff]  ;;  %v4663_v42 = vcombine.low %v151_v24, %v155_v25  ;;  %v4656_v44 = vcombine.high %v143_v36, %v147_v37  ;;  %v4655_v52 = vcombine.low %v143_v36, %v147_v37 }
 0x1a2   :  { %v275_v41 = vld [vmem:[#allocation2 + $0x5b8] sm:$0xff] }
 0x1a3   :  { %v4784_v45 = vcombine.high %v271_v40, %v275_v41  ;;  %v4783_v54 = vcombine.low %v271_v40, %v275_v41  ;;  %v115_v14 = vld [vmem:[#allocation2 + $0xb8] sm:$0xff] }
 0x1a4   :  { %3637 = vmatpush2.bf16.msra.mxu0 %v4965_v47  ;;  %3678 = vmatpush2.bf16.msra.mxu1 %v5093_v48  ;;  %v139_v47 = vld [vmem:[#allocation2 + $0x178] sm:$0xff] }
 0x1a5   :  { %3638 = vmatprep.subr.bf16.mxu0 %v4958_v49  ;;  %3679 = vmatprep.subr.bf16.mxu1 %v5086_v50  ;;  %v263_v49 = vld [vmem:[#allocation2 + $0x558] sm:$0xff] }
 0x1a6   :  { %v267_v50 = vld [vmem:[#allocation2 + $0x578] sm:$0xff] }
 0x1a7   :  { %v239_v15 = vld [vmem:[#allocation2 + $0x498] sm:$0xff] }
 0x1a8   :  { %3639 = vmatpush2.bf16.msra.mxu0 %v4957_v55  ;;  %3680 = vmatpush2.bf16.msra.mxu1 %v5085_v56  ;;  %v4648_v55 = vcombine.high %v135_v46, %v139_v47  ;;  %v103_v25 = vld [vmem:[#allocation2 + $0x58] sm:$0xff] }
 0x1a9   :  { %3640 = vmatprep.subr.bf16.mxu0 %v4950_v57  ;;  %3681 = vmatprep.subr.bf16.mxu1 %v5078_v60  ;;  %v4776_v57 = vcombine.high %v263_v49, %v267_v50  ;;  %v127_v60 = vld [vmem:[#allocation2 + $0x118] sm:$0xff] }
 0x1aa   :  { %v4640_v5 = vcombine.high %v127_v60, %v131_v61  ;;  %v107_v27 = vld [vmem:[#allocation2 + $0x78] sm:$0xff] }
 0x1ab   :  { %v231_v29 = vld [vmem:[#allocation2 + $0x458] sm:$0xff] }
 0x1ac   :  { %3641 = vmatpush2.bf16.msra.mxu0 %v4949_v17  ;;  %3682 = vmatpush2.bf16.msra.mxu1 %v5077_v2  ;;  %v4647_v2 = vcombine.low %v135_v46, %v139_v47  ;;  %v95_v37 = vld [vmem:[#allocation2 + $0x18] sm:$0xff] }
 0x1ad   :  { %3642 = vmatprep.subr.bf16.mxu0 %v4942_v3  ;;  %3683 = vmatprep.subr.bf16.mxu1 %v5070_v4  ;;  %v4775_v4 = vcombine.low %v263_v49, %v267_v50  ;;  %v99_v40 = vld [vmem:[#allocation2 + $0x38] sm:$0xff] }
 0x1ae   :  { %v223_v41 = vld [vmem:[#allocation2 + $0x418] sm:$0xff] }
 0x1af   :  { %v215_v47 = vld [vmem:[#allocation2 + $0x3d8] sm:$0xff] }
 0x1b0   :  { %3643 = vmatpush2.bf16.msra.mxu0 %v4941_v8  ;;  %3684 = vmatpush2.bf16.msra.mxu1 %v5069_v21  ;;  %v123_v8 = vld [vmem:[#allocation2 + $0xf8] sm:$0xff] }
 0x1b1   :  { %3644 = vmatprep.subr.bf16.mxu0 %v4934_v9  ;;  %3685 = vmatprep.subr.bf16.mxu1 %v5062_v11  ;;  %v247_v21 = vld [vmem:[#allocation2 + $0x4d8] sm:$0xff]  ;;  %v4639_v9 = vcombine.low %v127_v60, %v131_v61  ;;  %v4632_v11 = vcombine.high %v119_v7, %v123_v8 }
 0x1b2   :  { %v219_v49 = vld [vmem:[#allocation2 + $0x3f8] sm:$0xff] }
 0x1b3   :  { %v343_v50 = vld [vmem:[#allocation2 + $0x7d8] sm:$0xff] }
 0x1b4   :  { %3645 = vmatpush2.bf16.msra.mxu0 %v4933_v18  ;;  %3686 = vmatpush2.bf16.msra.mxu1 %v5061_v26  ;;  %v243_v18 = vld [vmem:[#allocation2 + $0x4b8] sm:$0xff]  ;;  %v4631_v26 = vcombine.low %v119_v7, %v123_v8 }
 0x1b5   :  { %3646 = vmatprep.subr.bf16.mxu0 %v4926_v19  ;;  %3687 = vmatprep.subr.bf16.mxu1 %v5054_v22  ;;  %v4624_v22 = vcombine.high %v111_v13, %v115_v14  ;;  %v4752_v24 = vcombine.high %v239_v15, %v243_v18  ;;  %v207_v61 = vld [vmem:[#allocation2 + $0x398] sm:$0xff] }
 0x1b6   :  { %v331_v7 = vld [vmem:[#allocation2 + $0x778] sm:$0xff] }
 0x1b8   :  { %3647 = vmatpush2.bf16.msra.mxu0 %v4925_v32  ;;  %3688 = vmatpush2.bf16.msra.mxu1 %v5053_v33  ;;  %v235_v32 = vld [vmem:[#allocation2 + $0x478] sm:$0xff]  ;;  %v4623_v33 = vcombine.low %v111_v13, %v115_v14 }
 0x1b9   :  { %3698 = vmatprep.subr.bf16.mxu0 %v4664_v34  ;;  %3739 = vmatprep.subr.bf16.mxu1 %v4792_v35  ;;  %v4751_v34 = vcombine.low %v239_v15, %v243_v18  ;;  %v4616_v35 = vcombine.high %v103_v25, %v107_v27  ;;  %v4744_v36 = vcombine.high %v231_v29, %v235_v32  ;;  %v323_v13 = vld [vmem:[#allocation2 + $0x738] sm:$0xff] }
 0x1bb   :  { %v5587_v48 = vpop.f32.mrf.mxu0  ;;  %3649 = vmatmul.mubr.bf16.vlgmr.msra.gmra.mxu0 %v5540_v38  ;;  %v5590_v51 = vpop.f32.mrf.mxu1  ;;  %3690 = vmatmul.mubr.bf16.vlgmr.msra.gmra.mxu1 %v5542_v39 }
 0x1bc   :  { %3699 = vmatpush1.bf16.msra.mxu0 %v4663_v42  ;;  %3740 = vmatpush1.bf16.msra.mxu1 %v4791_v43  ;;  %v227_v42 = vld [vmem:[#allocation2 + $0x438] sm:$0xff]  ;;  %v4615_v43 = vcombine.low %v103_v25, %v107_v27 }
 0x1bd   :  { %v5593_v53 = vpop.f32.mrf.mxu0  ;;  %3700 = vmatprep.subr.bf16.mxu0 %v4656_v44  ;;  %v5595_v56 = vpop.f32.mrf.mxu1  ;;  %3741 = vmatprep.subr.bf16.mxu1 %v4784_v45  ;;  %v4743_v44 = vcombine.low %v231_v29, %v235_v32  ;;  %v4608_v45 = vcombine.high %v95_v37, %v99_v40  ;;  %v4736_v46 = vcombine.high %v223_v41, %v227_v42  ;;  %v315_v25 = vld [vmem:[#allocation2 + $0x6f8] sm:$0xff] }
 0x1be   :  { %3730 = vmatprep.mubr.bf16.mxu0 %v5504_v58  ;;  %3771 = vmatprep.mubr.bf16.mxu1 %v5506_v59  ;;  %v251_v58 = vld [vmem:[#allocation2 + $0x4f8] sm:$0xff]  ;;  %v4767_v59 = vcombine.low %v255_v63, %v259_v0 }
 0x1bf   :  { %v3408_v62 = vpop.f32.mrf.mxu0  ;;  %v3449_v17 = vpop.f32.mrf.mxu1  ;;  %v4760_v12 = vcombine.high %v247_v21, %v251_v58  ;;  %v4759_v19 = vcombine.low %v247_v21, %v251_v58  ;;  %v335_v63 = vld [vmem:[#allocation2 + $0x798] sm:$0xff] }
 0x1c0   :  { %3701 = vmatpush1.bf16.msra.mxu0 %v4655_v52  ;;  %3742 = vmatpush1.bf16.msra.mxu1 %v4783_v54  ;;  %v347_v52 = vld [vmem:[#allocation2 + $0x7f8] sm:$0xff]  ;;  %v4607_v54 = vcombine.low %v95_v37, %v99_v40  ;;  %v4727_v17 = vcombine.low %v215_v47, %v219_v49 }
 0x1c1   :  { %v3409_v3 = vpop.f32.mrf.mxu0  ;;  %3702 = vmatprep.subr.bf16.mxu0 %v4648_v55  ;;  %v3450_v23 = vpop.f32.mrf.mxu1  ;;  %3743 = vmatprep.subr.bf16.mxu1 %v4776_v57  ;;  %v4735_v55 = vcombine.low %v223_v41, %v227_v42  ;;  %v4728_v57 = vcombine.high %v215_v47, %v219_v49  ;;  %v4856_v60 = vcombine.high %v343_v50, %v347_v52  ;;  %v211_v62 = vld [vmem:[#allocation2 + $0x3b8] sm:$0xff] }
 0x1c2   :  { %v339_v0 = vld [vmem:[#allocation2 + $0x7b8] sm:$0xff]  ;;  %v4720_v3 = vcombine.high %v207_v61, %v211_v62  ;;  %v4719_v8 = vcombine.low %v207_v61, %v211_v62 }
 0x1c3   :  { %v203_v23 = vld [vmem:[#allocation2 + $0x378] sm:$0xff]  ;;  %v4847_v21 = vcombine.low %v335_v63, %v339_v0 }
 0x1c4   :  { %3703 = vmatpush1.bf16.msra.mxu0 %v4647_v2  ;;  %3744 = vmatpush1.bf16.msra.mxu1 %v4775_v4  ;;  %v4855_v2 = vcombine.low %v343_v50, %v347_v52  ;;  %v4848_v4 = vcombine.high %v335_v63, %v339_v0  ;;  %v307_v37 = vld [vmem:[#allocation2 + $0x6b8] sm:$0xff]  ;;  %v620_v63 = vsub.s32 3, %v5565_v10 }
 0x1c5   :  { %3704 = vmatprep.subr.bf16.mxu0 %v4640_v5  ;;  %3745 = vmatprep.subr.bf16.mxu1 %v4768_v6  ;;  %v199_v5 = vld [vmem:[#allocation2 + $0x358] sm:$0xff] }
 0x1c6   :  { %v327_v6 = vld [vmem:[#allocation2 + $0x758] sm:$0xff]  ;;  %v4712_v58 = vcombine.high %v199_v5, %v203_v23  ;;  %v4711_v14 = vcombine.low %v199_v5, %v203_v23 }
 0x1c7   :  { %v4839_v15 = vcombine.low %v327_v6, %v331_v7  ;;  %v299_v47 = vld [vmem:[#allocation2 + $0x678] sm:$0xff] }
 0x1c8   :  { %3705 = vmatpush1.bf16.msra.mxu0 %v4639_v9  ;;  %3746 = vmatpush1.bf16.msra.mxu1 %v4767_v59  ;;  %v4840_v9 = vcombine.high %v327_v6, %v331_v7  ;;  %v191_v59 = vld [vmem:[#allocation2 + $0x318] sm:$0xff] }
 0x1c9   :  { %3706 = vmatprep.subr.bf16.mxu0 %v4632_v11  ;;  %3747 = vmatprep.subr.bf16.mxu1 %v4760_v12  ;;  %v195_v11 = vld [vmem:[#allocation2 + $0x338] sm:$0xff] }
 0x1ca   :  { %v319_v12 = vld [vmem:[#allocation2 + $0x718] sm:$0xff]  ;;  %v4704_v18 = vcombine.high %v191_v59, %v195_v11  ;;  %v4703_v27 = vcombine.low %v191_v59, %v195_v11 }
 0x1cb   :  { %v4831_v29 = vcombine.low %v319_v12, %v323_v13  ;;  %v287_v61 = vld [vmem:[#allocation2 + $0x618] sm:$0xff] }
 0x1cc   :  { %3707 = vmatpush1.bf16.msra.mxu0 %v4631_v26  ;;  %3748 = vmatpush1.bf16.msra.mxu1 %v4759_v19  ;;  %v4832_v26 = vcombine.high %v319_v12, %v323_v13  ;;  %v183_v19 = vld [vmem:[#allocation2 + $0x2d8] sm:$0xff] }
 0x1cd   :  { %3708 = vmatprep.subr.bf16.mxu0 %v4624_v22  ;;  %3749 = vmatprep.subr.bf16.mxu1 %v4752_v24  ;;  %v187_v22 = vld [vmem:[#allocation2 + $0x2f8] sm:$0xff] }
 0x1ce   :  { %v311_v24 = vld [vmem:[#allocation2 + $0x6d8] sm:$0xff]  ;;  %v4696_v32 = vcombine.high %v183_v19, %v187_v22  ;;  %v4695_v40 = vcombine.low %v183_v19, %v187_v22 }
 0x1cf   :  { %v4823_v41 = vcombine.low %v311_v24, %v315_v25  ;;  %v291_v62 = vld [vmem:[#allocation2 + $0x638] sm:$0xff] }
 0x1d0   :  { %3709 = vmatpush1.bf16.msra.mxu0 %v4623_v33  ;;  %3750 = vmatpush1.bf16.msra.mxu1 %v4751_v34  ;;  %v4824_v33 = vcombine.high %v311_v24, %v315_v25  ;;  %v175_v34 = vld [vmem:[#allocation2 + $0x298] sm:$0xff] }
 0x1d1   :  { %3710 = vmatprep.subr.bf16.mxu0 %v4616_v35  ;;  %3751 = vmatprep.subr.bf16.mxu1 %v4744_v36  ;;  %v179_v35 = vld [vmem:[#allocation2 + $0x2b8] sm:$0xff] }
 0x1d2   :  { %v303_v36 = vld [vmem:[#allocation2 + $0x698] sm:$0xff]  ;;  %v4688_v42 = vcombine.high %v175_v34, %v179_v35  ;;  %v4687_v49 = vcombine.low %v175_v34, %v179_v35 }
 0x1d3   :  { %v4815_v50 = vcombine.low %v303_v36, %v307_v37  ;;  %v407_v5 = vld [vmem:[#allocation2 + $0x9d8] sm:$0xff] }
 0x1d4   :  { %3711 = vmatpush1.bf16.msra.mxu0 %v4615_v43  ;;  %3752 = vmatpush1.bf16.msra.mxu1 %v4743_v44  ;;  %v4816_v43 = vcombine.high %v303_v36, %v307_v37  ;;  %v167_v44 = vld [vmem:[#allocation2 + $0x258] sm:$0xff] }
 0x1d5   :  { %3712 = vmatprep.subr.bf16.mxu0 %v4608_v45  ;;  %3753 = vmatprep.subr.bf16.mxu1 %v4736_v46  ;;  %v171_v45 = vld [vmem:[#allocation2 + $0x278] sm:$0xff] }
 0x1d6   :  { %v295_v46 = vld [vmem:[#allocation2 + $0x658] sm:$0xff]  ;;  %v4680_v52 = vcombine.high %v167_v44, %v171_v45  ;;  %v4679_v0 = vcombine.low %v167_v44, %v171_v45 }
 0x1d7   :  { %v411_v23 = vld [vmem:[#allocation2 + $0x9f8] sm:$0xff] }
 0x1d8   :  { %3713 = vmatpush1.bf16.msra.mxu0 %v4607_v54  ;;  %3754 = vmatpush1.bf16.msra.mxu1 %v4735_v55  ;;  %v616_v54 = vsub.s32 2, %v5565_v10  ;;  %v4808_v55 = vcombine.high %v295_v46, %v299_v47  ;;  %v535_v6 = vld [vmem:[#allocation2 + $0xdd8] sm:$0xff] }
 0x1d9   :  { %3714 = vmatprep.subr.bf16.mxu0 %v4728_v57  ;;  %3755 = vmatprep.subr.bf16.mxu1 %v4856_v60  ;;  %v159_v57 = vld [vmem:[#allocation2 + $0x218] sm:$0xff] }
 0x1da   :  { %v163_v60 = vld [vmem:[#allocation2 + $0x238] sm:$0xff] }
 0x1db   :  { %v539_v7 = vld [vmem:[#allocation2 + $0xdf8] sm:$0xff] }
 0x1dc   :  { %3715 = vmatpush2.bf16.msra.mxu0 %v4727_v17  ;;  %3756 = vmatpush2.bf16.msra.mxu1 %v4855_v2  ;;  %v4807_v17 = vcombine.low %v295_v46, %v299_v47  ;;  %v4672_v2 = vcombine.high %v159_v57, %v163_v60  ;;  %v5048_v11 = vcombine.high %v535_v6, %v539_v7  ;;  %v399_v12 = vld [vmem:[#allocation2 + $0x998] sm:$0xff] }
 0x1dd   :  { %3716 = vmatprep.subr.bf16.mxu0 %v4720_v3  ;;  %3757 = vmatprep.subr.bf16.mxu1 %v4848_v4  ;;  %v617_v3 = vrot.slane %v5568_v30, %v616_v54  ;;  %v4800_v4 = vcombine.high %v287_v61, %v291_v62  ;;  %v403_v13 = vld [vmem:[#allocation2 + $0x9b8] sm:$0xff] }
 0x1de   :  { %v4912_v19 = vcombine.high %v399_v12, %v403_v13  ;;  %v391_v25 = vld [vmem:[#allocation2 + $0x958] sm:$0xff]  ;;  %v4911_v35 = vcombine.low %v399_v12, %v403_v13 }
 0x1df   :  { %v3405_v59 = vadd.f32 %v5587_v48, %v617_v3  ;;  %v395_v48 = vld [vmem:[#allocation2 + $0x978] sm:$0xff] }
 0x1e0   :  { %3717 = vmatpush2.bf16.msra.mxu0 %v4719_v8  ;;  %3758 = vmatpush2.bf16.msra.mxu1 %v4847_v21  ;;  %v621_v8 = vrot.slane %v5568_v30, %v620_v63  ;;  %v4671_v21 = vcombine.low %v159_v57, %v163_v60  ;;  %v5047_v30 = vcombine.low %v535_v6, %v539_v7  ;;  %v387_v44 = vld [vmem:[#allocation2 + $0x938] sm:$0xff] }
 0x1e1   :  { %3718 = vmatprep.subr.bf16.mxu0 %v4712_v58  ;;  %3759 = vmatprep.subr.bf16.mxu1 %v4840_v9  ;;  %v4799_v58 = vcombine.low %v287_v61, %v291_v62  ;;  %v4920_v9 = vcombine.high %v407_v5, %v411_v23  ;;  %v3446_v22 = vadd.f32 %v5590_v51, %v3405_v59  ;;  %v511_v45 = vld [vmem:[#allocation2 + $0xd18] sm:$0xff] }
 0x1e2   :  { %v4904_v37 = vcombine.high %v391_v25, %v395_v48  ;;  %v515_v46 = vld [vmem:[#allocation2 + $0xd38] sm:$0xff] }
 0x1e3   :  { %v375_v60 = vld [vmem:[#allocation2 + $0x8d8] sm:$0xff] }
 0x1e4   :  { %3719 = vmatpush2.bf16.msra.mxu0 %v4711_v14  ;;  %3760 = vmatpush2.bf16.msra.mxu1 %v4839_v15  ;;  %v527_v14 = vld [vmem:[#allocation2 + $0xd98] sm:$0xff] }
 0x1e5   :  { %3720 = vmatprep.subr.bf16.mxu0 %v4704_v18  ;;  %3761 = vmatprep.subr.bf16.mxu1 %v4832_v26  ;;  %v531_v15 = vld [vmem:[#allocation2 + $0xdb8] sm:$0xff]  ;;  %v3407_v18 = vadd.f32 %v5593_v53, %v621_v8  ;;  %v4919_v26 = vcombine.low %v407_v5, %v411_v23 }
 0x1e6   :  { %v5040_v24 = vcombine.high %v527_v14, %v531_v15  ;;  %v5039_v51 = vcombine.low %v527_v14, %v531_v15  ;;  %v379_v61 = vld [vmem:[#allocation2 + $0x8f8] sm:$0xff] }
 0x1e7   :  { %v503_v62 = vld [vmem:[#allocation2 + $0xcd8] sm:$0xff]  ;;  %v4887_v7 = vcombine.low %v375_v60, %v379_v61 }
 0x1e8   :  { %3721 = vmatpush2.bf16.msra.mxu0 %v4703_v27  ;;  %3762 = vmatpush2.bf16.msra.mxu1 %v4831_v29  ;;  %v519_v29 = vld [vmem:[#allocation2 + $0xd58] sm:$0xff] }
 0x1e9   :  { %3722 = vmatprep.subr.bf16.mxu0 %v4696_v32  ;;  %3763 = vmatprep.subr.bf16.mxu1 %v4824_v33  ;;  %v523_v32 = vld [vmem:[#allocation2 + $0xd78] sm:$0xff]  ;;  %v3448_v33 = vadd.f32 %v5595_v56, %v3407_v18 }
 0x1ea   :  { %v5031_v54 = vcombine.low %v519_v29, %v523_v32  ;;  %v507_v63 = vld [vmem:[#allocation2 + $0xcf8] sm:$0xff] }
 0x1eb   :  { %v5016_v3 = vcombine.high %v503_v62, %v507_v63  ;;  %v371_v5 = vld [vmem:[#allocation2 + $0x8b8] sm:$0xff]  ;;  %v5015_v8 = vcombine.low %v503_v62, %v507_v63 }
 0x1ec   :  { %3723 = vmatpush2.bf16.msra.mxu0 %v4695_v40  ;;  %3764 = vmatpush2.bf16.msra.mxu1 %v4823_v41  ;;  %v495_v23 = vld [vmem:[#allocation2 + $0xc98] sm:$0xff] }
 0x1ed   :  { %3724 = vmatprep.subr.bf16.mxu0 %v4688_v42  ;;  %3765 = vmatprep.subr.bf16.mxu1 %v4816_v43  ;;  %v383_v43 = vld [vmem:[#allocation2 + $0x918] sm:$0xff] }
 0x1ee   :  { %v499_v6 = vld [vmem:[#allocation2 + $0xcb8] sm:$0xff] }
 0x1ef   :  { %v363_v59 = vld [vmem:[#allocation2 + $0x878] sm:$0xff]  ;;  %v5007_v14 = vcombine.low %v495_v23, %v499_v6 }
 0x1f0   :  { %3725 = vmatpush2.bf16.msra.mxu0 %v4687_v49  ;;  %3766 = vmatpush2.bf16.msra.mxu1 %v4815_v50  ;;  %v4903_v50 = vcombine.low %v391_v25, %v395_v48  ;;  %v491_v12 = vld [vmem:[#allocation2 + $0xc78] sm:$0xff] }
 0x1f1   :  { %3726 = vmatprep.subr.bf16.mxu0 %v4680_v52  ;;  %3767 = vmatprep.subr.bf16.mxu1 %v4808_v55  ;;  %v4896_v55 = vcombine.high %v383_v43, %v387_v44 }
 0x1f4   :  { %3727 = vmatpush2.bf16.msra.mxu0 %v4679_v0  ;;  %3768 = vmatpush2.bf16.msra.mxu1 %v4807_v17  ;;  %v4895_v0 = vcombine.low %v383_v43, %v387_v44  ;;  %v5023_v17 = vcombine.low %v511_v45, %v515_v46 }
 0x1f5   :  { %3728 = vmatprep.subr.bf16.mxu0 %v4672_v2  ;;  %3769 = vmatprep.subr.bf16.mxu1 %v4800_v4  ;;  %v4888_v2 = vcombine.high %v375_v60, %v379_v61  ;;  %v367_v4 = vld [vmem:[#allocation2 + $0x898] sm:$0xff] }
 0x1f6   :  { %v4879_v13 = vcombine.low %v367_v4, %v371_v5  ;;  %v575_v60 = vld [vmem:[#allocation2 + $0xf18] sm:$0xff] }
 0x1f7   :  { %v579_v61 = vld [vmem:[#allocation2 + $0xf38] sm:$0xff] }
 0x1f8   :  { %3729 = vmatpush2.bf16.msra.mxu0 %v4671_v21  ;;  %3770 = vmatpush2.bf16.msra.mxu1 %v4799_v58  ;;  %v4880_v21 = vcombine.high %v367_v4, %v371_v5  ;;  %v5008_v58 = vcombine.high %v495_v23, %v499_v6  ;;  %v567_v4 = vld [vmem:[#allocation2 + $0xed8] sm:$0xff]  ;;  %v5087_v6 = vcombine.low %v575_v60, %v579_v61 }
 0x1f9   :  { %3780 = vmatprep.subr.bf16.mxu0 %v4920_v9  ;;  %3821 = vmatprep.subr.bf16.mxu1 %v5048_v11  ;;  %v359_v9 = vld [vmem:[#allocation2 + $0x858] sm:$0xff] }
 0x1fa   :  { %v487_v11 = vld [vmem:[#allocation2 + $0xc58] sm:$0xff]  ;;  %v4872_v15 = vcombine.high %v359_v9, %v363_v59 }
 0x1fb   :  { %v3486_v27 = vpop.f32.mrf.mxu0  ;;  %3731 = vmatmul.mubr.bf16.vlgmr.msra.gmra.mxu0 %v5516_v16  ;;  %v3527_v34 = vpop.f32.mrf.mxu1  ;;  %3772 = vmatmul.mubr.bf16.vlgmr.msra.gmra.mxu1 %v5521_v20  ;;  %v5032_v16 = vcombine.high %v519_v29, %v523_v32  ;;  %v5000_v18 = vcombine.high %v487_v11, %v491_v12  ;;  %v4999_v25 = vcombine.low %v487_v11, %v491_v12  ;;  %v471_v29 = vld [vmem:[#allocation2 + $0xbd8] sm:$0xff] }
 0x1fc   :  { %v3487_v53 = vadd.f32 %v3486_v27, %v3446_v22  ;;  %3781 = vmatpush1.bf16.msra.mxu0 %v4919_v26  ;;  %3822 = vmatpush1.bf16.msra.mxu1 %v5047_v30  ;;  %v351_v26 = vld [vmem:[#allocation2 + $0x818] sm:$0xff] }
 0x1fd   :  { %v3488_v36 = vpop.f32.mrf.mxu0  ;;  %3782 = vmatprep.subr.bf16.mxu0 %v4912_v19  ;;  %v3529_v42 = vpop.f32.mrf.mxu1  ;;  %3823 = vmatprep.subr.bf16.mxu1 %v5040_v24  ;;  %v355_v30 = vld [vmem:[#allocation2 + $0x838] sm:$0xff]  ;;  %v4871_v24 = vcombine.low %v359_v9, %v363_v59 }
 0x1fe   :  { %v3528_v40 = vadd.f32 %v3527_v34, %v3487_v53  ;;  %v3489_v41 = vadd.f32 %v3488_v36, %v3448_v33  ;;  %3812 = vmatprep.mubr.bf16.mxu0 %v5526_v28  ;;  %3853 = vmatprep.mubr.bf16.mxu1 %v5529_v31  ;;  %v5024_v31 = vcombine.high %v511_v45, %v515_v46  ;;  %v479_v19 = vld [vmem:[#allocation2 + $0xc18] sm:$0xff] }
 0x1ff   :  { %v3490_v56 = vpop.f32.mrf.mxu0  ;;  %v3531_v49 = vpop.f32.mrf.mxu1  ;;  %v483_v22 = vld [vmem:[#allocation2 + $0xc38] sm:$0xff]  ;;  %v4864_v48 = vcombine.high %v351_v26, %v355_v30  ;;  %v4863_v34 = vcombine.low %v351_v26, %v355_v30 }
 0x200   :  { %v5611_v20 = vmax.f32 %v3528_v40, 0.0  ;;  %v3530_v47 = vadd.f32 %v3529_v42, %v3489_v41  ;;  %3783 = vmatpush1.bf16.msra.mxu0 %v4911_v35  ;;  %3824 = vmatpush1.bf16.msra.mxu1 %v5039_v51  ;;  %v4992_v27 = vcombine.high %v479_v19, %v483_v22  ;;  %v475_v32 = vld [vmem:[#allocation2 + $0xbf8] sm:$0xff]  ;;  %v4991_v35 = vcombine.low %v479_v19, %v483_v22 }
 0x201   :  { %v3491_v52 = vpop.f32.mrf.mxu0  ;;  %3784 = vmatprep.subr.bf16.mxu0 %v4904_v37  ;;  %v3532_v57 = vpop.f32.mrf.mxu1  ;;  %3825 = vmatprep.subr.bf16.mxu1 %v5032_v16  ;;  %v599_v33 = vld [vmem:[#allocation2 + $0xfd8] sm:$0xff]  ;;  %v4984_v36 = vcombine.high %v471_v29, %v475_v32  ;;  %v4983_v16 = vcombine.low %v471_v29, %v475_v32 }
 0x202   :  { %3872 = vst [vmem:[%s5681_s8 + $0x10] sm:$0xff] %v5611_v20  ;;  %v5617_v28 = vmax.f32 %v3530_v47, 0.0  ;;  %v603_v53 = vld [vmem:[#allocation2 + $0xff8] sm:$0xff] }
 0x203   :  { %v5112_v51 = vcombine.high %v599_v33, %v603_v53  ;;  %v463_v37 = vld [vmem:[#allocation2 + $0xb98] sm:$0xff]  ;;  %v5111_v43 = vcombine.low %v599_v33, %v603_v53 }
 0x204   :  { %3873 = vst [vmem:[%s5681_s8 + $0x18] sm:$0xff] %v5617_v28  ;;  %3785 = vmatpush1.bf16.msra.mxu0 %v4903_v50  ;;  %3826 = vmatpush1.bf16.msra.mxu1 %v5031_v54  ;;  %v467_v40 = vld [vmem:[#allocation2 + $0xbb8] sm:$0xff] }
 0x205   :  { %3786 = vmatprep.subr.bf16.mxu0 %v4896_v55  ;;  %3827 = vmatprep.subr.bf16.mxu1 %v5024_v31  ;;  %v591_v41 = vld [vmem:[#allocation2 + $0xf98] sm:$0xff]  ;;  %v4976_v44 = vcombine.high %v463_v37, %v467_v40  ;;  %v4975_v50 = vcombine.low %v463_v37, %v467_v40  ;;  %v5274_v37 = vld [vmem:[#allocation6 + $0x78] sm:$0xff]  }
 0x206   :  { %v595_v42 = vld [vmem:[#allocation2 + $0xfb8] sm:$0xff]  ;;  %v5275_v40 = vld [vmem:[#allocation6 + $0xf8] sm:$0xff]  }
 0x207   :  { %v5104_v56 = vcombine.high %v591_v41, %v595_v42  ;;  %v455_v45 = vld [vmem:[#allocation2 + $0xb58] sm:$0xff]  ;;  %v5103_v52 = vcombine.low %v591_v41, %v595_v42  ;;  %v5276_v41 = vld [vmem:[#allocation6 + $0x38] sm:$0xff]  }
 0x208   :  { %3787 = vmatpush1.bf16.msra.mxu0 %v4895_v0  ;;  %3828 = vmatpush1.bf16.msra.mxu1 %v5023_v17  ;;  %v459_v46 = vld [vmem:[#allocation2 + $0xb78] sm:$0xff]  ;;  %v5088_v17 = vcombine.high %v575_v60, %v579_v61  ;;  %v5277_v42 = vld [vmem:[#allocation6 + $0xb8] sm:$0xff]   ;;  %v5285_v60 = vld [vmem:[#allocation6 + $0xa8] sm:$0xff]  }
 0x209   :  { %3788 = vmatprep.subr.bf16.mxu0 %v4888_v2  ;;  %3829 = vmatprep.subr.bf16.mxu1 %v5016_v3  ;;  %v583_v47 = vld [vmem:[#allocation2 + $0xf58] sm:$0xff]  ;;  %v4968_v54 = vcombine.high %v455_v45, %v459_v46  ;;  %v4967_v62 = vcombine.low %v455_v45, %v459_v46  ;;  %v3881_v46 = vpack.c.bf16 %v5617_v28, %v5617_v28  ;;  %v5286_v61 = vld [vmem:[#allocation6 + $0x60] sm:$0xff]  }
 0x20a   :  { %v587_v49 = vld [vmem:[#allocation2 + $0xf78] sm:$0xff] }
 0x20b   :  { %v5096_v55 = vcombine.high %v583_v47, %v587_v49  ;;  %v447_v57 = vld [vmem:[#allocation2 + $0xb18] sm:$0xff]  ;;  %v5095_v63 = vcombine.low %v583_v47, %v587_v49 }
 0x20c   :  { %3789 = vmatpush1.bf16.msra.mxu0 %v4887_v7  ;;  %3830 = vmatpush1.bf16.msra.mxu1 %v5015_v8  ;;  %v451_v31 = vld [vmem:[#allocation2 + $0xb38] sm:$0xff] }
 0x20d   :  { %3790 = vmatprep.subr.bf16.mxu0 %v4880_v21  ;;  %3831 = vmatprep.subr.bf16.mxu1 %v5008_v58  ;;  %v4960_v0 = vcombine.high %v447_v57, %v451_v31  ;;  %v439_v2 = vld [vmem:[#allocation2 + $0xad8] sm:$0xff]  ;;  %v4959_v23 = vcombine.low %v447_v57, %v451_v31  ;;  %v5284_v31 = vld [vmem:[#allocation6 + $0x28] sm:$0xff]  }
 0x20e   :  { %v443_v3 = vld [vmem:[#allocation2 + $0xaf8] sm:$0xff] }
 0x20f   :  { %v571_v5 = vld [vmem:[#allocation2 + $0xef8] sm:$0xff]  ;;  %v4952_v7 = vcombine.high %v439_v2, %v443_v3  ;;  %v4951_v11 = vcombine.low %v439_v2, %v443_v3  ;;  %v5290_v2 = vld [vmem:[#allocation6 + $0x58] sm:$0xff]  }
 0x210   :  { %3791 = vmatpush1.bf16.msra.mxu0 %v4879_v13  ;;  %3832 = vmatpush1.bf16.msra.mxu1 %v5007_v14  ;;  %v5080_v8 = vcombine.high %v567_v4, %v571_v5  ;;  %v431_v21 = vld [vmem:[#allocation2 + $0xa98] sm:$0xff]  ;;  %v5079_v12 = vcombine.low %v567_v4, %v571_v5  ;;  %v5291_v3 = vld [vmem:[#allocation6 + $0xd8] sm:$0xff]  }
 0x211   :  { %3792 = vmatprep.subr.bf16.mxu0 %v4872_v15  ;;  %3833 = vmatprep.subr.bf16.mxu1 %v5000_v18  ;;  %v435_v58 = vld [vmem:[#allocation2 + $0xab8] sm:$0xff]  ;;  %v5292_v4 = vld [vmem:[#allocation6 + $0x18] sm:$0xff]  }
 0x212   :  { %v559_v9 = vld [vmem:[#allocation2 + $0xe98] sm:$0xff]  ;;  %v4944_v13 = vcombine.high %v431_v21, %v435_v58  ;;  %v4943_v19 = vcombine.low %v431_v21, %v435_v58  ;;  %v5293_v5 = vld [vmem:[#allocation6 + $0x98] sm:$0xff]   ;;  %v5298_v21 = vld [vmem:[#allocation6 + $0x48] sm:$0xff]  }
 0x213   :  { %v563_v59 = vld [vmem:[#allocation2 + $0xeb8] sm:$0xff]  ;;  %v5299_v58 = vld [vmem:[#allocation6 + $0xc8] sm:$0xff]  }
 0x214   :  { %3793 = vmatpush1.bf16.msra.mxu0 %v4871_v24  ;;  %3834 = vmatpush1.bf16.msra.mxu1 %v4999_v25  ;;  %v5072_v14 = vcombine.high %v559_v9, %v563_v59  ;;  %v423_v15 = vld [vmem:[#allocation2 + $0xa58] sm:$0xff]  ;;  %v5071_v22 = vcombine.low %v559_v9, %v563_v59  ;;  %v5300_v9 = vld [vmem:[#allocation6 + $0x8] sm:$0xff]  }
 0x215   :  { %3794 = vmatprep.subr.bf16.mxu0 %v4864_v48  ;;  %3835 = vmatprep.subr.bf16.mxu1 %v4992_v27  ;;  %v427_v18 = vld [vmem:[#allocation2 + $0xa78] sm:$0xff]  ;;  %v5301_v59 = vld [vmem:[#allocation6 + $0x88] sm:$0xff]  }
 0x216   :  { %v551_v26 = vld [vmem:[#allocation2 + $0xe58] sm:$0xff]  ;;  %v4936_v24 = vcombine.high %v423_v15, %v427_v18  ;;  %v4935_v33 = vcombine.low %v423_v15, %v427_v18  ;;  %v5306_v15 = vld [vmem:[#allocation6 + $0x178] sm:$0xff]  }
 0x217   :  { %v555_v30 = vld [vmem:[#allocation2 + $0xe78] sm:$0xff]  ;;  %v5322_v18 = vld [vmem:[#allocation6 + $0x1f8] sm:$0xff]  }
 0x218   :  { %3795 = vmatpush1.bf16.msra.mxu0 %v4863_v34  ;;  %3836 = vmatpush1.bf16.msra.mxu1 %v4991_v35  ;;  %v5064_v25 = vcombine.high %v551_v26, %v555_v30  ;;  %v415_v48 = vld [vmem:[#allocation2 + $0xa18] sm:$0xff]  ;;  %v5063_v53 = vcombine.low %v551_v26, %v555_v30  ;;  %v5307_v26 = vld [vmem:[#allocation6 + $0x138] sm:$0xff]  }
 0x219   :  { %3796 = vmatprep.subr.bf16.mxu0 %v4984_v36  ;;  %3837 = vmatprep.subr.bf16.mxu1 %v5112_v51  ;;  %v419_v27 = vld [vmem:[#allocation2 + $0xa38] sm:$0xff]  ;;  %v5345_v30 = vld [vmem:[%s5681_s8] sm:$0xff] }
 0x21a   :  { %v543_v29 = vld [vmem:[#allocation2 + $0xe18] sm:$0xff]  ;;  %v4928_v34 = vcombine.high %v415_v48, %v419_v27  ;;  %v4927_v36 = vcombine.low %v415_v48, %v419_v27 }
 0x21b   :  { %v547_v32 = vld [vmem:[#allocation2 + $0xe38] sm:$0xff] }
 0x21c   :  { %3797 = vmatpush2.bf16.msra.mxu0 %v4983_v16  ;;  %3838 = vmatpush2.bf16.msra.mxu1 %v5111_v43  ;;  %v5056_v35 = vcombine.high %v543_v29, %v547_v32  ;;  %v5055_v51 = vcombine.low %v543_v29, %v547_v32  ;;  %v5278_v16 = vld [vmem:[#allocation6 + $0x70] sm:$0xff]   ;;  %v5344_v43 = vld [vmem:[%s5681_s8 + $0x8] sm:$0xff]  ;;  %v5310_v29 = vld [vmem:[#allocation6 + $0x168] sm:$0xff]  }
 0x21d   :  { %3798 = vmatprep.subr.bf16.mxu0 %v4976_v44  ;;  %3839 = vmatprep.subr.bf16.mxu1 %v5104_v56  ;;  %v3879_v44 = vpack.c.bf16 %v5344_v43, %v5344_v43  ;;  %v5279_v45 = vld [vmem:[#allocation6 + $0xf0] sm:$0xff]  }
 0x21e   :  { %v5280_v49 = vld [vmem:[#allocation6 + $0x30] sm:$0xff]  }
 0x21f   :  { %v5324_v48 = vld [vmem:[#allocation6 + $0x1f0] sm:$0xff]  }
 0x220   :  { %3799 = vmatpush2.bf16.msra.mxu0 %v4975_v50  ;;  %3840 = vmatpush2.bf16.msra.mxu1 %v5103_v52  ;;  %v5281_v52 = vld [vmem:[#allocation6 + $0xb0] sm:$0xff]  }
 0x221   :  { %3800 = vmatprep.subr.bf16.mxu0 %v4968_v54  ;;  %3841 = vmatprep.subr.bf16.mxu1 %v5096_v55  ;;  %v5282_v54 = vld [vmem:[#allocation6 + $0x68] sm:$0xff]   ;;  %v5309_v27 = vld [vmem:[#allocation6 + $0x130] sm:$0xff]  }
 0x222   :  { %v5325_v32 = vld [vmem:[#allocation6 + $0x1b0] sm:$0xff]  }
 0x223   :  { %v5317_v43 = vld [vmem:[#allocation6 + $0x110] sm:$0xff]  }
 0x224   :  { %3801 = vmatpush2.bf16.msra.mxu0 %v4967_v62  ;;  %3842 = vmatpush2.bf16.msra.mxu1 %v5095_v63  ;;  %v5287_v63 = vld [vmem:[#allocation6 + $0xe0] sm:$0xff]  }
 0x225   :  { %3802 = vmatprep.subr.bf16.mxu0 %v4960_v0  ;;  %3843 = vmatprep.subr.bf16.mxu1 %v5088_v17  ;;  %v5288_v0 = vld [vmem:[#allocation6 + $0x20] sm:$0xff]  }
 0x226   :  { %v5289_v17 = vld [vmem:[#allocation6 + $0xa0] sm:$0xff]  }
 0x228   :  { %3803 = vmatpush2.bf16.msra.mxu0 %v4959_v23  ;;  %3844 = vmatpush2.bf16.msra.mxu1 %v5087_v6  ;;  %v5294_v23 = vld [vmem:[#allocation6 + $0x50] sm:$0xff]  }
 0x229   :  { %3804 = vmatprep.subr.bf16.mxu0 %v4952_v7  ;;  %3845 = vmatprep.subr.bf16.mxu1 %v5080_v8  ;;  %v5295_v6 = vld [vmem:[#allocation6 + $0xd0] sm:$0xff]  }
 0x22a   :  { %v5296_v7 = vld [vmem:[#allocation6 + $0x10] sm:$0xff]  }
 0x22b   :  { %v5297_v8 = vld [vmem:[#allocation6 + $0x90] sm:$0xff]  }
 0x22c   :  { %3805 = vmatpush2.bf16.msra.mxu0 %v4951_v11  ;;  %3846 = vmatpush2.bf16.msra.mxu1 %v5079_v12  ;;  %v5302_v11 = vld [vmem:[#allocation6 + $0x40] sm:$0xff]  }
 0x22d   :  { %3806 = vmatprep.subr.bf16.mxu0 %v4944_v13  ;;  %3847 = vmatprep.subr.bf16.mxu1 %v5072_v14  ;;  %v5303_v12 = vld [vmem:[#allocation6 + $0xc0] sm:$0xff]  }
 0x22e   :  { %v5304_v13 = vld [vmem:[#allocation6] sm:$0xff]  }
 0x22f   :  { %v5305_v14 = vld [vmem:[#allocation6 + $0x80] sm:$0xff]  }
 0x230   :  { %3807 = vmatpush2.bf16.msra.mxu0 %v4943_v19  ;;  %3848 = vmatpush2.bf16.msra.mxu1 %v5071_v22  ;;  %v3878_v19 = vpack.c.bf16 %v5345_v30, %v5345_v30  ;;  %v5308_v22 = vld [vmem:[#allocation6 + $0x170] sm:$0xff]  }
 0x231   :  { %3808 = vmatprep.subr.bf16.mxu0 %v4936_v24  ;;  %3849 = vmatprep.subr.bf16.mxu1 %v5064_v25  ;;  %v5323_v24 = vld [vmem:[#allocation6 + $0x1b8] sm:$0xff]   ;;  %v3880_v25 = vpack.c.bf16 %v5611_v20, %v5611_v20  ;;  %v5328_v20 = vld [vmem:[#allocation6 + $0x1e0] sm:$0xff]  }
 0x234   :  { %3809 = vmatpush2.bf16.msra.mxu0 %v4935_v33  ;;  %3850 = vmatpush2.bf16.msra.mxu1 %v5063_v53  ;;  %v5326_v33 = vld [vmem:[#allocation6 + $0x1e8] sm:$0xff]  }
 0x235   :  { %3810 = vmatprep.subr.bf16.mxu0 %v4928_v34  ;;  %3851 = vmatprep.subr.bf16.mxu1 %v5056_v35  ;;  %v5311_v53 = vld [vmem:[#allocation6 + $0x128] sm:$0xff]   ;;  %v5312_v34 = vld [vmem:[#allocation6 + $0x160] sm:$0xff]  }
 0x236   :  { %v5327_v35 = vld [vmem:[#allocation6 + $0x1a8] sm:$0xff]  }
 0x238   :  { %3811 = vmatpush2.bf16.msra.mxu0 %v4927_v36  ;;  %3852 = vmatpush2.bf16.msra.mxu1 %v5055_v51  ;;  %v5313_v36 = vld [vmem:[#allocation6 + $0x120] sm:$0xff]   ;;  %v5314_v51 = vld [vmem:[#allocation6 + $0x158] sm:$0xff]  }
 0x239   :  { %5178 = vmatprep.subr.bf16.mxu0 %v5274_v37  ;;  %5200 = vmatprep.subr.bf16.mxu1 %v5275_v40  ;;  %v5329_v37 = vld [vmem:[#allocation6 + $0x1a0] sm:$0xff]   ;;  %v5330_v40 = vld [vmem:[#allocation6 + $0x1d8] sm:$0xff]  }
 0x23b   :  { %v5626_v56 = vpop.f32.mrf.mxu0  ;;  %3813 = vmatmul.mubr.bf16.vlgmr.msra.gmra.mxu0 %v5540_v38  ;;  %v5631_v47 = vpop.f32.mrf.mxu1  ;;  %3854 = vmatmul.mubr.bf16.vlgmr.msra.gmra.mxu1 %v5542_v39  ;;  %v5283_v38 = vld [vmem:[#allocation6 + $0xe8] sm:$0xff]  }
 0x23c   :  { %5179 = vmatpush3.bf16.msra.mxu0 %v5276_v41  ;;  %4437 = vmatprep.mubr.bf16.mxu0 %v3879_v44  ;;  %v5315_v41 = vld [vmem:[#allocation6 + $0x118] sm:$0xff]   ;;  %v5318_v44 = vld [vmem:[#allocation6 + $0x148] sm:$0xff]  }
 0x23d   :  { %5201 = vmatpush3.bf16.msra.mxu1 %v5277_v42  ;;  %v5634_v50 = vpop.f32.mrf.mxu0  ;;  %4477 = vmatprep.mubr.bf16.mxu1 %v3881_v46  ;;  %v5636_v55 = vpop.f32.mrf.mxu1  ;;  %v5316_v42 = vld [vmem:[#allocation6 + $0x150] sm:$0xff]   ;;  %v628_v46 = vsub.s32 5, %v5565_v10 }
 0x23e   :  { %5180 = vmatprep.subr.bf16.mxu0 %v5278_v16  ;;  %5202 = vmatprep.subr.bf16.mxu1 %v5279_v45  ;;  %v5331_v16 = vld [vmem:[#allocation6 + $0x198] sm:$0xff]   ;;  %v624_v45 = vsub.s32 4, %v5565_v10 }
 0x23f   :  { %v3572_v57 = vpop.f32.mrf.mxu0  ;;  %v3613_v28 = vpop.f32.mrf.mxu1 }
 0x240   :  { %5181 = vmatpush3.bf16.msra.mxu0 %v5280_v49  ;;  %v5319_v49 = vld [vmem:[#allocation6 + $0x108] sm:$0xff]   ;;  %v5321_v28 = vld [vmem:[#allocation6 + $0x100] sm:$0xff]  }
 0x241   :  { %5203 = vmatpush3.bf16.msra.mxu1 %v5281_v52  ;;  %v3573_v39 = vpop.f32.mrf.mxu0  ;;  %5182 = vmatprep.subr.bf16.mxu0 %v5282_v54  ;;  %v3614_v62 = vpop.f32.mrf.mxu1  ;;  %v5320_v52 = vld [vmem:[#allocation6 + $0x140] sm:$0xff]   ;;  %v5346_v54 = vld [vmem:[#allocation4] sm:$0xff] }
 0x242   :  { %5204 = vmatprep.subr.bf16.mxu1 %v5283_v38  ;;  %v625_v38 = vrot.slane %v5346_v54, %v624_v45  ;;  %v629_v57 = vrot.slane %v5346_v54, %v628_v46  ;;  %v5332_v62 = vld [vmem:[#allocation6 + $0x1d0] sm:$0xff]  }
 0x244   :  { %5183 = vmatpush3.bf16.msra.mxu0 %v5284_v31  ;;  %v3569_v31 = vadd.f32 %v5626_v56, %v625_v38  ;;  %v3571_v39 = vadd.f32 %v5634_v50, %v629_v57  ;;  %v5334_v56 = vld [vmem:[#allocation6 + $0x1c8] sm:$0xff]   ;;  %v5113_v38 = vld [vmem:[#allocation7] ss:$0 sm:$0xff] }
 0x245   :  { %5205 = vmatpush3.bf16.msra.mxu1 %v5285_v60  ;;  %5184 = vmatprep.subr.bf16.mxu0 %v5286_v61 }
 0x246   :  { %5206 = vmatprep.subr.bf16.mxu1 %v5287_v63  ;;  %v3610_v60 = vadd.f32 %v5631_v47, %v3569_v31  ;;  %v3612_v63 = vadd.f32 %v5636_v55, %v3571_v39 }
 0x248   :  { %5185 = vmatpush3.bf16.msra.mxu0 %v5288_v0 }
 0x249   :  { %5207 = vmatpush3.bf16.msra.mxu1 %v5289_v17  ;;  %5186 = vmatprep.subr.bf16.mxu0 %v5290_v2  ;;  %v5333_v2 = vld [vmem:[#allocation6 + $0x190] sm:$0xff]  }
 0x24a   :  { %5208 = vmatprep.subr.bf16.mxu1 %v5291_v3 }
 0x24c   :  { %5187 = vmatpush3.bf16.msra.mxu0 %v5292_v4 }
 0x24d   :  { %5209 = vmatpush3.bf16.msra.mxu1 %v5293_v5  ;;  %5188 = vmatprep.subr.bf16.mxu0 %v5294_v23 }
 0x24e   :  { %5210 = vmatprep.subr.bf16.mxu1 %v5295_v6 }
 0x250   :  { %5189 = vmatpush3.bf16.msra.mxu0 %v5296_v7 }
 0x251   :  { %5211 = vmatpush3.bf16.msra.mxu1 %v5297_v8  ;;  %5190 = vmatprep.subr.bf16.mxu0 %v5298_v21  ;;  %v5335_v21 = vld [vmem:[#allocation6 + $0x188] sm:$0xff]  }
 0x252   :  { %5212 = vmatprep.subr.bf16.mxu1 %v5299_v58 }
 0x254   :  { %5191 = vmatpush3.bf16.msra.mxu0 %v5300_v9  ;;  %v5336_v9 = vld [vmem:[#allocation6 + $0x1c0] sm:$0xff]  }
 0x255   :  { %5213 = vmatpush3.bf16.msra.mxu1 %v5301_v59  ;;  %5192 = vmatprep.subr.bf16.mxu0 %v5302_v11  ;;  %v5337_v11 = vld [vmem:[#allocation6 + $0x180] sm:$0xff]  }
 0x256   :  { %5214 = vmatprep.subr.bf16.mxu1 %v5303_v12 }
 0x258   :  { %5193 = vmatpush3.bf16.msra.mxu0 %v5304_v13 }
 0x259   :  { %5215 = vmatpush3.bf16.msra.mxu1 %v5305_v14  ;;  %5222 = vmatprep.subr.bf16.mxu0 %v5306_v15 }
 0x25a   :  { %5244 = vmatprep.subr.bf16.mxu1 %v5322_v18 }
 0x25b   :  { %4438 = vmatmul.mubr.bf16.vlgmr.msra.gmra.mxu0 %v3878_v19 }
 0x25c   :  { %4478 = vmatmul.mubr.bf16.vlgmr.msra.gmra.mxu1 %v3880_v25  ;;  %5223 = vmatpush3.bf16.msra.mxu0 %v5307_v26  ;;  %v636_v25 = vsub.s32 7, %v5565_v10 }
 0x25d   :  { %5224 = vmatprep.subr.bf16.mxu0 %v5308_v22  ;;  %5245 = vmatpush3.bf16.msra.mxu1 %v5323_v24  ;;  %v632_v24 = vsub.s32 6, %v5565_v10 }
 0x25e   :  { %5246 = vmatprep.subr.bf16.mxu1 %v5324_v48 }
 0x25f   :  { %v633_v48 = vrot.slane %v5346_v54, %v632_v24 }
 0x260   :  { %5225 = vmatpush3.bf16.msra.mxu0 %v5309_v27  ;;  %v637_v27 = vrot.slane %v5346_v54, %v636_v25 }
 0x261   :  { %5226 = vmatprep.subr.bf16.mxu0 %v5310_v29  ;;  %5247 = vmatpush3.bf16.msra.mxu1 %v5325_v32 }
 0x262   :  { %5248 = vmatprep.subr.bf16.mxu1 %v5326_v33 }
 0x264   :  { %5227 = vmatpush3.bf16.msra.mxu0 %v5311_v53 }
 0x265   :  { %5228 = vmatprep.subr.bf16.mxu0 %v5312_v34  ;;  %5249 = vmatpush3.bf16.msra.mxu1 %v5327_v35 }
 0x266   :  { %5250 = vmatprep.subr.bf16.mxu1 %v5328_v20 }
 0x268   :  { %5229 = vmatpush3.bf16.msra.mxu0 %v5313_v36 }
 0x269   :  { %5230 = vmatprep.subr.bf16.mxu0 %v5314_v51  ;;  %5251 = vmatpush3.bf16.msra.mxu1 %v5329_v37 }
 0x26a   :  { %5252 = vmatprep.subr.bf16.mxu1 %v5330_v40 }
 0x26c   :  { %5231 = vmatpush3.bf16.msra.mxu0 %v5315_v41 }
 0x26d   :  { %5232 = vmatprep.subr.bf16.mxu0 %v5316_v42  ;;  %5253 = vmatpush3.bf16.msra.mxu1 %v5331_v16 }
 0x26e   :  { %5254 = vmatprep.subr.bf16.mxu1 %v5332_v62 }
 0x270   :  { %5233 = vmatpush3.bf16.msra.mxu0 %v5317_v43 }
 0x271   :  { %5234 = vmatprep.subr.bf16.mxu0 %v5318_v44  ;;  %5255 = vmatpush3.bf16.msra.mxu1 %v5333_v2 }
 0x272   :  { %5256 = vmatprep.subr.bf16.mxu1 %v5334_v56 }
 0x274   :  { %5235 = vmatpush3.bf16.msra.mxu0 %v5319_v49 }
 0x275   :  { %5236 = vmatprep.subr.bf16.mxu0 %v5320_v52  ;;  %5257 = vmatpush3.bf16.msra.mxu1 %v5335_v21 }
 0x276   :  { %5258 = vmatprep.subr.bf16.mxu1 %v5336_v9 }
 0x278   :  { %5237 = vmatpush3.bf16.msra.mxu0 %v5321_v28 }
 0x279   :  { %5259 = vmatpush3.bf16.msra.mxu1 %v5337_v11 }
 0x27b   :  { %v3650_v61 = vpop.f32.mrf.mxu0  ;;  %v3691_v17 = vpop.f32.mrf.mxu1 }
 0x27c   :  { %v3651_v0 = vadd.f32 %v3650_v61, %v3610_v60 }
 0x27d   :  { %v3652_v3 = vpop.f32.mrf.mxu0  ;;  %v3693_v23 = vpop.f32.mrf.mxu1 }
 0x27e   :  { %v3692_v4 = vadd.f32 %v3691_v17, %v3651_v0  ;;  %v3653_v5 = vadd.f32 %v3652_v3, %v3612_v63 }
 0x27f   :  { %v3654_v6 = vpop.f32.mrf.mxu0  ;;  %v3695_v8 = vpop.f32.mrf.mxu1 }
 0x280   :  { %v3866_v7 = vmax.f32 %v3692_v4, 0.0  ;;  %v3694_v50 = vadd.f32 %v3693_v23, %v3653_v5 }
 0x281   :  { %v3655_v47 = vpop.f32.mrf.mxu0  ;;  %v3696_v58 = vpop.f32.mrf.mxu1 }
 0x282   :  { %3874 = vst [vmem:[%s5681_s8 + $0x20] sm:$0xff] %v3866_v7  ;;  %v3867_v55 = vmax.f32 %v3694_v50, 0.0  ;;  %v3882_v12 = vpack.c.bf16 %v3866_v7, %v3866_v7 }
 0x284   :  { %3875 = vst [vmem:[%s5681_s8 + $0x28] sm:$0xff] %v3867_v55  ;;  %v3883_v59 = vpack.c.bf16 %v3867_v55, %v3867_v55 }
 0x286   :  { %4517 = vmatprep.mubr.bf16.mxu0 %v3883_v59 }
 0x287   :  { %4518 = vmatmul.mubr.bf16.vlgmr.msra.gmra.mxu0 %v3882_v12  ;;  %v4572_v12 = vand.u32 127, %v606_v1 }
 0x289   :  { %vm4573_vm0 = vcmp.lt.s32.totalorder %v4572_v12, 10 }
 0x2bb   :  { %v3732_v13 = vpop.f32.mrf.mxu0  ;;  %v3773_v14 = vpop.f32.mrf.mxu1 }
 0x2bc   :  { %v3733_v29 = vadd.f32 %v3732_v13, %v633_v48 }
 0x2bd   :  { %v3734_v15 = vpop.f32.mrf.mxu0  ;;  %v3775_v18 = vpop.f32.mrf.mxu1 }
 0x2be   :  { %v3735_v32 = vadd.f32 %v3734_v15, %v637_v27  ;;  %v3774_v33 = vadd.f32 %v3773_v14, %v3733_v29 }
 0x2bf   :  { %v3736_v26 = vpop.f32.mrf.mxu0  ;;  %v3777_v30 = vpop.f32.mrf.mxu1 }
 0x2c0   :  { %v3776_v34 = vadd.f32 %v3775_v18, %v3735_v32 }
 0x2c1   :  { %v3737_v19 = vpop.f32.mrf.mxu0  ;;  %v3778_v22 = vpop.f32.mrf.mxu1 }
 0x2fb   :  { %v3814_v53 = vpop.f32.mrf.mxu0  ;;  %v3855_v20 = vpop.f32.mrf.mxu1 }
 0x2fc   :  { %v3815_v35 = vadd.f32 %v3814_v53, %v3774_v33 }
 0x2fd   :  { %v3816_v36 = vpop.f32.mrf.mxu0  ;;  %v3857_v40 = vpop.f32.mrf.mxu1 }
 0x2fe   :  { %v3856_v51 = vadd.f32 %v3855_v20, %v3815_v35  ;;  %v3817_v37 = vadd.f32 %v3816_v36, %v3776_v34 }
 0x2ff   :  { %v3818_v41 = vpop.f32.mrf.mxu0  ;;  %v3859_v43 = vpop.f32.mrf.mxu1 }
 0x300   :  { %v3868_v42 = vmax.f32 %v3856_v51, 0.0  ;;  %v3858_v16 = vadd.f32 %v3857_v40, %v3817_v37 }
 0x301   :  { %v3819_v44 = vpop.f32.mrf.mxu0  ;;  %v3860_v45 = vpop.f32.mrf.mxu1 }
 0x302   :  { %3876 = vst [vmem:[%s5681_s8 + $0x30] sm:$0xff] %v3868_v42  ;;  %v3869_v10 = vmax.f32 %v3858_v16, 0.0  ;;  %v3884_v49 = vpack.c.bf16 %v3868_v42, %v3868_v42 }
 0x304   :  { %3877 = vst [vmem:[%s5681_s8 + $0x38] sm:$0xff] %v3869_v10  ;;  %v3885_v46 = vpack.c.bf16 %v3869_v10, %v3869_v10 }
 0x306   :  { %4557 = vmatprep.mubr.bf16.mxu1 %v3885_v46 }
 0x307   :  { %4558 = vmatmul.mubr.bf16.vlgmr.msra.gmra.mxu1 %v3884_v49 }
 0x31b   :  { %v5194_v52 = vpop.f32.mrf.mxu0 }
 0x31c   :  { %v5216_v54 = vpop.f32.mrf.mxu1 }
 0x31d   :  { %v5195_v57 = vpop.f32.mrf.mxu0 }
 0x31e   :  { %v5196_v28 = vadd.f32 %v5195_v57, %v5194_v52  ;;  %v5217_v31 = vpop.f32.mrf.mxu1 }
 0x31f   :  { %v5218_v39 = vadd.f32 %v5217_v31, %v5216_v54  ;;  %v5197_v60 = vpop.f32.mrf.mxu0 }
 0x320   :  { %v4440_v61 = vadd.f32 %v5196_v28, %v5113_v38  ;;  %v5219_v62 = vpop.f32.mrf.mxu1 }
 0x321   :  { %v5198_v63 = vpop.f32.mrf.mxu0 }
 0x322   :  { %v4480_v0 = vadd.f32 %v5218_v39, %v4440_v61  ;;  %v5220_v17 = vpop.f32.mrf.mxu1 }
 0x347   :  { %v5238_v2 = vpop.f32.mrf.mxu0 }
 0x349   :  { %v5239_v3 = vpop.f32.mrf.mxu0 }
 0x34a   :  { %v5240_v4 = vadd.f32 %v5239_v3, %v5238_v2 }
 0x34b   :  { %v5241_v5 = vpop.f32.mrf.mxu0 }
 0x34c   :  { %v4520_v23 = vadd.f32 %v5240_v4, %v4480_v0 }
 0x34d   :  { %v5242_v6 = vpop.f32.mrf.mxu0 }
 0x3c7   :  { %v5260_v56 = vpop.f32.mrf.mxu1 }
 0x3c9   :  { %v5261_v7 = vpop.f32.mrf.mxu1 }
 0x3ca   :  { %v5262_v50 = vadd.f32 %v5261_v7, %v5260_v56 }
 0x3cb   :  { %v5263_v8 = vpop.f32.mrf.mxu1 }
 0x3cc   :  { %v4560_v21 = vadd.f32 %v5262_v50, %v4520_v23 }
 0x3cd   :  { %v5264_v47 = vpop.f32.mrf.mxu1 }
 0x3ce   :  { %4565 = vst [vmem:[%s5680_s7] sm:$0xff] %v4560_v21  ;;  %v4566_v55 = vmul.f32 0.5, %v4560_v21 }
 0x3d0   :  { %5338 = vtanh.f32 %v4566_v55 }
 0x3dd   :  { %v5339_v58 = vpop.eup %5338 }
 0x3de   :  { %v4568_v9 = vadd.f32 1.0, %v5339_v58 }
 0x3e0   :  { %v4569_v59 = vmul.f32 0.5, %v4568_v9 }
 0x3e2   :  { %4570 = vst [vmem:[%s5678_s5] sm:$0xff] %v4569_v59  ;;  %v4574_v11 = vmul.f32 1.442695, %v4569_v59 }
 0x3e4   :  { %5340 = vpow2.f32 %v4574_v11 }
 0x3f1   :  { %v5341_v13 = vpop.eup %5340 }
 0x3f2   :  { %v4576_v14 = vsel %vm4573_vm0, %v5341_v13, 0.0 }
 0x3f3   :  { %4577 = vadd.xlane.f32.xlu0 %v4576_v14 }
 0x47c   :  { %v4578_v15 = vpop.xlane.xlu0 %4577 }
 0x47d   :  { %5342 = vrcp.f32 %v4578_v15 }
 0x48a   :  { %v5343_v18 = vpop.eup %5342 }
 0x48b   :  { %v4580_v26 = vmul.f32 %v5343_v18, %v4576_v14 }
 0x48d   :  { %4581 = vst [vmem:[%s5679_s6] sm:$0xff] %v4580_v26 }
 0x48e   :  { %4598 = vsyncpa [#allocation3], 1 }
 0x48f   :  { %4599 = vsyncpa [#allocation5], 1 }
 0x490   :  { %4600 = vsyncpa [#allocation8], 1 }

</bundles_post_ra>
